<compile_context>
chip_gen: v7x
topology: tpu7x:2x2x1
jax: 0.10.0
libtpu: 0.0.40
codegen_flags: <defaults>
</compile_context>

<pallas_src>
import functools

import numpy as np
import jax
import jax.numpy as jnp
from jax import lax
from jax.experimental import pallas as pl
from jax.experimental.pallas import tpu as pltpu


# ----------------------------------------------------------------------------
# Adaptive average pooling expressed as a static pooling matrix.
# ----------------------------------------------------------------------------
def _adaptive_pool_matrix(in_size, out_size):
    """Row-stochastic (out_size, in_size) matrix reproducing AdaptiveAvgPool1d."""
    P = np.zeros((out_size, in_size), dtype=np.float32)
    for i in range(out_size):
        start = (i * in_size) // out_size
        end = -((-(i + 1) * in_size) // out_size)  # ceil((i+1)*in/out)
        P[i, start:end] = 1.0 / float(end - start)
    return P


def _pick_batch_block(bs, max_block=4):
    """Largest divisor of bs <= max_block that still keeps the grid >= 2 steps
    (so both v7x TensorCores get work) whenever bs allows it."""
    best = 1
    for d in range(1, min(bs, max_block) + 1):
        if bs % d == 0 and (bs // d) >= 2:
            best = d
    return best


# ----------------------------------------------------------------------------
# Fused Converter kernel: one batch block (Bblk elements) per grid step.
# ----------------------------------------------------------------------------
def _converter_block_kernel(
    x1_ref, x2_ref, pool_ref,
    ln1_g_ref, ln1_b_ref, ln2_g_ref, ln2_b_ref,
    w1p_ref, b1p_ref, w2p_ref, b2p_ref,
    g1w1_ref, g1b1_ref, g1w2t_ref, wext1_ref,
    g2w1_ref, g2b1_ref, g2w2t_ref, wext2_ref,
    o1_ref, o2_ref,
    *, eps, dim_temp):
    f32 = jnp.float32
    bf16 = jnp.bfloat16
    Bblk, T, C = x1_ref.shape
    Dt = dim_temp
    Nn = pool_ref.shape[0]
    N = Bblk * T

    # Flatten the batch block so token-parallel matmuls get a long M dimension.
    x1 = x1_ref[...].reshape(N, C).astype(f32)
    x2 = x2_ref[...].reshape(N, C).astype(f32)

    def layer_norm(x, g, b):
        mu = jnp.mean(x, axis=-1, keepdims=True)
        xc = x - mu
        var = jnp.mean(xc * xc, axis=-1, keepdims=True)
        return xc * lax.rsqrt(var + eps) * g + b

    f1n = layer_norm(x1, ln1_g_ref[...], ln1_b_ref[...])        # (N, C) f32
    f2n = layer_norm(x2, ln2_g_ref[...], ln2_b_ref[...])        # (N, C) f32

    # Fused Q | K | conv_fc projection: one wide (C, 3*Dt) MXU matmul per stream.
    y1 = jnp.dot(f1n.astype(bf16), w1p_ref[...],
                 preferred_element_type=f32) + b1p_ref[...]     # (N, 3*Dt)
    y2 = jnp.dot(f2n.astype(bf16), w2p_ref[...],
                 preferred_element_type=f32) + b2p_ref[...]     # (N, 3*Dt)

    # conv_fc channel softmax; take channel 1 as the spatial attention map.
    fc = y1[:, 2 * Dt:] + y2[:, 2 * Dt:]                        # (N, Dt) f32
    fc = fc - jnp.max(fc, axis=-1, keepdims=True)
    efc = jnp.exp(fc)
    att = efc[:, 1:2] * pl.reciprocal(
        jnp.sum(efc, axis=-1, keepdims=True), approx=True)      # (N, 1)

    pool_b = jnp.broadcast_to(pool_ref[...], (Bblk, Nn, T))     # (B, Nn, T) bf16

    def stream(fn, y, gw1, gb1, gw2t, wext):
        q = y[:, :Dt]                                           # (N, Dt) f32
        k = y[:, Dt:2 * Dt]                                     # (N, Dt) f32
        qb = q.astype(bf16).reshape(Bblk, T, Dt)
        kb = k.astype(bf16).reshape(Bblk, T, Dt)
        maskedb = (k * att).astype(bf16).reshape(Bblk, T, Dt)
        # Adaptive avg-pool interior bins: (Nn, T) @ (T, Dt) per element.
        v = jnp.einsum('bnt,btd->bnd', pool_b, maskedb,
                       preferred_element_type=f32)              # (B, Nn, Dt)
        # Node-projection logits & softmax over nodes.
        logits = jnp.einsum('btd,bnd->btn', kb, v.astype(bf16),
                            preferred_element_type=f32)         # (B, T, Nn)
        logits = logits - jnp.max(logits, axis=-1, keepdims=True)
        e = jnp.exp(logits)
        proj = e * pl.reciprocal(jnp.sum(e, axis=-1, keepdims=True),
                                 approx=True)                   # (B, T, Nn) f32
        proj_bf = proj.astype(bf16)
        projT_bf = jnp.swapaxes(proj, 1, 2).astype(bf16)        # (B, Nn, T)
        # n_state[n, d] = sum_t proj[t, n] * q[t, d]
        ns = jnp.einsum('bnt,btd->bnd', projT_bf, qb,
                        preferred_element_type=f32)             # (B, Nn, Dt)
        # GCN: h = conv1(ns) + b - ns ; n_rel = relu(conv2(h))
        gw1_b = jnp.broadcast_to(gw1, (Bblk, Nn, Nn))
        h = jnp.einsum('bmn,bnd->bmd', gw1_b, ns.astype(bf16),
                       preferred_element_type=f32) + gb1 - ns   # (B, Nn, Dt)
        nrel = jnp.maximum(
            jnp.einsum('bnd,de->bne', h.astype(bf16), gw2t,
                       preferred_element_type=f32), 0.0)        # (B, Nn, Dt)
        # state[t, d] = sum_n proj[t, n] * nrel[n, d]
        state = jnp.einsum('btn,bnd->btd', proj_bf, nrel.astype(bf16),
                           preferred_element_type=f32)          # (B, T, Dt)
        # residual + conv_extend (no bias)
        out = fn + jnp.dot(state.reshape(N, Dt).astype(bf16), wext,
                           preferred_element_type=f32)          # (N, C) f32
        # (B, T, C) -> (B, C, T): the wrapper's NCHW reshape is then free.
        return jnp.swapaxes(out.reshape(Bblk, T, C), 1, 2)

    o1_ref[...] = stream(f1n, y1, g1w1_ref[...], g1b1_ref[...],
                         g1w2t_ref[...], wext1_ref[...]).astype(o1_ref.dtype)
    o2_ref[...] = stream(f2n, y2, g2w1_ref[...], g2b1_ref[...],
                         g2w2t_ref[...], wext2_ref[...]).astype(o2_ref.dtype)


# ----------------------------------------------------------------------------
# Wrapper: single pallas_call, grid over batch blocks.
# ----------------------------------------------------------------------------
def converter_pair_pallas(x1, x2, p, *, img_size, mids, eps=1e-5,
                          max_batch_block=4):
    bs, T, C = x1.shape
    H = W = img_size // 16
    assert T == H * W, "num_token must equal (img_size // 16) ** 2"
    Dt = p['conv_fc_w'].shape[0]
    Nn = mids * mids
    f32, bf16 = jnp.float32, jnp.bfloat16

    Bblk = _pick_batch_block(bs, max_batch_block)
    grid = (bs // Bblk,)

    # Static pooling matrix for AdaptiveAvgPool2d((mids+2, mids+2))[1:-1, 1:-1].
    Ph = _adaptive_pool_matrix(H, mids + 2)
    Pw = _adaptive_pool_matrix(W, mids + 2)
    pool = jnp.asarray(np.kron(Ph[1:-1, :], Pw[1:-1, :]), dtype=bf16)   # (Nn, T)

    def cmat(w):  # 1x1 conv weight (O, I, 1, 1) -> (I, O)
        return w.reshape(w.shape[0], w.shape[1]).T

    wfc = p['conv_fc_w'].reshape(Dt, 2 * C)
    # Pack Q | K | fc so each stream does a single wide MXU matmul.
    w1_pack = jnp.concatenate(
        [cmat(p['conv_f1_Q_w']), cmat(p['conv_f1_K_w']), wfc[:, :C].T],
        axis=1).astype(bf16)                                            # (C, 3Dt)
    w2_pack = jnp.concatenate(
        [cmat(p['conv_f2_Q_w']), cmat(p['conv_f2_K_w']), wfc[:, C:].T],
        axis=1).astype(bf16)                                            # (C, 3Dt)
    b1_pack = jnp.concatenate(
        [p['conv_f1_Q_b'], p['conv_f1_K_b'], p['conv_fc_b']]
    ).reshape(1, 3 * Dt).astype(f32)
    b2_pack = jnp.concatenate(
        [p['conv_f2_Q_b'], p['conv_f2_K_b'], jnp.zeros((Dt,), f32)]
    ).reshape(1, 3 * Dt).astype(f32)

    def r2(v):  # (n,) -> (1, n) f32
        return v.reshape(1, -1).astype(f32)

    operands = [
        x1, x2, pool,
        r2(p['ln1_g']), r2(p['ln1_b']), r2(p['ln2_g']), r2(p['ln2_b']),
        w1_pack, b1_pack, w2_pack, b2_pack,
        p['gcn_f1_w1'].reshape(Nn, Nn).astype(bf16),
        p['gcn_f1_b1'].reshape(Nn, 1).astype(f32),
        p['gcn_f1_w2'].reshape(Dt, Dt).T.astype(bf16),
        p['conv_f1_ext_w'].reshape(C, Dt).T.astype(bf16),
        p['gcn_f2_w1'].reshape(Nn, Nn).astype(bf16),
        p['gcn_f2_b1'].reshape(Nn, 1).astype(f32),
        p['gcn_f2_w2'].reshape(Dt, Dt).T.astype(bf16),
        p['conv_f2_ext_w'].reshape(C, Dt).T.astype(bf16),
    ]

    tok_spec = pl.BlockSpec((Bblk, T, C), lambda b: (b, 0, 0))
    # TODO(synk): single-buffer (pipeline_mode=pl.Buffered(1)) the constant-index
    # weight operands once confirmed supported by this jax version's pipeliner.
    in_specs = [tok_spec, tok_spec] + [
        pl.BlockSpec(op.shape, lambda b, n=op.ndim: (0,) * n)
        for op in operands[2:]
    ]
    out_spec = pl.BlockSpec((Bblk, C, T), lambda b: (b, 0, 0))
    out_shape = (jax.ShapeDtypeStruct((bs, C, T), x1.dtype),
                 jax.ShapeDtypeStruct((bs, C, T), x2.dtype))

    # Modest, footprint-derived VMEM request (never the whole v7x VMEM).
    itemsize = jnp.dtype(x1.dtype).itemsize
    act_bytes = 2 * 4 * Bblk * T * C * itemsize                 # x1,x2,o1,o2 dbl-buffered
    weight_bytes = 2 * sum(int(np.prod(op.shape)) * jnp.dtype(op.dtype).itemsize
                           for op in operands[2:])
    scratch_bytes = 8 * Bblk * T * max(C, 3 * Dt) * 4           # rough f32 intermediates
    vmem_limit = int(min(32 * 2 ** 20,
                         max(16 * 2 ** 20,
                             int(1.5 * (act_bytes + weight_bytes + scratch_bytes)))))

    kernel = functools.partial(_converter_block_kernel, eps=eps, dim_temp=Dt)
    o1_ct, o2_ct = pl.pallas_call(
        kernel,
        out_shape=out_shape,
        grid_spec=pltpu.PrefetchScalarGridSpec(
            num_scalar_prefetch=0,
            grid=grid,
            in_specs=in_specs,
            out_specs=[out_spec, out_spec]),
        compiler_params=pltpu.CompilerParams(
            dimension_semantics=("parallel",),
            vmem_limit_bytes=vmem_limit),
    )(*operands)

    # (bs, C, T) -> (bs, C, H, W) is a free reshape (no HBM transpose).
    return o1_ct.reshape(bs, C, H, W), o2_ct.reshape(bs, C, H, W)


def converter_forward(token_pair, params, *, img_size, mids, eps=1e-5):
    n_pairs = len(token_pair) // 2
    bs = token_pair[0].shape[0]
    # All pairs share the same weights -> fold the pair index into the batch
    # axis so a single pallas_call covers every pair.
    if n_pairs == 1:
        x1, x2 = token_pair[0], token_pair[1]
    else:
        x1 = jnp.concatenate([token_pair[2 * i] for i in range(n_pairs)], axis=0)
        x2 = jnp.concatenate([token_pair[2 * i + 1] for i in range(n_pairs)], axis=0)
    o1, o2 = converter_pair_pallas(x1, x2, params, img_size=img_size,
                                   mids=mids, eps=eps)
    outs = []
    for i in range(n_pairs):
        outs.extend([o1[i * bs:(i + 1) * bs], o2[i * bs:(i + 1) * bs]])
    return outs


# ----------------------------------------------------------------------------
# Pure-JAX reference (mirrors the PyTorch forward, NCHW).
# ----------------------------------------------------------------------------
def _reference_converter(token_pair, p, *, img_size, mids, eps=1e-5):
    def ln(x, g, b):
        mu = x.mean(-1, keepdims=True)
        var = ((x - mu) ** 2).mean(-1, keepdims=True)
        return (x - mu) / jnp.sqrt(var + eps) * g + b

    def conv1x1(x, w, b=None):
        y = jnp.einsum('oc,bchw->bohw', w[:, :, 0, 0], x)
        if b is not None:
            y = y + b[None, :, None, None]
        return y

    def adaptive_avg_pool(x, out):
        _, _, Hh, Ww = x.shape
        rows = []
        for i in range(out):
            hs = (i * Hh) // out
            he = -((-(i + 1) * Hh) // out)
            cols = []
            for j in range(out):
                ws = (j * Ww) // out
                we = -((-(j + 1) * Ww) // out)
                cols.append(x[:, :, hs:he, ws:we].mean(axis=(2, 3)))
            rows.append(jnp.stack(cols, axis=-1))
        return jnp.stack(rows, axis=-2)

    H = W = img_size // 16
    outs = []
    for idx in range(len(token_pair) // 2):
        t1 = token_pair[2 * idx]
        t2 = token_pair[2 * idx + 1]
        bs, T, C = t1.shape
        f1 = jnp.transpose(ln(t1, p['ln1_g'], p['ln1_b']), (0, 2, 1)).reshape(bs, C, H, W)
        f2 = jnp.transpose(ln(t2, p['ln2_g'], p['ln2_b']), (0, 2, 1)).reshape(bs, C, H, W)
        fc = conv1x1(jnp.concatenate([f1, f2], axis=1), p['conv_fc_w'], p['conv_fc_b'])
        att = jax.nn.softmax(fc, axis=1)[:, 1:2, :, :]

        def stream(f, wq, bq, wk, bk, gw1, gb1, gw2, wext):
            Dt = wq.shape[0]
            Q = conv1x1(f, wq, bq).reshape(bs, Dt, -1)
            K = conv1x1(f, wk, bk)
            masked = K * att
            V = adaptive_avg_pool(masked, mids + 2)[:, :, 1:-1, 1:-1].reshape(bs, Dt, -1)
            proj = jnp.einsum('bdn,bdt->bnt', V, K.reshape(bs, Dt, -1))
            proj = jax.nn.softmax(proj, axis=1)
            ns = jnp.einsum('bdt,bnt->bdn', Q, proj)
            h = jnp.einsum('on,bnd->bod', gw1[:, :, 0], jnp.transpose(ns, (0, 2, 1)))
            h = jnp.transpose(h + gb1[None, :, None], (0, 2, 1)) - ns
            nrel = jax.nn.relu(jnp.einsum('oc,bcn->bon', gw2[:, :, 0], h))
            state = jnp.einsum('bdn,bnt->bdt', nrel, proj).reshape(bs, Dt, H, W)
            return f + conv1x1(state, wext)

        o1 = stream(f1, p['conv_f1_Q_w'], p['conv_f1_Q_b'], p['conv_f1_K_w'],
                    p['conv_f1_K_b'], p['gcn_f1_w1'], p['gcn_f1_b1'],
                    p['gcn_f1_w2'], p['conv_f1_ext_w'])
        o2 = stream(f2, p['conv_f2_Q_w'], p['conv_f2_Q_b'], p['conv_f2_K_w'],
                    p['conv_f2_K_b'], p['gcn_f2_w1'], p['gcn_f2_b1'],
                    p['gcn_f2_w2'], p['conv_f2_ext_w'])
        outs.extend([o1, o2])
    return outs


# ----------------------------------------------------------------------------
# Self-test at small shapes.
# ----------------------------------------------------------------------------
if __name__ == "__main__":
    key = jax.random.PRNGKey(0)
    bs, dim_in, dim_temp, img_size, mids = 4, 32, 16, 128, 4
    H = W = img_size // 16          # 8
    T = H * W                       # 64 tokens
    Nn = mids * mids                # 16

    keys = iter(jax.random.split(key, 30))

    def nrm(shape, scale=1.0):
        return scale * jax.random.normal(next(keys), shape, dtype=jnp.float32)

    params = {
        'ln1_g': 1.0 + 0.1 * nrm((dim_in,)),
        'ln1_b': 0.1 * nrm((dim_in,)),
        'ln2_g': 1.0 + 0.1 * nrm((dim_in,)),
        'ln2_b': 0.1 * nrm((dim_in,)),
        'conv_fc_w': nrm((dim_temp, 2 * dim_in, 1, 1), (2 * dim_in) ** -0.5),
        'conv_fc_b': 0.1 * nrm((dim_temp,)),
        'conv_f1_Q_w': nrm((dim_temp, dim_in, 1, 1), dim_in ** -0.5),
        'conv_f1_Q_b': 0.1 * nrm((dim_temp,)),
        'conv_f1_K_w': nrm((dim_temp, dim_in, 1, 1), dim_in ** -0.5),
        'conv_f1_K_b': 0.1 * nrm((dim_temp,)),
        'gcn_f1_w1': nrm((Nn, Nn, 1), Nn ** -0.5),
        'gcn_f1_b1': 0.1 * nrm((Nn,)),
        'gcn_f1_w2': nrm((dim_temp, dim_temp, 1), dim_temp ** -0.5),
        'conv_f1_ext_w': nrm((dim_in, dim_temp, 1, 1), dim_temp ** -0.5),
        'conv_f2_Q_w': nrm((dim_temp, dim_in, 1, 1), dim_in ** -0.5),
        'conv_f2_Q_b': 0.1 * nrm((dim_temp,)),
        'conv_f2_K_w': nrm((dim_temp, dim_in, 1, 1), dim_in ** -0.5),
        'conv_f2_K_b': 0.1 * nrm((dim_temp,)),
        'gcn_f2_w1': nrm((Nn, Nn, 1), Nn ** -0.5),
        'gcn_f2_b1': 0.1 * nrm((Nn,)),
        'gcn_f2_w2': nrm((dim_temp, dim_temp, 1), dim_temp ** -0.5),
        'conv_f2_ext_w': nrm((dim_in, dim_temp, 1, 1), dim_temp ** -0.5),
    }

    token_pair = [nrm((bs, T, dim_in)), nrm((bs, T, dim_in))]

    # f32-I/O correctness check (matmuls run in bf16 with f32 accumulation).
    outs = converter_forward(token_pair, params, img_size=img_size, mids=mids)
    outs = jax.block_until_ready(outs)

    refs = _reference_converter(token_pair, params, img_size=img_size, mids=mids)

    assert len(outs) == 2
    for o, r in zip(outs, refs):
        assert o.shape == (bs, dim_in, H, W), o.shape
        # bf16 MXU operands (same accuracy class as XLA's default-precision
        # f32 matmul on TPU) -> bf16-class tolerance.
        assert jnp.allclose(o, r, atol=5e-2, rtol=5e-2), \
            float(jnp.max(jnp.abs(o - r)))

    # bf16 activation-I/O path (production configuration): smoke + loose check.
    token_pair_bf16 = [t.astype(jnp.bfloat16) for t in token_pair]
    outs_bf16 = converter_forward(token_pair_bf16, params,
                                  img_size=img_size, mids=mids)
    outs_bf16 = jax.block_until_ready(outs_bf16)
    for o, r in zip(outs_bf16, refs):
        assert o.dtype == jnp.dtype(jnp.bfloat16)
        assert o.shape == (bs, dim_in, H, W), o.shape
        assert jnp.allclose(o.astype(jnp.float32), r, atol=2e-1, rtol=2e-1), \
            float(jnp.max(jnp.abs(o.astype(jnp.float32) - r)))

    print("KERNEL_OK")
</pallas_src>

<mosaic_0001>
module attributes {stable_mosaic.version = 11 : i64} {
  func.func @_converter_block_kernel(%arg0: i32, %arg1: memref<2x64x32xf32, #tpu.memory_space<vmem>>, %arg2: memref<2x64x32xf32, #tpu.memory_space<vmem>>, %arg3: memref<16x64xbf16, #tpu.memory_space<vmem>>, %arg4: memref<1x32xf32, #tpu.memory_space<vmem>>, %arg5: memref<1x32xf32, #tpu.memory_space<vmem>>, %arg6: memref<1x32xf32, #tpu.memory_space<vmem>>, %arg7: memref<1x32xf32, #tpu.memory_space<vmem>>, %arg8: memref<32x48xbf16, #tpu.memory_space<vmem>>, %arg9: memref<1x48xf32, #tpu.memory_space<vmem>>, %arg10: memref<32x48xbf16, #tpu.memory_space<vmem>>, %arg11: memref<1x48xf32, #tpu.memory_space<vmem>>, %arg12: memref<16x16xbf16, #tpu.memory_space<vmem>>, %arg13: memref<16x1xf32, #tpu.memory_space<vmem>>, %arg14: memref<16x16xbf16, #tpu.memory_space<vmem>>, %arg15: memref<16x32xbf16, #tpu.memory_space<vmem>>, %arg16: memref<16x16xbf16, #tpu.memory_space<vmem>>, %arg17: memref<16x1xf32, #tpu.memory_space<vmem>>, %arg18: memref<16x16xbf16, #tpu.memory_space<vmem>>, %arg19: memref<16x32xbf16, #tpu.memory_space<vmem>>, %arg20: memref<2x32x64xf32, #tpu.memory_space<vmem>>, %arg21: memref<2x32x64xf32, #tpu.memory_space<vmem>>) attributes {dimension_semantics = [#tpu.dimension_semantics<parallel>], iteration_bounds = array<i64: 2>, scalar_prefetch = 0 : i64, scratch_operands = 0 : i64, tpu.core_type = #tpu.core_type<tc>, window_params = [{transform_indices = @transform_0, window_bounds = array<i64: 2, 64, 32>}, {transform_indices = @transform_1, window_bounds = array<i64: 2, 64, 32>}, {pipeline_mode = #tpu.pipeline_mode<synchronous>, transform_indices = @transform_2, window_bounds = array<i64: 16, 64>}, {pipeline_mode = #tpu.pipeline_mode<synchronous>, transform_indices = @transform_3, window_bounds = array<i64: 1, 32>}, {pipeline_mode = #tpu.pipeline_mode<synchronous>, transform_indices = @transform_4, window_bounds = array<i64: 1, 32>}, {pipeline_mode = #tpu.pipeline_mode<synchronous>, transform_indices = @transform_5, window_bounds = array<i64: 1, 32>}, {pipeline_mode = #tpu.pipeline_mode<synchronous>, transform_indices = @transform_6, window_bounds = array<i64: 1, 32>}, {pipeline_mode = #tpu.pipeline_mode<synchronous>, transform_indices = @transform_7, window_bounds = array<i64: 32, 48>}, {pipeline_mode = #tpu.pipeline_mode<synchronous>, transform_indices = @transform_8, window_bounds = array<i64: 1, 48>}, {pipeline_mode = #tpu.pipeline_mode<synchronous>, transform_indices = @transform_9, window_bounds = array<i64: 32, 48>}, {pipeline_mode = #tpu.pipeline_mode<synchronous>, transform_indices = @transform_10, window_bounds = array<i64: 1, 48>}, {pipeline_mode = #tpu.pipeline_mode<synchronous>, transform_indices = @transform_11, window_bounds = array<i64: 16, 16>}, {pipeline_mode = #tpu.pipeline_mode<synchronous>, transform_indices = @transform_12, window_bounds = array<i64: 16, 1>}, {pipeline_mode = #tpu.pipeline_mode<synchronous>, transform_indices = @transform_13, window_bounds = array<i64: 16, 16>}, {pipeline_mode = #tpu.pipeline_mode<synchronous>, transform_indices = @transform_14, window_bounds = array<i64: 16, 32>}, {pipeline_mode = #tpu.pipeline_mode<synchronous>, transform_indices = @transform_15, window_bounds = array<i64: 16, 16>}, {pipeline_mode = #tpu.pipeline_mode<synchronous>, transform_indices = @transform_16, window_bounds = array<i64: 16, 1>}, {pipeline_mode = #tpu.pipeline_mode<synchronous>, transform_indices = @transform_17, window_bounds = array<i64: 16, 16>}, {pipeline_mode = #tpu.pipeline_mode<synchronous>, transform_indices = @transform_18, window_bounds = array<i64: 16, 32>}, {transform_indices = @transform_19, window_bounds = array<i64: 2, 32, 64>}, {transform_indices = @transform_20, window_bounds = array<i64: 2, 32, 64>}]} {
    %c0 = arith.constant 0 : index
    %c0_0 = arith.constant 0 : index
    %c0_1 = arith.constant 0 : index
    %0 = vector.load %arg1[%c0, %c0_0, %c0_1] : memref<2x64x32xf32, #tpu.memory_space<vmem>>, vector<2x64x32xf32>
    %1 = vector.shape_cast %0 : vector<2x64x32xf32> to vector<128x32xf32>
    %c0_2 = arith.constant 0 : index
    %c0_3 = arith.constant 0 : index
    %c0_4 = arith.constant 0 : index
    %2 = vector.load %arg2[%c0_2, %c0_3, %c0_4] : memref<2x64x32xf32, #tpu.memory_space<vmem>>, vector<2x64x32xf32>
    %3 = vector.shape_cast %2 : vector<2x64x32xf32> to vector<128x32xf32>
    %c0_5 = arith.constant 0 : index
    %c0_6 = arith.constant 0 : index
    %4 = vector.load %arg4[%c0_5, %c0_6] : memref<1x32xf32, #tpu.memory_space<vmem>>, vector<1x32xf32>
    %c0_7 = arith.constant 0 : index
    %c0_8 = arith.constant 0 : index
    %5 = vector.load %arg5[%c0_7, %c0_8] : memref<1x32xf32, #tpu.memory_space<vmem>>, vector<1x32xf32>
    %cst = arith.constant dense<0.000000e+00> : vector<128xf32>
    %6 = vector.multi_reduction <add>, %1, %cst [1] : vector<128x32xf32> to vector<128xf32>
    %7 = vector.shape_cast %6 : vector<128xf32> to vector<128x1xf32>
    %cst_9 = arith.constant 3.200000e+01 : f32
    %8 = vector.broadcast %cst_9 : f32 to vector<128x1xf32>
    %9 = arith.divf %7, %8 : vector<128x1xf32>
    %10 = vector.broadcast %9 : vector<128x1xf32> to vector<128x32xf32>
    %11 = arith.subf %1, %10 : vector<128x32xf32>
    %12 = arith.mulf %11, %11 : vector<128x32xf32>
    %cst_10 = arith.constant dense<0.000000e+00> : vector<128xf32>
    %13 = vector.multi_reduction <add>, %12, %cst_10 [1] : vector<128x32xf32> to vector<128xf32>
    %14 = vector.shape_cast %13 : vector<128xf32> to vector<128x1xf32>
    %cst_11 = arith.constant 3.200000e+01 : f32
    %15 = vector.broadcast %cst_11 : f32 to vector<128x1xf32>
    %16 = arith.divf %14, %15 : vector<128x1xf32>
    %cst_12 = arith.constant 9.99999974E-6 : f32
    %17 = vector.broadcast %cst_12 : f32 to vector<128x1xf32>
    %18 = arith.addf %16, %17 : vector<128x1xf32>
    %19 = math.rsqrt %18 : vector<128x1xf32>
    %20 = vector.broadcast %19 : vector<128x1xf32> to vector<128x32xf32>
    %21 = arith.mulf %11, %20 : vector<128x32xf32>
    %22 = vector.broadcast %4 : vector<1x32xf32> to vector<128x32xf32>
    %23 = arith.mulf %21, %22 : vector<128x32xf32>
    %24 = vector.broadcast %5 : vector<1x32xf32> to vector<128x32xf32>
    %25 = arith.addf %23, %24 : vector<128x32xf32>
    %c0_13 = arith.constant 0 : index
    %c0_14 = arith.constant 0 : index
    %26 = vector.load %arg6[%c0_13, %c0_14] : memref<1x32xf32, #tpu.memory_space<vmem>>, vector<1x32xf32>
    %c0_15 = arith.constant 0 : index
    %c0_16 = arith.constant 0 : index
    %27 = vector.load %arg7[%c0_15, %c0_16] : memref<1x32xf32, #tpu.memory_space<vmem>>, vector<1x32xf32>
    %cst_17 = arith.constant dense<0.000000e+00> : vector<128xf32>
    %28 = vector.multi_reduction <add>, %3, %cst_17 [1] : vector<128x32xf32> to vector<128xf32>
    %29 = vector.shape_cast %28 : vector<128xf32> to vector<128x1xf32>
    %cst_18 = arith.constant 3.200000e+01 : f32
    %30 = vector.broadcast %cst_18 : f32 to vector<128x1xf32>
    %31 = arith.divf %29, %30 : vector<128x1xf32>
    %32 = vector.broadcast %31 : vector<128x1xf32> to vector<128x32xf32>
    %33 = arith.subf %3, %32 : vector<128x32xf32>
    %34 = arith.mulf %33, %33 : vector<128x32xf32>
    %cst_19 = arith.constant dense<0.000000e+00> : vector<128xf32>
    %35 = vector.multi_reduction <add>, %34, %cst_19 [1] : vector<128x32xf32> to vector<128xf32>
    %36 = vector.shape_cast %35 : vector<128xf32> to vector<128x1xf32>
    %cst_20 = arith.constant 3.200000e+01 : f32
    %37 = vector.broadcast %cst_20 : f32 to vector<128x1xf32>
    %38 = arith.divf %36, %37 : vector<128x1xf32>
    %cst_21 = arith.constant 9.99999974E-6 : f32
    %39 = vector.broadcast %cst_21 : f32 to vector<128x1xf32>
    %40 = arith.addf %38, %39 : vector<128x1xf32>
    %41 = math.rsqrt %40 : vector<128x1xf32>
    %42 = vector.broadcast %41 : vector<128x1xf32> to vector<128x32xf32>
    %43 = arith.mulf %33, %42 : vector<128x32xf32>
    %44 = vector.broadcast %26 : vector<1x32xf32> to vector<128x32xf32>
    %45 = arith.mulf %43, %44 : vector<128x32xf32>
    %46 = vector.broadcast %27 : vector<1x32xf32> to vector<128x32xf32>
    %47 = arith.addf %45, %46 : vector<128x32xf32>
    %48 = arith.truncf %25 : vector<128x32xf32> to vector<128x32xbf16>
    %c0_22 = arith.constant 0 : index
    %c0_23 = arith.constant 0 : index
    %49 = vector.load %arg8[%c0_22, %c0_23] : memref<32x48xbf16, #tpu.memory_space<vmem>>, vector<32x48xbf16>
    %cst_24 = arith.constant dense<0.000000e+00> : vector<128x48xf32>
    %50 = tpu.matmul %48, %49, %cst_24 {dimension_numbers = #tpu.dot_dimension_numbers<[1], [0], [0], [1], [0, 0, 1, 1], [], []>} : vector<128x32xbf16>, vector<32x48xbf16>, vector<128x48xf32> -> vector<128x48xf32>
    %c0_25 = arith.constant 0 : index
    %c0_26 = arith.constant 0 : index
    %51 = vector.load %arg9[%c0_25, %c0_26] : memref<1x48xf32, #tpu.memory_space<vmem>>, vector<1x48xf32>
    %52 = vector.broadcast %51 : vector<1x48xf32> to vector<128x48xf32>
    %53 = arith.addf %50, %52 : vector<128x48xf32>
    %54 = arith.truncf %47 : vector<128x32xf32> to vector<128x32xbf16>
    %c0_27 = arith.constant 0 : index
    %c0_28 = arith.constant 0 : index
    %55 = vector.load %arg10[%c0_27, %c0_28] : memref<32x48xbf16, #tpu.memory_space<vmem>>, vector<32x48xbf16>
    %cst_29 = arith.constant dense<0.000000e+00> : vector<128x48xf32>
    %56 = tpu.matmul %54, %55, %cst_29 {dimension_numbers = #tpu.dot_dimension_numbers<[1], [0], [0], [1], [0, 0, 1, 1], [], []>} : vector<128x32xbf16>, vector<32x48xbf16>, vector<128x48xf32> -> vector<128x48xf32>
    %c0_30 = arith.constant 0 : index
    %c0_31 = arith.constant 0 : index
    %57 = vector.load %arg11[%c0_30, %c0_31] : memref<1x48xf32, #tpu.memory_space<vmem>>, vector<1x48xf32>
    %58 = vector.broadcast %57 : vector<1x48xf32> to vector<128x48xf32>
    %59 = arith.addf %56, %58 : vector<128x48xf32>
    %60 = vector.extract_strided_slice %53 {offsets = [0, 32], sizes = [128, 16], strides = [1, 1]} : vector<128x48xf32> to vector<128x16xf32>
    %61 = vector.extract_strided_slice %59 {offsets = [0, 32], sizes = [128, 16], strides = [1, 1]} : vector<128x48xf32> to vector<128x16xf32>
    %62 = arith.addf %60, %61 : vector<128x16xf32>
    %cst_32 = arith.constant dense<0xFF800000> : vector<128xf32>
    %63 = vector.multi_reduction <maximumf>, %62, %cst_32 [1] : vector<128x16xf32> to vector<128xf32>
    %64 = vector.shape_cast %63 : vector<128xf32> to vector<128x1xf32>
    %65 = vector.broadcast %64 : vector<128x1xf32> to vector<128x16xf32>
    %66 = arith.subf %62, %65 : vector<128x16xf32>
    %67 = math.exp %66 : vector<128x16xf32>
    %68 = vector.extract_strided_slice %67 {offsets = [0, 1], sizes = [128, 1], strides = [1, 1]} : vector<128x16xf32> to vector<128x1xf32>
    %cst_33 = arith.constant dense<0.000000e+00> : vector<128xf32>
    %69 = vector.multi_reduction <add>, %67, %cst_33 [1] : vector<128x16xf32> to vector<128xf32>
    %70 = vector.shape_cast %69 : vector<128xf32> to vector<128x1xf32>
    %71 = tpu.reciprocal %70 {approx = true} : vector<128x1xf32> -> vector<128x1xf32>
    %72 = arith.mulf %68, %71 : vector<128x1xf32>
    %c0_34 = arith.constant 0 : index
    %c0_35 = arith.constant 0 : index
    %73 = vector.load %arg3[%c0_34, %c0_35] : memref<16x64xbf16, #tpu.memory_space<vmem>>, vector<16x64xbf16>
    %74 = vector.shape_cast %73 : vector<16x64xbf16> to vector<1x16x64xbf16>
    %75 = vector.broadcast %74 : vector<1x16x64xbf16> to vector<2x16x64xbf16>
    %c0_36 = arith.constant 0 : index
    %c0_37 = arith.constant 0 : index
    %76 = vector.load %arg12[%c0_36, %c0_37] : memref<16x16xbf16, #tpu.memory_space<vmem>>, vector<16x16xbf16>
    %c0_38 = arith.constant 0 : index
    %c0_39 = arith.constant 0 : index
    %77 = vector.load %arg13[%c0_38, %c0_39] : memref<16x1xf32, #tpu.memory_space<vmem>>, vector<16x1xf32>
    %c0_40 = arith.constant 0 : index
    %c0_41 = arith.constant 0 : index
    %78 = vector.load %arg14[%c0_40, %c0_41] : memref<16x16xbf16, #tpu.memory_space<vmem>>, vector<16x16xbf16>
    %c0_42 = arith.constant 0 : index
    %c0_43 = arith.constant 0 : index
    %79 = vector.load %arg15[%c0_42, %c0_43] : memref<16x32xbf16, #tpu.memory_space<vmem>>, vector<16x32xbf16>
    %80 = vector.extract_strided_slice %53 {offsets = [0, 0], sizes = [128, 16], strides = [1, 1]} : vector<128x48xf32> to vector<128x16xf32>
    %81 = vector.extract_strided_slice %53 {offsets = [0, 16], sizes = [128, 16], strides = [1, 1]} : vector<128x48xf32> to vector<128x16xf32>
    %82 = arith.truncf %80 : vector<128x16xf32> to vector<128x16xbf16>
    %83 = vector.shape_cast %82 : vector<128x16xbf16> to vector<2x64x16xbf16>
    %84 = arith.truncf %81 : vector<128x16xf32> to vector<128x16xbf16>
    %85 = vector.shape_cast %84 : vector<128x16xbf16> to vector<2x64x16xbf16>
    %86 = vector.broadcast %72 : vector<128x1xf32> to vector<128x16xf32>
    %87 = arith.mulf %81, %86 : vector<128x16xf32>
    %88 = arith.truncf %87 : vector<128x16xf32> to vector<128x16xbf16>
    %89 = vector.shape_cast %88 : vector<128x16xbf16> to vector<2x64x16xbf16>
    "tpu.trace_start"() <{level = 10 : i32, message = "bnt,btd->bnd"}> : () -> ()
    %cst_44 = arith.constant dense<0.000000e+00> : vector<2x16x16xf32>
    %90 = tpu.matmul %75, %89, %cst_44 {dimension_numbers = #tpu.dot_dimension_numbers<[2], [1], [1], [2], [0, 0, 0, 1, 1, 2], [0], [0]>} : vector<2x16x64xbf16>, vector<2x64x16xbf16>, vector<2x16x16xf32> -> vector<2x16x16xf32>
    "tpu.trace_stop"() : () -> ()
    %91 = arith.truncf %90 : vector<2x16x16xf32> to vector<2x16x16xbf16>
    "tpu.trace_start"() <{level = 10 : i32, message = "btd,bnd->btn"}> : () -> ()
    %cst_45 = arith.constant dense<0.000000e+00> : vector<2x64x16xf32>
    %92 = tpu.matmul %85, %91, %cst_45 {dimension_numbers = #tpu.dot_dimension_numbers<[2], [2], [1], [1], [0, 0, 0, 1, 1, 1], [0], [0]>} : vector<2x64x16xbf16>, vector<2x16x16xbf16>, vector<2x64x16xf32> -> vector<2x64x16xf32>
    "tpu.trace_stop"() : () -> ()
    %cst_46 = arith.constant dense<0xFF800000> : vector<2x64xf32>
    %93 = vector.multi_reduction <maximumf>, %92, %cst_46 [2] : vector<2x64x16xf32> to vector<2x64xf32>
    %94 = vector.shape_cast %93 : vector<2x64xf32> to vector<2x64x1xf32>
    %95 = vector.broadcast %94 : vector<2x64x1xf32> to vector<2x64x16xf32>
    %96 = arith.subf %92, %95 : vector<2x64x16xf32>
    %97 = math.exp %96 : vector<2x64x16xf32>
    %cst_47 = arith.constant dense<0.000000e+00> : vector<2x64xf32>
    %98 = vector.multi_reduction <add>, %97, %cst_47 [2] : vector<2x64x16xf32> to vector<2x64xf32>
    %99 = vector.shape_cast %98 : vector<2x64xf32> to vector<2x64x1xf32>
    %100 = tpu.reciprocal %99 {approx = true} : vector<2x64x1xf32> -> vector<2x64x1xf32>
    %101 = vector.broadcast %100 : vector<2x64x1xf32> to vector<2x64x16xf32>
    %102 = arith.mulf %97, %101 : vector<2x64x16xf32>
    %103 = arith.truncf %102 : vector<2x64x16xf32> to vector<2x64x16xbf16>
    %104 = tpu.transpose %102, [0, 2, 1] : vector<2x64x16xf32> -> vector<2x16x64xf32>
    %105 = arith.truncf %104 : vector<2x16x64xf32> to vector<2x16x64xbf16>
    "tpu.trace_start"() <{level = 10 : i32, message = "bnt,btd->bnd"}> : () -> ()
    %cst_48 = arith.constant dense<0.000000e+00> : vector<2x16x16xf32>
    %106 = tpu.matmul %105, %83, %cst_48 {dimension_numbers = #tpu.dot_dimension_numbers<[2], [1], [1], [2], [0, 0, 0, 1, 1, 2], [0], [0]>} : vector<2x16x64xbf16>, vector<2x64x16xbf16>, vector<2x16x16xf32> -> vector<2x16x16xf32>
    "tpu.trace_stop"() : () -> ()
    %107 = vector.shape_cast %76 : vector<16x16xbf16> to vector<1x16x16xbf16>
    %108 = vector.broadcast %107 : vector<1x16x16xbf16> to vector<2x16x16xbf16>
    %109 = arith.truncf %106 : vector<2x16x16xf32> to vector<2x16x16xbf16>
    "tpu.trace_start"() <{level = 10 : i32, message = "bmn,bnd->bmd"}> : () -> ()
    %cst_49 = arith.constant dense<0.000000e+00> : vector<2x16x16xf32>
    %110 = tpu.matmul %108, %109, %cst_49 {dimension_numbers = #tpu.dot_dimension_numbers<[2], [1], [1], [2], [0, 0, 0, 1, 1, 2], [0], [0]>} : vector<2x16x16xbf16>, vector<2x16x16xbf16>, vector<2x16x16xf32> -> vector<2x16x16xf32>
    "tpu.trace_stop"() : () -> ()
    %111 = vector.shape_cast %77 : vector<16x1xf32> to vector<1x16x1xf32>
    %112 = vector.broadcast %111 : vector<1x16x1xf32> to vector<2x16x16xf32>
    %113 = arith.addf %110, %112 : vector<2x16x16xf32>
    %114 = arith.subf %113, %106 : vector<2x16x16xf32>
    %115 = arith.truncf %114 : vector<2x16x16xf32> to vector<2x16x16xbf16>
    "tpu.trace_start"() <{level = 10 : i32, message = "bnd,de->bne"}> : () -> ()
    %cst_50 = arith.constant dense<0.000000e+00> : vector<2x16x16xf32>
    %116 = tpu.matmul %115, %78, %cst_50 {dimension_numbers = #tpu.dot_dimension_numbers<[2], [0], [0, 1], [1], [0, 0, 0, 1, 1, 1], [], []>} : vector<2x16x16xbf16>, vector<16x16xbf16>, vector<2x16x16xf32> -> vector<2x16x16xf32>
    "tpu.trace_stop"() : () -> ()
    %cst_51 = arith.constant 0.000000e+00 : f32
    %117 = vector.broadcast %cst_51 : f32 to vector<2x16x16xf32>
    %118 = arith.maximumf %116, %117 : vector<2x16x16xf32>
    %119 = arith.truncf %118 : vector<2x16x16xf32> to vector<2x16x16xbf16>
    "tpu.trace_start"() <{level = 10 : i32, message = "btn,bnd->btd"}> : () -> ()
    %cst_52 = arith.constant dense<0.000000e+00> : vector<2x64x16xf32>
    %120 = tpu.matmul %103, %119, %cst_52 {dimension_numbers = #tpu.dot_dimension_numbers<[2], [1], [1], [2], [0, 0, 0, 1, 1, 2], [0], [0]>} : vector<2x64x16xbf16>, vector<2x16x16xbf16>, vector<2x64x16xf32> -> vector<2x64x16xf32>
    "tpu.trace_stop"() : () -> ()
    %121 = vector.shape_cast %120 : vector<2x64x16xf32> to vector<128x16xf32>
    %122 = arith.truncf %121 : vector<128x16xf32> to vector<128x16xbf16>
    %cst_53 = arith.constant dense<0.000000e+00> : vector<128x32xf32>
    %123 = tpu.matmul %122, %79, %cst_53 {dimension_numbers = #tpu.dot_dimension_numbers<[1], [0], [0], [1], [0, 0, 1, 1], [], []>} : vector<128x16xbf16>, vector<16x32xbf16>, vector<128x32xf32> -> vector<128x32xf32>
    %124 = arith.addf %25, %123 : vector<128x32xf32>
    %125 = vector.shape_cast %124 : vector<128x32xf32> to vector<2x64x32xf32>
    %126 = tpu.transpose %125, [0, 2, 1] : vector<2x64x32xf32> -> vector<2x32x64xf32>
    %c0_54 = arith.constant 0 : index
    %c0_55 = arith.constant 0 : index
    %c0_56 = arith.constant 0 : index
    %127 = vector.load %arg20[%c0_54, %c0_55, %c0_56] : memref<2x32x64xf32, #tpu.memory_space<vmem>>, vector<2x32x64xf32>
    tpu.vector_store %arg20[%c0_54, %c0_55, %c0_56], %126 {strides = array<i32>} : memref<2x32x64xf32, #tpu.memory_space<vmem>>, vector<2x32x64xf32>,
    %c0_57 = arith.constant 0 : index
    %c0_58 = arith.constant 0 : index
    %128 = vector.load %arg16[%c0_57, %c0_58] : memref<16x16xbf16, #tpu.memory_space<vmem>>, vector<16x16xbf16>
    %c0_59 = arith.constant 0 : index
    %c0_60 = arith.constant 0 : index
    %129 = vector.load %arg17[%c0_59, %c0_60] : memref<16x1xf32, #tpu.memory_space<vmem>>, vector<16x1xf32>
    %c0_61 = arith.constant 0 : index
    %c0_62 = arith.constant 0 : index
    %130 = vector.load %arg18[%c0_61, %c0_62] : memref<16x16xbf16, #tpu.memory_space<vmem>>, vector<16x16xbf16>
    %c0_63 = arith.constant 0 : index
    %c0_64 = arith.constant 0 : index
    %131 = vector.load %arg19[%c0_63, %c0_64] : memref<16x32xbf16, #tpu.memory_space<vmem>>, vector<16x32xbf16>
    %132 = vector.extract_strided_slice %59 {offsets = [0, 0], sizes = [128, 16], strides = [1, 1]} : vector<128x48xf32> to vector<128x16xf32>
    %133 = vector.extract_strided_slice %59 {offsets = [0, 16], sizes = [128, 16], strides = [1, 1]} : vector<128x48xf32> to vector<128x16xf32>
    %134 = arith.truncf %132 : vector<128x16xf32> to vector<128x16xbf16>
    %135 = vector.shape_cast %134 : vector<128x16xbf16> to vector<2x64x16xbf16>
    %136 = arith.truncf %133 : vector<128x16xf32> to vector<128x16xbf16>
    %137 = vector.shape_cast %136 : vector<128x16xbf16> to vector<2x64x16xbf16>
    %138 = vector.broadcast %72 : vector<128x1xf32> to vector<128x16xf32>
    %139 = arith.mulf %133, %138 : vector<128x16xf32>
    %140 = arith.truncf %139 : vector<128x16xf32> to vector<128x16xbf16>
    %141 = vector.shape_cast %140 : vector<128x16xbf16> to vector<2x64x16xbf16>
    "tpu.trace_start"() <{level = 10 : i32, message = "bnt,btd->bnd"}> : () -> ()
    %cst_65 = arith.constant dense<0.000000e+00> : vector<2x16x16xf32>
    %142 = tpu.matmul %75, %141, %cst_65 {dimension_numbers = #tpu.dot_dimension_numbers<[2], [1], [1], [2], [0, 0, 0, 1, 1, 2], [0], [0]>} : vector<2x16x64xbf16>, vector<2x64x16xbf16>, vector<2x16x16xf32> -> vector<2x16x16xf32>
    "tpu.trace_stop"() : () -> ()
    %143 = arith.truncf %142 : vector<2x16x16xf32> to vector<2x16x16xbf16>
    "tpu.trace_start"() <{level = 10 : i32, message = "btd,bnd->btn"}> : () -> ()
    %cst_66 = arith.constant dense<0.000000e+00> : vector<2x64x16xf32>
    %144 = tpu.matmul %137, %143, %cst_66 {dimension_numbers = #tpu.dot_dimension_numbers<[2], [2], [1], [1], [0, 0, 0, 1, 1, 1], [0], [0]>} : vector<2x64x16xbf16>, vector<2x16x16xbf16>, vector<2x64x16xf32> -> vector<2x64x16xf32>
    "tpu.trace_stop"() : () -> ()
    %cst_67 = arith.constant dense<0xFF800000> : vector<2x64xf32>
    %145 = vector.multi_reduction <maximumf>, %144, %cst_67 [2] : vector<2x64x16xf32> to vector<2x64xf32>
    %146 = vector.shape_cast %145 : vector<2x64xf32> to vector<2x64x1xf32>
    %147 = vector.broadcast %146 : vector<2x64x1xf32> to vector<2x64x16xf32>
    %148 = arith.subf %144, %147 : vector<2x64x16xf32>
    %149 = math.exp %148 : vector<2x64x16xf32>
    %cst_68 = arith.constant dense<0.000000e+00> : vector<2x64xf32>
    %150 = vector.multi_reduction <add>, %149, %cst_68 [2] : vector<2x64x16xf32> to vector<2x64xf32>
    %151 = vector.shape_cast %150 : vector<2x64xf32> to vector<2x64x1xf32>
    %152 = tpu.reciprocal %151 {approx = true} : vector<2x64x1xf32> -> vector<2x64x1xf32>
    %153 = vector.broadcast %152 : vector<2x64x1xf32> to vector<2x64x16xf32>
    %154 = arith.mulf %149, %153 : vector<2x64x16xf32>
    %155 = arith.truncf %154 : vector<2x64x16xf32> to vector<2x64x16xbf16>
    %156 = tpu.transpose %154, [0, 2, 1] : vector<2x64x16xf32> -> vector<2x16x64xf32>
    %157 = arith.truncf %156 : vector<2x16x64xf32> to vector<2x16x64xbf16>
    "tpu.trace_start"() <{level = 10 : i32, message = "bnt,btd->bnd"}> : () -> ()
    %cst_69 = arith.constant dense<0.000000e+00> : vector<2x16x16xf32>
    %158 = tpu.matmul %157, %135, %cst_69 {dimension_numbers = #tpu.dot_dimension_numbers<[2], [1], [1], [2], [0, 0, 0, 1, 1, 2], [0], [0]>} : vector<2x16x64xbf16>, vector<2x64x16xbf16>, vector<2x16x16xf32> -> vector<2x16x16xf32>
    "tpu.trace_stop"() : () -> ()
    %159 = vector.shape_cast %128 : vector<16x16xbf16> to vector<1x16x16xbf16>
    %160 = vector.broadcast %159 : vector<1x16x16xbf16> to vector<2x16x16xbf16>
    %161 = arith.truncf %158 : vector<2x16x16xf32> to vector<2x16x16xbf16>
    "tpu.trace_start"() <{level = 10 : i32, message = "bmn,bnd->bmd"}> : () -> ()
    %cst_70 = arith.constant dense<0.000000e+00> : vector<2x16x16xf32>
    %162 = tpu.matmul %160, %161, %cst_70 {dimension_numbers = #tpu.dot_dimension_numbers<[2], [1], [1], [2], [0, 0, 0, 1, 1, 2], [0], [0]>} : vector<2x16x16xbf16>, vector<2x16x16xbf16>, vector<2x16x16xf32> -> vector<2x16x16xf32>
    "tpu.trace_stop"() : () -> ()
    %163 = vector.shape_cast %129 : vector<16x1xf32> to vector<1x16x1xf32>
    %164 = vector.broadcast %163 : vector<1x16x1xf32> to vector<2x16x16xf32>
    %165 = arith.addf %162, %164 : vector<2x16x16xf32>
    %166 = arith.subf %165, %158 : vector<2x16x16xf32>
    %167 = arith.truncf %166 : vector<2x16x16xf32> to vector<2x16x16xbf16>
    "tpu.trace_start"() <{level = 10 : i32, message = "bnd,de->bne"}> : () -> ()
    %cst_71 = arith.constant dense<0.000000e+00> : vector<2x16x16xf32>
    %168 = tpu.matmul %167, %130, %cst_71 {dimension_numbers = #tpu.dot_dimension_numbers<[2], [0], [0, 1], [1], [0, 0, 0, 1, 1, 1], [], []>} : vector<2x16x16xbf16>, vector<16x16xbf16>, vector<2x16x16xf32> -> vector<2x16x16xf32>
    "tpu.trace_stop"() : () -> ()
    %cst_72 = arith.constant 0.000000e+00 : f32
    %169 = vector.broadcast %cst_72 : f32 to vector<2x16x16xf32>
    %170 = arith.maximumf %168, %169 : vector<2x16x16xf32>
    %171 = arith.truncf %170 : vector<2x16x16xf32> to vector<2x16x16xbf16>
    "tpu.trace_start"() <{level = 10 : i32, message = "btn,bnd->btd"}> : () -> ()
    %cst_73 = arith.constant dense<0.000000e+00> : vector<2x64x16xf32>
    %172 = tpu.matmul %155, %171, %cst_73 {dimension_numbers = #tpu.dot_dimension_numbers<[2], [1], [1], [2], [0, 0, 0, 1, 1, 2], [0], [0]>} : vector<2x64x16xbf16>, vector<2x16x16xbf16>, vector<2x64x16xf32> -> vector<2x64x16xf32>
    "tpu.trace_stop"() : () -> ()
    %173 = vector.shape_cast %172 : vector<2x64x16xf32> to vector<128x16xf32>
    %174 = arith.truncf %173 : vector<128x16xf32> to vector<128x16xbf16>
    %cst_74 = arith.constant dense<0.000000e+00> : vector<128x32xf32>
    %175 = tpu.matmul %174, %131, %cst_74 {dimension_numbers = #tpu.dot_dimension_numbers<[1], [0], [0], [1], [0, 0, 1, 1], [], []>} : vector<128x16xbf16>, vector<16x32xbf16>, vector<128x32xf32> -> vector<128x32xf32>
    %176 = arith.addf %47, %175 : vector<128x32xf32>
    %177 = vector.shape_cast %176 : vector<128x32xf32> to vector<2x64x32xf32>
    %178 = tpu.transpose %177, [0, 2, 1] : vector<2x64x32xf32> -> vector<2x32x64xf32>
    %c0_75 = arith.constant 0 : index
    %c0_76 = arith.constant 0 : index
    %c0_77 = arith.constant 0 : index
    %179 = vector.load %arg21[%c0_75, %c0_76, %c0_77] : memref<2x32x64xf32, #tpu.memory_space<vmem>>, vector<2x32x64xf32>
    tpu.vector_store %arg21[%c0_75, %c0_76, %c0_77], %178 {strides = array<i32>} : memref<2x32x64xf32, #tpu.memory_space<vmem>>, vector<2x32x64xf32>,
    return
  }
  func.func @transform_0(%arg0: i32) -> (i32, i32, i32) {
    %c0_i32 = arith.constant 0 : i32
    %c0_i32_0 = arith.constant 0 : i32
    %c0_i32_1 = arith.constant 0 : i32
    return %arg0, %c0_i32, %c0_i32_0 : i32, i32, i32
  }
  func.func @transform_1(%arg0: i32) -> (i32, i32, i32) {
    %c0_i32 = arith.constant 0 : i32
    %c0_i32_0 = arith.constant 0 : i32
    %c0_i32_1 = arith.constant 0 : i32
    return %arg0, %c0_i32, %c0_i32_0 : i32, i32, i32
  }
  func.func @transform_2(%arg0: i32) -> (i32, i32) {
    %c0_i32 = arith.constant 0 : i32
    %c0_i32_0 = arith.constant 0 : i32
    %c0_i32_1 = arith.constant 0 : i32
    return %c0_i32, %c0_i32_0 : i32, i32
  }
  func.func @transform_3(%arg0: i32) -> (i32, i32) {
    %c0_i32 = arith.constant 0 : i32
    %c0_i32_0 = arith.constant 0 : i32
    %c0_i32_1 = arith.constant 0 : i32
    return %c0_i32, %c0_i32_0 : i32, i32
  }
  func.func @transform_4(%arg0: i32) -> (i32, i32) {
    %c0_i32 = arith.constant 0 : i32
    %c0_i32_0 = arith.constant 0 : i32
    %c0_i32_1 = arith.constant 0 : i32
    return %c0_i32, %c0_i32_0 : i32, i32
  }
  func.func @transform_5(%arg0: i32) -> (i32, i32) {
    %c0_i32 = arith.constant 0 : i32
    %c0_i32_0 = arith.constant 0 : i32
    %c0_i32_1 = arith.constant 0 : i32
    return %c0_i32, %c0_i32_0 : i32, i32
  }
  func.func @transform_6(%arg0: i32) -> (i32, i32) {
    %c0_i32 = arith.constant 0 : i32
    %c0_i32_0 = arith.constant 0 : i32
    %c0_i32_1 = arith.constant 0 : i32
    return %c0_i32, %c0_i32_0 : i32, i32
  }
  func.func @transform_7(%arg0: i32) -> (i32, i32) {
    %c0_i32 = arith.constant 0 : i32
    %c0_i32_0 = arith.constant 0 : i32
    %c0_i32_1 = arith.constant 0 : i32
    return %c0_i32, %c0_i32_0 : i32, i32
  }
  func.func @transform_8(%arg0: i32) -> (i32, i32) {
    %c0_i32 = arith.constant 0 : i32
    %c0_i32_0 = arith.constant 0 : i32
    %c0_i32_1 = arith.constant 0 : i32
    return %c0_i32, %c0_i32_0 : i32, i32
  }
  func.func @transform_9(%arg0: i32) -> (i32, i32) {
    %c0_i32 = arith.constant 0 : i32
    %c0_i32_0 = arith.constant 0 : i32
    %c0_i32_1 = arith.constant 0 : i32
    return %c0_i32, %c0_i32_0 : i32, i32
  }
  func.func @transform_10(%arg0: i32) -> (i32, i32) {
    %c0_i32 = arith.constant 0 : i32
    %c0_i32_0 = arith.constant 0 : i32
    %c0_i32_1 = arith.constant 0 : i32
    return %c0_i32, %c0_i32_0 : i32, i32
  }
  func.func @transform_11(%arg0: i32) -> (i32, i32) {
    %c0_i32 = arith.constant 0 : i32
    %c0_i32_0 = arith.constant 0 : i32
    %c0_i32_1 = arith.constant 0 : i32
    return %c0_i32, %c0_i32_0 : i32, i32
  }
  func.func @transform_12(%arg0: i32) -> (i32, i32) {
    %c0_i32 = arith.constant 0 : i32
    %c0_i32_0 = arith.constant 0 : i32
    %c0_i32_1 = arith.constant 0 : i32
    return %c0_i32, %c0_i32_0 : i32, i32
  }
  func.func @transform_13(%arg0: i32) -> (i32, i32) {
    %c0_i32 = arith.constant 0 : i32
    %c0_i32_0 = arith.constant 0 : i32
    %c0_i32_1 = arith.constant 0 : i32
    return %c0_i32, %c0_i32_0 : i32, i32
  }
  func.func @transform_14(%arg0: i32) -> (i32, i32) {
    %c0_i32 = arith.constant 0 : i32
    %c0_i32_0 = arith.constant 0 : i32
    %c0_i32_1 = arith.constant 0 : i32
    return %c0_i32, %c0_i32_0 : i32, i32
  }
  func.func @transform_15(%arg0: i32) -> (i32, i32) {
    %c0_i32 = arith.constant 0 : i32
    %c0_i32_0 = arith.constant 0 : i32
    %c0_i32_1 = arith.constant 0 : i32
    return %c0_i32, %c0_i32_0 : i32, i32
  }
  func.func @transform_16(%arg0: i32) -> (i32, i32) {
    %c0_i32 = arith.constant 0 : i32
    %c0_i32_0 = arith.constant 0 : i32
    %c0_i32_1 = arith.constant 0 : i32
    return %c0_i32, %c0_i32_0 : i32, i32
  }
  func.func @transform_17(%arg0: i32) -> (i32, i32) {
    %c0_i32 = arith.constant 0 : i32
    %c0_i32_0 = arith.constant 0 : i32
    %c0_i32_1 = arith.constant 0 : i32
    return %c0_i32, %c0_i32_0 : i32, i32
  }
  func.func @transform_18(%arg0: i32) -> (i32, i32) {
    %c0_i32 = arith.constant 0 : i32
    %c0_i32_0 = arith.constant 0 : i32
    %c0_i32_1 = arith.constant 0 : i32
    return %c0_i32, %c0_i32_0 : i32, i32
  }
  func.func @transform_19(%arg0: i32) -> (i32, i32, i32) {
    %c0_i32 = arith.constant 0 : i32
    %c0_i32_0 = arith.constant 0 : i32
    %c0_i32_1 = arith.constant 0 : i32
    return %arg0, %c0_i32, %c0_i32_0 : i32, i32, i32
  }
  func.func @transform_20(%arg0: i32) -> (i32, i32, i32) {
    %c0_i32 = arith.constant 0 : i32
    %c0_i32_0 = arith.constant 0 : i32
    %c0_i32_1 = arith.constant 0 : i32
    return %arg0, %c0_i32, %c0_i32_0 : i32, i32, i32
  }
}

</mosaic_0001>

<bundles_post_ra>
// kernel: tpu_custom_call.1
= control target key start
LH: loop header
LB: loop body
LE: loop exit
PB: predicated region body
PF: predicated region fallthrough
CT: control target
= control target key end

     0   :  { %s7672_s0 = inlined_call_operand.vmem [shape: f32[4,64,32], index: 0, kind: input, shape index: {}]   ;;  %s7673_s1 = inlined_call_operand.vmem [shape: f32[4,64,32], index: 1, kind: input, shape index: {}]   ;;  %s7674_s2 = inlined_call_operand.vmem [shape: bf16[16,64], index: 2, kind: input, shape index: {}]   ;;  %s7675_s3 = inlined_call_operand.vmem [shape: f32[1,32], index: 3, kind: input, shape index: {}]   ;;  %s7676_s4 = inlined_call_operand.vmem [shape: f32[1,32], index: 4, kind: input, shape index: {}]   ;;  %s7677_s5 = inlined_call_operand.vmem [shape: f32[1,32], index: 5, kind: input, shape index: {}]   ;;  %s7678_s6 = inlined_call_operand.vmem [shape: f32[1,32], index: 6, kind: input, shape index: {}]   ;;  %s7679_s7 = inlined_call_operand.vmem [shape: bf16[32,48], index: 7, kind: input, shape index: {}]   ;;  %s7680_s8 = inlined_call_operand.vmem [shape: f32[1,48], index: 8, kind: input, shape index: {}]   ;;  %s7681_s9 = inlined_call_operand.vmem [shape: bf16[32,48], index: 9, kind: input, shape index: {}]   ;;  %s7682_s10 = inlined_call_operand.vmem [shape: f32[1,48], index: 10, kind: input, shape index: {}]   ;;  %s7683_s11 = inlined_call_operand.vmem [shape: bf16[16,16], index: 11, kind: input, shape index: {}]   ;;  %s7684_s12 = inlined_call_operand.vmem [shape: f32[16,1], index: 12, kind: input, shape index: {}]   ;;  %s7685_s13 = inlined_call_operand.vmem [shape: bf16[16,16], index: 13, kind: input, shape index: {}]   ;;  %s7686_s14 = inlined_call_operand.vmem [shape: bf16[16,32], index: 14, kind: input, shape index: {}]   ;;  %s7687_s15 = inlined_call_operand.vmem [shape: bf16[16,16], index: 15, kind: input, shape index: {}]   ;;  %s7688_s16 = inlined_call_operand.vmem [shape: f32[16,1], index: 16, kind: input, shape index: {}]   ;;  %s7689_s17 = inlined_call_operand.vmem [shape: bf16[16,16], index: 17, kind: input, shape index: {}]   ;;  %s7690_s18 = inlined_call_operand.vmem [shape: bf16[16,32], index: 18, kind: input, shape index: {}]   ;;  %s7691_s19 = inlined_call_operand.hbm [shape: f32[4,32,64], index: 19, kind: output, shape index: {0}]   ;;  %s7692_s20 = inlined_call_operand.hbm [shape: f32[4,32,64], index: 20, kind: output, shape index: {1}]  }
   0x1   :  { %7733 = sst [smem:[#allocation42_spill]] %s7672_s0 }
   0x2   :  { %7734 = sst [smem:[#allocation43_spill]] %s7673_s1 }
   0x3   :  { %7735 = sst [smem:[#allocation44_spill]] %s7674_s2 }
   0x4   :  { %7736 = sst [smem:[#allocation45_spill]] %s7675_s3 }
   0x5   :  { %7737 = sst [smem:[#allocation46_spill]] %s7676_s4 }
   0x6   :  { %7738 = sst [smem:[#allocation47_spill]] %s7677_s5 }
   0x7   :  { %7739 = sst [smem:[#allocation48_spill]] %s7678_s6 }
   0x8   :  { %7740 = sst [smem:[#allocation49_spill]] %s7679_s7 }
   0x9   :  { %7741 = sst [smem:[#allocation50_spill]] %s7680_s8 }
   0xa   :  { %26 = vsyncpa [#allocation3], 0 }
   0xb   :  { %28 = vsyncpa [#allocation3 + $0x1], 0 }
   0xc   :  { %29 = vsyncpa [#allocation5], 0 }
   0xd   :  { %31 = vsyncpa [#allocation5 + $0x1], 0  ;;  %s5609_s1 = smov 0   ;;  %s5611_s22 = smov 0  }
   0xe   :  { %s5613_s23 = smov 0   ;;  %s5615_s24 = smov 0  }
   0xf LB: > { %s5630_s2 = sadd.s32 4294967295, %s5492_s24   ;;  %s4470_s25 = sadd.s32 4294967294, %s5492_s24   ;;  %s5492_s24 = sphi %s5615_s24, %s7831_s24   ;;  %s5488_s23 = sphi %s5613_s23, %s7830_s23   ;;  %s5484_s22 = sphi %s5611_s22, %s7829_s22   ;;  %s5480_s1 = sphi %s5609_s1, %s7828_s1  }
  0x10   : > { %s5634_s3 = sadd.s32 1, %s5492_s24   ;;  %s453_s26 = sadd.s32 1, %s5488_s23 }
  0x11   : > { %s450_s27 = ssub.s32 %s5492_s24, %s5634_s3  ;;  %p463_p0 = scmp.ne.s32.totalorder %s5488_s23, %s5484_s22 }
  0x12   : > { %p451_p1 = scmp.eq.s32.totalorder %s450_s27, 0  ;;  %p464_p2 = scmp.eq.s32.totalorder %s5630_s2, 1 }
  0x13   : > { %p469_p3 = scmp.ne.s32.totalorder %s5484_s22, %s5480_s1  ;;  %p470_p4 = scmp.eq.s32.totalorder %s4470_s25, 1 }
  0x14   : > { %s5645_s28 = scalar_select %p451_p1, %s5488_s23, %s453_s26  }
  0x15   : > { %p5647_p5 = por %p464_p2, %p463_p0  ;;  %p5651_p6 = por %p470_p4, %p469_p3 }
  0x16   : > { %7742 = sst [smem:[#allocation8_spill]] %s5645_s28  ;;  %p4473_p7 = scmp.ge.s32.totalorder %s5492_s24, 1 }
  0x17   : > { %p585_p8 = scmp.lt.s32.totalorder %s5492_s24, 3 }
  0x19   : > { %p586_p9 = pnand %p4473_p7, %p585_p8 }
  0x1b   : > { %589 = sbr.rel (%p586_p9) target bundleno = 5121 (0x1401), region = 96 }
  0x22   : > { %s4476_s30 = sshll.u32 %s5630_s2, 1  ;;  %vm706_vm0 = vcmask 261120   ;;  %s7745_s26 = sld [smem:[#allocation42_spill]]  ;;  %vm1534_vm1 = vcmask 392448   ;;  %vm1695_vm2 = vcmask 130048   ;;  %vm5498_vm3 = vmmov 0  }
  0x23   : > { %p656_p10 = scmp.lt.s32.totalorder %s4476_s30, 3  ;;  %s7747_s7 = sld [smem:[#allocation49_spill]]  ;;  %vm1919_vm4 = vcmask 523264  }
  0x24   : > { %s7764_s5 = sld [smem:[#allocation47_spill]]  ;;  %s7767_s6 = sld [smem:[#allocation48_spill]] }
  0x25   : > { %s7833_s30 = smov (!%p656_p10, %s4476_s30), 3  ;;  %s7784_s8 = sld [smem:[#allocation50_spill]] }
  0x26   : > { %s4589_s0 = sshll.u32 %s7833_s30, 6  ;;  %s5494_s30 = smov 96  }
  0x27   : > { %s7785_s25 = sld [smem:[#allocation44_spill]] }
  0x28   : > { %s5666_s27 = scalar_lea.vmem %s7745_s26, %s4589_s0  ;;  %s7746_s26 = sld [smem:[#allocation43_spill]] }
  0x29   : > { %v5669_v0 = vld [vmem:[%s5666_s27] sm:$0xff]  ;;  %v5672_v1 = vld [vmem:[%s5666_s27 + $0x10] sm:$0xff]  ;;  %v5675_v2 = vld [vmem:[%s5666_s27 + $0x8] sm:$0xff] }
  0x2a   : > { %v707_v3 = vsel %vm706_vm0, %v5669_v0, 0.0  ;;  %v713_v4 = vsel %vm706_vm0, %v5672_v1, 0.0  ;;  %v5682_v5 = vld [vmem:[%s5666_s27 + $0x18] sm:$0xff]  ;;  %v710_v6 = vsel %vm706_vm0, %v5675_v2, 0.0  ;;  %v5689_v8 = vld [vmem:[%s5666_s27 + $0x20] sm:$0xff]  ;;  %v5692_v9 = vld [vmem:[%s5666_s27 + $0x28] sm:$0xff] }
  0x2b   : > { %708 = vadd.xlane.f32.xlu0 %v707_v3  ;;  %714 = vadd.xlane.f32.xlu1 %v713_v4  ;;  %v716_v7 = vsel %vm706_vm0, %v5682_v5, 0.0  ;;  %v719_v10 = vsel %vm706_vm0, %v5689_v8, 0.0  ;;  %v722_v11 = vsel %vm706_vm0, %v5692_v9, 0.0  ;;  %v5699_v12 = vld [vmem:[%s5666_s27 + $0x30] sm:$0xff]  ;;  %v5702_v13 = vld [vmem:[%s5666_s27 + $0x38] sm:$0xff]  ;;  %v5707_v15 = vld [vmem:[%s5666_s27 + $0x40] sm:$0xff] }
  0x2c   : > { %v725_v14 = vsel %vm706_vm0, %v5699_v12, 0.0  ;;  %v728_v16 = vsel %vm706_vm0, %v5702_v13, 0.0  ;;  %v5712_v17 = vld [vmem:[%s5666_s27 + $0x48] sm:$0xff]  ;;  %v731_v18 = vsel %vm706_vm0, %v5707_v15, 0.0  ;;  %v5719_v20 = vld [vmem:[%s5666_s27 + $0x50] sm:$0xff]  ;;  %v5722_v21 = vld [vmem:[%s5666_s27 + $0x58] sm:$0xff] }
  0x2d   : > { %v734_v19 = vsel %vm706_vm0, %v5712_v17, 0.0  ;;  %v737_v22 = vsel %vm706_vm0, %v5719_v20, 0.0  ;;  %v740_v23 = vsel %vm706_vm0, %v5722_v21, 0.0  ;;  %v5729_v24 = vld [vmem:[%s5666_s27 + $0x60] sm:$0xff]  ;;  %v5732_v25 = vld [vmem:[%s5666_s27 + $0x68] sm:$0xff]  ;;  %v5739_v28 = vld [vmem:[%s5666_s27 + $0x70] sm:$0xff] }
  0x2e   : > { %v743_v26 = vsel %vm706_vm0, %v5729_v24, 0.0  ;;  %v746_v27 = vsel %vm706_vm0, %v5732_v25, 0.0  ;;  %v5742_v29 = vld [vmem:[%s5666_s27 + $0x78] sm:$0xff]  ;;  %s5749_s28 = scalar_lea.vmem %s7746_s26, %s4589_s0  ;;  %v749_v30 = vsel %vm706_vm0, %v5739_v28, 0.0  ;;  %s7748_s27 = sld [smem:[#allocation45_spill]] }
  0x2f   : > { %711 = vadd.xlane.f32.xlu0 %v710_v6  ;;  %717 = vadd.xlane.f32.xlu1 %v716_v7  ;;  %v752_v31 = vsel %vm706_vm0, %v5742_v29, 0.0  ;;  %v5756_v32 = vld [vmem:[%s5749_s28] sm:$0xff]  ;;  %v5759_v33 = vld [vmem:[%s5749_s28 + $0x8] sm:$0xff]  ;;  %v5766_v36 = vld [vmem:[%s5749_s28 + $0x10] sm:$0xff]  ;;  %s7749_s26 = sld [smem:[#allocation46_spill]]  ;;  %s5497_s0 = smov 112  }
  0x30   : > { %v962_v34 = vsel %vm706_vm0, %v5756_v32, 0.0  ;;  %v965_v35 = vsel %vm706_vm0, %v5759_v33, 0.0  ;;  %v5769_v37 = vld [vmem:[%s5749_s28 + $0x18] sm:$0xff]  ;;  %v968_v38 = vsel %vm706_vm0, %v5766_v36, 0.0  ;;  %v5776_v40 = vld [vmem:[%s5749_s28 + $0x40] sm:$0xff]  ;;  %v5779_v41 = vld [vmem:[%s5749_s28 + $0x48] sm:$0xff] }
  0x31   : > { %v971_v39 = vsel %vm706_vm0, %v5769_v37, 0.0  ;;  %v986_v42 = vsel %vm706_vm0, %v5776_v40, 0.0  ;;  %v989_v43 = vsel %vm706_vm0, %v5779_v41, 0.0  ;;  %v5786_v44 = vld [vmem:[%s5749_s28 + $0x50] sm:$0xff]  ;;  %v5789_v45 = vld [vmem:[%s5749_s28 + $0x58] sm:$0xff]  ;;  %v5796_v48 = vld [vmem:[%s5749_s28 + $0x20] sm:$0xff] }
  0x32   : > { %v992_v46 = vsel %vm706_vm0, %v5786_v44, 0.0  ;;  %v995_v47 = vsel %vm706_vm0, %v5789_v45, 0.0  ;;  %v5799_v49 = vld [vmem:[%s5749_s28 + $0x28] sm:$0xff]  ;;  %v974_v50 = vsel %vm706_vm0, %v5796_v48, 0.0  ;;  %v5806_v52 = vld [vmem:[%s5749_s28 + $0x30] sm:$0xff]  ;;  %v5809_v53 = vld [vmem:[%s5749_s28 + $0x38] sm:$0xff] }
  0x33   : > { %720 = vadd.xlane.f32.xlu0 %v719_v10  ;;  %723 = vadd.xlane.f32.xlu1 %v722_v11  ;;  %v977_v51 = vsel %vm706_vm0, %v5799_v49, 0.0  ;;  %v980_v54 = vsel %vm706_vm0, %v5806_v52, 0.0  ;;  %v983_v55 = vsel %vm706_vm0, %v5809_v53, 0.0  ;;  %v5816_v56 = vld [vmem:[%s5749_s28 + $0x60] sm:$0xff]  ;;  %v5819_v57 = vld [vmem:[%s5749_s28 + $0x68] sm:$0xff]  ;;  %v5826_v60 = vld [vmem:[%s5749_s28 + $0x70] sm:$0xff] }
  0x34   : > { %v998_v58 = vsel %vm706_vm0, %v5816_v56, 0.0  ;;  %v1001_v59 = vsel %vm706_vm0, %v5819_v57, 0.0  ;;  %v5829_v61 = vld [vmem:[%s5749_s28 + $0x78] sm:$0xff]  ;;  %v1004_v62 = vsel %vm706_vm0, %v5826_v60, 0.0 }
  0x35   : > { %v1007_v63 = vsel %vm706_vm0, %v5829_v61, 0.0 }
  0x37   : > { %726 = vadd.xlane.f32.xlu0 %v725_v14  ;;  %729 = vadd.xlane.f32.xlu1 %v728_v16 }
  0x3b   : > { %732 = vadd.xlane.f32.xlu0 %v731_v18  ;;  %735 = vadd.xlane.f32.xlu1 %v734_v19 }
  0x3f   : > { %738 = vadd.xlane.f32.xlu0 %v737_v22  ;;  %741 = vadd.xlane.f32.xlu1 %v740_v23 }
  0x43   : > { %744 = vadd.xlane.f32.xlu0 %v743_v26  ;;  %747 = vadd.xlane.f32.xlu1 %v746_v27 }
  0x47   : > { %750 = vadd.xlane.f32.xlu0 %v749_v30  ;;  %753 = vadd.xlane.f32.xlu1 %v752_v31 }
  0x4b   : > { %963 = vadd.xlane.f32.xlu0 %v962_v34  ;;  %966 = vadd.xlane.f32.xlu1 %v965_v35 }
  0x4f   : > { %969 = vadd.xlane.f32.xlu0 %v968_v38  ;;  %972 = vadd.xlane.f32.xlu1 %v971_v39 }
  0x53   : > { %987 = vadd.xlane.f32.xlu0 %v986_v42  ;;  %990 = vadd.xlane.f32.xlu1 %v989_v43 }
  0x57   : > { %993 = vadd.xlane.f32.xlu0 %v992_v46  ;;  %996 = vadd.xlane.f32.xlu1 %v995_v47 }
  0x5b   : > { %975 = vadd.xlane.f32.xlu0 %v974_v50  ;;  %978 = vadd.xlane.f32.xlu1 %v977_v51 }
  0x5f   : > { %981 = vadd.xlane.f32.xlu0 %v980_v54  ;;  %984 = vadd.xlane.f32.xlu1 %v983_v55 }
  0x63   : > { %999 = vadd.xlane.f32.xlu0 %v998_v58  ;;  %1002 = vadd.xlane.f32.xlu1 %v1001_v59 }
  0x67   : > { %1005 = vadd.xlane.f32.xlu0 %v1004_v62  ;;  %1008 = vadd.xlane.f32.xlu1 %v1007_v63 }
  0xb8   : > { %v709_v3 = vpop.xlane.xlu0 %708  ;;  %v715_v4 = vpop.xlane.xlu1 %714 }
  0xb9   : > { %v756_v6 = vmul.f32 0.03125, %v709_v3  ;;  %v758_v7 = vmul.f32 0.03125, %v715_v4 }
  0xbb   : > { %v5836_v10 = vsub.f32 %v5669_v0, %v756_v6  ;;  %v5839_v11 = vsub.f32 %v5672_v1, %v758_v7 }
  0xbc   : > { %v712_v14 = vpop.xlane.xlu0 %711  ;;  %v718_v16 = vpop.xlane.xlu1 %717 }
  0xbd   : > { %v757_v18 = vmul.f32 0.03125, %v712_v14  ;;  %v759_v19 = vmul.f32 0.03125, %v718_v16  ;;  %v788_v22 = vmul.f32 %v5836_v10, %v5836_v10  ;;  %v790_v23 = vmul.f32 %v5839_v11, %v5839_v11 }
  0xbf   : > { %v5846_v26 = vsub.f32 %v5675_v2, %v757_v18  ;;  %v5849_v27 = vsub.f32 %v5682_v5, %v759_v19  ;;  %v804_v0 = vsel %vm706_vm0, %v788_v22, 0.0  ;;  %v810_v31 = vsel %vm706_vm0, %v790_v23, 0.0 }
  0xc0   : > { %805 = vadd.xlane.f32.xlu0 %v804_v0  ;;  %v721_v1 = vpop.xlane.xlu0 %720  ;;  %v724_v30 = vpop.xlane.xlu1 %723 }
  0xc1   : > { %v760_v34 = vmul.f32 0.03125, %v721_v1  ;;  %v761_v35 = vmul.f32 0.03125, %v724_v30  ;;  %v789_v38 = vmul.f32 %v5846_v26, %v5846_v26  ;;  %v791_v39 = vmul.f32 %v5849_v27, %v5849_v27 }
  0xc3   : > { %v5858_v2 = vsub.f32 %v5689_v8, %v760_v34  ;;  %v5861_v5 = vsub.f32 %v5692_v9, %v761_v35  ;;  %v807_v42 = vsel %vm706_vm0, %v789_v38, 0.0  ;;  %v813_v47 = vsel %vm706_vm0, %v791_v39, 0.0 }
  0xc4   : > { %811 = vadd.xlane.f32.xlu0 %v810_v31  ;;  %808 = vadd.xlane.f32.xlu1 %v807_v42  ;;  %v727_v43 = vpop.xlane.xlu0 %726  ;;  %v730_v46 = vpop.xlane.xlu1 %729 }
  0xc5   : > { %v762_v50 = vmul.f32 0.03125, %v727_v43  ;;  %v763_v51 = vmul.f32 0.03125, %v730_v46  ;;  %v792_v54 = vmul.f32 %v5858_v2, %v5858_v2  ;;  %v793_v8 = vmul.f32 %v5861_v5, %v5861_v5 }
  0xc7   : > { %v5870_v55 = vsub.f32 %v5699_v12, %v762_v50  ;;  %v5873_v9 = vsub.f32 %v5702_v13, %v763_v51  ;;  %v816_v58 = vsel %vm706_vm0, %v792_v54, 0.0  ;;  %v819_v63 = vsel %vm706_vm0, %v793_v8, 0.0 }
  0xc8   : > { %814 = vadd.xlane.f32.xlu1 %v813_v47  ;;  %817 = vadd.xlane.f32.xlu0 %v816_v58  ;;  %v733_v59 = vpop.xlane.xlu0 %732  ;;  %v736_v62 = vpop.xlane.xlu1 %735 }
  0xc9   : > { %v764_v3 = vmul.f32 0.03125, %v733_v59  ;;  %v765_v4 = vmul.f32 0.03125, %v736_v62  ;;  %v794_v6 = vmul.f32 %v5870_v55, %v5870_v55  ;;  %v795_v12 = vmul.f32 %v5873_v9, %v5873_v9 }
  0xcb   : > { %v5882_v7 = vsub.f32 %v5707_v15, %v764_v3  ;;  %v5885_v13 = vsub.f32 %v5712_v17, %v765_v4  ;;  %v822_v14 = vsel %vm706_vm0, %v794_v6, 0.0  ;;  %v825_v19 = vsel %vm706_vm0, %v795_v12, 0.0 }
  0xcc   : > { %820 = vadd.xlane.f32.xlu1 %v819_v63  ;;  %823 = vadd.xlane.f32.xlu0 %v822_v14  ;;  %v739_v16 = vpop.xlane.xlu0 %738  ;;  %v742_v18 = vpop.xlane.xlu1 %741 }
  0xcd   : > { %v766_v22 = vmul.f32 0.03125, %v739_v16  ;;  %v767_v23 = vmul.f32 0.03125, %v742_v18  ;;  %v796_v0 = vmul.f32 %v5882_v7, %v5882_v7  ;;  %v797_v15 = vmul.f32 %v5885_v13, %v5885_v13 }
  0xcf   : > { %v5894_v1 = vsub.f32 %v5719_v20, %v766_v22  ;;  %v5897_v17 = vsub.f32 %v5722_v21, %v767_v23  ;;  %v828_v30 = vsel %vm706_vm0, %v796_v0, 0.0  ;;  %v831_v35 = vsel %vm706_vm0, %v797_v15, 0.0 }
  0xd0   : > { %826 = vadd.xlane.f32.xlu1 %v825_v19  ;;  %829 = vadd.xlane.f32.xlu0 %v828_v30  ;;  %v745_v31 = vpop.xlane.xlu0 %744  ;;  %v748_v34 = vpop.xlane.xlu1 %747 }
  0xd1   : > { %v768_v38 = vmul.f32 0.03125, %v745_v31  ;;  %v769_v39 = vmul.f32 0.03125, %v748_v34  ;;  %v798_v42 = vmul.f32 %v5894_v1, %v5894_v1  ;;  %v799_v20 = vmul.f32 %v5897_v17, %v5897_v17 }
  0xd3   : > { %v5906_v43 = vsub.f32 %v5729_v24, %v768_v38  ;;  %v5909_v21 = vsub.f32 %v5732_v25, %v769_v39  ;;  %v834_v46 = vsel %vm706_vm0, %v798_v42, 0.0  ;;  %v837_v51 = vsel %vm706_vm0, %v799_v20, 0.0 }
  0xd4   : > { %832 = vadd.xlane.f32.xlu1 %v831_v35  ;;  %835 = vadd.xlane.f32.xlu0 %v834_v46  ;;  %v751_v47 = vpop.xlane.xlu0 %750  ;;  %v754_v50 = vpop.xlane.xlu1 %753 }
  0xd5   : > { %v770_v54 = vmul.f32 0.03125, %v751_v47  ;;  %v771_v8 = vmul.f32 0.03125, %v754_v50  ;;  %v800_v58 = vmul.f32 %v5906_v43, %v5906_v43  ;;  %v801_v24 = vmul.f32 %v5909_v21, %v5909_v21 }
  0xd7   : > { %v5918_v59 = vsub.f32 %v5739_v28, %v770_v54  ;;  %v5921_v25 = vsub.f32 %v5742_v29, %v771_v8  ;;  %v840_v62 = vsel %vm706_vm0, %v800_v58, 0.0  ;;  %v843_v4 = vsel %vm706_vm0, %v801_v24, 0.0  ;;  %v5131_v58 = vld [vmem:[%s7747_s7] sm:$0xff]  }
  0xd8   : > { %838 = vadd.xlane.f32.xlu1 %v837_v51  ;;  %841 = vadd.xlane.f32.xlu0 %v840_v62  ;;  %v964_v63 = vpop.xlane.xlu0 %963  ;;  %v967_v3 = vpop.xlane.xlu1 %966 }
  0xd9   : > { %v1010_v6 = vmul.f32 0.03125, %v964_v63  ;;  %v1011_v12 = vmul.f32 0.03125, %v967_v3  ;;  %v802_v14 = vmul.f32 %v5918_v59, %v5918_v59  ;;  %v803_v28 = vmul.f32 %v5921_v25, %v5921_v25  ;;  %4727 = vmatprep.subr.bf16.mxu0 %v5131_v58 }
  0xda   : > { %4728 = vmatpush3.bf16.msra.mxu0 %v5131_v58 }
  0xdb   : > { %v5930_v16 = vsub.f32 %v5756_v32, %v1010_v6  ;;  %v5933_v29 = vsub.f32 %v5759_v33, %v1011_v12  ;;  %v846_v18 = vsel %vm706_vm0, %v802_v14, 0.0  ;;  %v849_v23 = vsel %vm706_vm0, %v803_v28, 0.0  ;;  %v5132_v28 = vld [vmem:[%s7747_s7 + $0x8] sm:$0xff]  }
  0xdc   : > { %844 = vadd.xlane.f32.xlu1 %v843_v4  ;;  %847 = vadd.xlane.f32.xlu0 %v846_v18  ;;  %v970_v19 = vpop.xlane.xlu0 %969  ;;  %v973_v22 = vpop.xlane.xlu1 %972 }
  0xdd   : > { %v1012_v0 = vmul.f32 0.03125, %v970_v19  ;;  %v1013_v15 = vmul.f32 0.03125, %v973_v22  ;;  %v1042_v30 = vmul.f32 %v5930_v16, %v5930_v16  ;;  %v1043_v32 = vmul.f32 %v5933_v29, %v5933_v29  ;;  %4729 = vmatprep.subr.bf16.mxu0 %v5132_v28 }
  0xde   : > { %4730 = vmatpush3.bf16.msra.mxu0 %v5132_v28 }
  0xdf   : > { %v5942_v31 = vsub.f32 %v5766_v36, %v1012_v0  ;;  %v5945_v33 = vsub.f32 %v5769_v37, %v1013_v15  ;;  %v1058_v34 = vsel %vm706_vm0, %v1042_v30, 0.0  ;;  %v1061_v39 = vsel %vm706_vm0, %v1043_v32, 0.0 }
  0xe0   : > { %850 = vadd.xlane.f32.xlu1 %v849_v23  ;;  %1059 = vadd.xlane.f32.xlu0 %v1058_v34  ;;  %v988_v35 = vpop.xlane.xlu0 %987  ;;  %v991_v38 = vpop.xlane.xlu1 %990 }
  0xe1   : > { %v1018_v42 = vmul.f32 0.03125, %v988_v35  ;;  %v1019_v20 = vmul.f32 0.03125, %v991_v38  ;;  %v1044_v46 = vmul.f32 %v5942_v31, %v5942_v31  ;;  %v1045_v36 = vmul.f32 %v5945_v33, %v5945_v33 }
  0xe3   : > { %v5954_v47 = vsub.f32 %v5776_v40, %v1018_v42  ;;  %v5957_v37 = vsub.f32 %v5779_v41, %v1019_v20  ;;  %v1064_v50 = vsel %vm706_vm0, %v1044_v46, 0.0  ;;  %v1067_v8 = vsel %vm706_vm0, %v1045_v36, 0.0 }
  0xe4   : > { %1062 = vadd.xlane.f32.xlu1 %v1061_v39  ;;  %1065 = vadd.xlane.f32.xlu0 %v1064_v50  ;;  %v994_v51 = vpop.xlane.xlu0 %993  ;;  %v997_v54 = vpop.xlane.xlu1 %996 }
  0xe5   : > { %v1020_v24 = vmul.f32 0.03125, %v994_v51  ;;  %v1021_v62 = vmul.f32 0.03125, %v997_v54  ;;  %v1050_v40 = vmul.f32 %v5954_v47, %v5954_v47  ;;  %v1051_v41 = vmul.f32 %v5957_v37, %v5957_v37 }
  0xe7   : > { %v5969_v63 = vsub.f32 %v5786_v44, %v1020_v24  ;;  %v5972_v3 = vsub.f32 %v5789_v45, %v1021_v62  ;;  %v1082_v4 = vsel %vm706_vm0, %v1050_v40, 0.0  ;;  %v1085_v14 = vsel %vm706_vm0, %v1051_v41, 0.0 }
  0xe8   : > { %1068 = vadd.xlane.f32.xlu1 %v1067_v8  ;;  %1083 = vadd.xlane.f32.xlu0 %v1082_v4  ;;  %v976_v6 = vpop.xlane.xlu0 %975  ;;  %v979_v12 = vpop.xlane.xlu1 %978 }
  0xe9   : > { %v1014_v18 = vmul.f32 0.03125, %v976_v6  ;;  %v1015_v19 = vmul.f32 0.03125, %v979_v12  ;;  %v1052_v44 = vmul.f32 %v5969_v63, %v5969_v63  ;;  %v1053_v45 = vmul.f32 %v5972_v3, %v5972_v3 }
  0xeb   : > { %v5984_v22 = vsub.f32 %v5796_v48, %v1014_v18  ;;  %v5987_v23 = vsub.f32 %v5799_v49, %v1015_v19  ;;  %v1088_v0 = vsel %vm706_vm0, %v1052_v44, 0.0  ;;  %v1091_v32 = vsel %vm706_vm0, %v1053_v45, 0.0  ;;  %v6044_v45 = vld [vmem:[%s7681_s9 + $0x8] sm:$0xff]  }
  0xec   : > { %1086 = vadd.xlane.f32.xlu1 %v1085_v14  ;;  %1089 = vadd.xlane.f32.xlu0 %v1088_v0  ;;  %v982_v15 = vpop.xlane.xlu0 %981  ;;  %v985_v30 = vpop.xlane.xlu1 %984 }
  0xed   : > { %v1016_v34 = vmul.f32 0.03125, %v982_v15  ;;  %v1017_v35 = vmul.f32 0.03125, %v985_v30  ;;  %v1046_v38 = vmul.f32 %v5984_v22, %v5984_v22  ;;  %v1047_v48 = vmul.f32 %v5987_v23, %v5987_v23 }
  0xef   : > { %v5996_v49 = vsub.f32 %v5806_v52, %v1016_v34  ;;  %v5999_v39 = vsub.f32 %v5809_v53, %v1017_v35  ;;  %v1070_v42 = vsel %vm706_vm0, %v1046_v38, 0.0  ;;  %v1073_v36 = vsel %vm706_vm0, %v1047_v48, 0.0 }
  0xf0   : > { %1092 = vadd.xlane.f32.xlu1 %v1091_v32  ;;  %1071 = vadd.xlane.f32.xlu0 %v1070_v42  ;;  %v1000_v20 = vpop.xlane.xlu0 %999  ;;  %v1003_v46 = vpop.xlane.xlu1 %1002 }
  0xf1   : > { %v1022_v50 = vmul.f32 0.03125, %v1000_v20  ;;  %v1023_v51 = vmul.f32 0.03125, %v1003_v46  ;;  %v1048_v54 = vmul.f32 %v5996_v49, %v5996_v49  ;;  %v1049_v52 = vmul.f32 %v5999_v39, %v5999_v39 }
  0xf3   : > { %v6008_v8 = vsub.f32 %v5816_v56, %v1022_v50  ;;  %v6011_v53 = vsub.f32 %v5819_v57, %v1023_v51  ;;  %v1076_v58 = vsel %vm706_vm0, %v1048_v54, 0.0  ;;  %v1079_v40 = vsel %vm706_vm0, %v1049_v52, 0.0 }
  0xf4   : > { %1074 = vadd.xlane.f32.xlu1 %v1073_v36  ;;  %1077 = vadd.xlane.f32.xlu0 %v1076_v58  ;;  %v1006_v24 = vpop.xlane.xlu0 %1005  ;;  %v1009_v62 = vpop.xlane.xlu1 %1008 }
  0xf5   : > { %v1024_v41 = vmul.f32 0.03125, %v1006_v24  ;;  %v1025_v4 = vmul.f32 0.03125, %v1009_v62  ;;  %v1054_v6 = vmul.f32 %v6008_v8, %v6008_v8  ;;  %v1055_v56 = vmul.f32 %v6011_v53, %v6011_v53 }
  0xf7   : > { %v6020_v12 = vsub.f32 %v5826_v60, %v1024_v41  ;;  %v6023_v57 = vsub.f32 %v5829_v61, %v1025_v4  ;;  %v1094_v14 = vsel %vm706_vm0, %v1054_v6, 0.0  ;;  %v1097_v28 = vsel %vm706_vm0, %v1055_v56, 0.0  ;;  %v6036_v61 = vld [vmem:[%s7681_s9] sm:$0xff]  }
  0xf8   : > { %1080 = vadd.xlane.f32.xlu1 %v1079_v40  ;;  %1095 = vadd.xlane.f32.xlu0 %v1094_v14 }
  0xf9   : > { %v1056_v18 = vmul.f32 %v6020_v12, %v6020_v12  ;;  %v1057_v19 = vmul.f32 %v6023_v57, %v6023_v57  ;;  %4747 = vmatprep.subr.bf16.mxu0 %v6036_v61  ;;  %5015 = vmatprep.subr.bf16.mxu1 %v6036_v61 }
  0xfa   : > { %5017 = vmatpush3.bf16.msra.mxu1 %v6036_v61 }
  0xfb   : > { %v1100_v44 = vsel %vm706_vm0, %v1056_v18, 0.0  ;;  %v1103_v60 = vsel %vm706_vm0, %v1057_v19, 0.0  ;;  %5016 = vmatprep.subr.bf16.mxu1 %v6044_v45  ;;  %v6052_v19 = vld [vmem:[%s7748_s27] ss:$0 sm:$0xff] }
  0xfc   : > { %1098 = vadd.xlane.f32.xlu1 %v1097_v28  ;;  %1101 = vadd.xlane.f32.xlu0 %v1100_v44 }
  0xfe   : > { %5018 = vmatpush3.bf16.msra.mxu1 %v6044_v45 }
 0x100   : > { %1104 = vadd.xlane.f32.xlu1 %v1103_v60 }
 0x14d   : > { %v806_v0 = vpop.xlane.xlu0 %805 }
 0x14e   : > { %v852_v15 = vmul.f32 0.03125, %v806_v0 }
 0x150   : > { %v868_v30 = vadd.f32 1e-05, %v852_v15 }
 0x151   : > { %v809_v32 = vpop.xlane.xlu1 %808  ;;  %v812_v34 = vpop.xlane.xlu0 %811 }
 0x152   : > { %5142 = vrsqrt.f32 %v868_v30  ;;  %v853_v35 = vmul.f32 0.03125, %v809_v32  ;;  %v854_v38 = vmul.f32 0.03125, %v812_v34 }
 0x154   : > { %v869_v48 = vadd.f32 1e-05, %v853_v35  ;;  %v870_v42 = vadd.f32 1e-05, %v854_v38 }
 0x155   : > { %v815_v20 = vpop.xlane.xlu1 %814  ;;  %v818_v46 = vpop.xlane.xlu0 %817 }
 0x156   : > { %5144 = vrsqrt.f32 %v869_v48  ;;  %v855_v36 = vmul.f32 0.03125, %v815_v20  ;;  %v856_v50 = vmul.f32 0.03125, %v818_v46  ;;  %v6059_v48 = vld [vmem:[%s7749_s26] ss:$0 sm:$0xff] }
 0x157   : > { %5146 = vrsqrt.f32 %v870_v42 }
 0x158   : > { %v871_v51 = vadd.f32 1e-05, %v855_v36  ;;  %v872_v54 = vadd.f32 1e-05, %v856_v50 }
 0x159   : > { %v821_v52 = vpop.xlane.xlu1 %820  ;;  %v824_v58 = vpop.xlane.xlu0 %823 }
 0x15a   : > { %5148 = vrsqrt.f32 %v871_v51  ;;  %v857_v24 = vmul.f32 0.03125, %v821_v52  ;;  %v858_v62 = vmul.f32 0.03125, %v824_v58 }
 0x15b   : > { %5150 = vrsqrt.f32 %v872_v54 }
 0x15c   : > { %v5143_v40 = vpop.eup %5142  ;;  %v873_v41 = vadd.f32 1e-05, %v857_v24  ;;  %v874_v4 = vadd.f32 1e-05, %v858_v62 }
 0x15d   : > { %v827_v6 = vpop.xlane.xlu1 %826  ;;  %v830_v56 = vpop.xlane.xlu0 %829  ;;  %v900_v14 = vmul.f32 %v5143_v40, %v5836_v10 }
 0x15e   : > { %5152 = vrsqrt.f32 %v873_v41  ;;  %v859_v28 = vmul.f32 0.03125, %v827_v6  ;;  %v860_v18 = vmul.f32 0.03125, %v830_v56 }
 0x15f   : > { %5154 = vrsqrt.f32 %v874_v4  ;;  %v922_v35 = vmul.f32 %v6052_v19, %v900_v14 }
 0x160   : > { %v5145_v44 = vpop.eup %5144  ;;  %v875_v60 = vadd.f32 1e-05, %v859_v28  ;;  %v876_v0 = vadd.f32 1e-05, %v860_v18 }
 0x161   : > { %v5147_v15 = vpop.eup %5146  ;;  %v833_v30 = vpop.xlane.xlu1 %832  ;;  %v901_v34 = vmul.f32 %v5145_v44, %v5846_v26  ;;  %v6064_v52 = vadd.f32 %v6059_v48, %v922_v35 }
 0x162   : > { %v836_v32 = vpop.xlane.xlu0 %835  ;;  %5156 = vrsqrt.f32 %v875_v60  ;;  %v861_v10 = vmul.f32 0.03125, %v833_v30  ;;  %v902_v42 = vmul.f32 %v5147_v15, %v5839_v11 }
 0x163   : > { %v862_v38 = vmul.f32 0.03125, %v836_v32  ;;  %5158 = vrsqrt.f32 %v876_v0  ;;  %v923_v20 = vmul.f32 %v6052_v19, %v901_v34  ;;  %7750 = vst [vmem:[#allocation9_spill] sm:$0xff] %v6064_v52 }
 0x164   : > { %v5149_v46 = vpop.eup %5148  ;;  %v877_v36 = vadd.f32 1e-05, %v861_v10  ;;  %v924_v62 = vmul.f32 %v6052_v19, %v902_v42 }
 0x165   : > { %v878_v50 = vadd.f32 1e-05, %v862_v38  ;;  %v5151_v51 = vpop.eup %5150  ;;  %v839_v26 = vpop.xlane.xlu1 %838  ;;  %v6067_v58 = vadd.f32 %v6059_v48, %v923_v20  ;;  %v903_v24 = vmul.f32 %v5149_v46, %v5849_v27 }
 0x166   : > { %v842_v54 = vpop.xlane.xlu0 %841  ;;  %5160 = vrsqrt.f32 %v877_v36  ;;  %v863_v11 = vmul.f32 0.03125, %v839_v26  ;;  %v904_v6 = vmul.f32 %v5151_v51, %v5858_v2  ;;  %v6077_v60 = vadd.f32 %v6059_v48, %v924_v62 }
 0x167   : > { %7751 = vst [vmem:[#allocation10_spill] sm:$0xff] %v6067_v58  ;;  %v864_v40 = vmul.f32 0.03125, %v842_v54  ;;  %5162 = vrsqrt.f32 %v878_v50  ;;  %v1214_v41 = vpack.c.bf16 %v6067_v58, %v6064_v52  ;;  %v925_v4 = vmul.f32 %v6052_v19, %v903_v24 }
 0x168   : > { %v5153_v56 = vpop.eup %5152  ;;  %v879_v14 = vadd.f32 1e-05, %v863_v11  ;;  %7752 = vst [vmem:[#allocation11_spill] sm:$0xff] %v6077_v60  ;;  %v926_v30 = vmul.f32 %v6052_v19, %v904_v6 }
 0x169   : > { %v880_v28 = vadd.f32 1e-05, %v864_v40  ;;  %v5155_v18 = vpop.eup %5154  ;;  %v845_v44 = vpop.xlane.xlu1 %844  ;;  %4731 = vmatprep.mubr.msk.bf16.mxu0 %vm706_vm0, %v1214_v41  ;;  %v6080_v0 = vadd.f32 %v6059_v48, %v925_v4  ;;  %v905_v15 = vmul.f32 %v5153_v56, %v5861_v5 }
 0x16a   : > { %v848_v27 = vpop.xlane.xlu0 %847  ;;  %5164 = vrsqrt.f32 %v879_v14  ;;  %v865_v2 = vmul.f32 0.03125, %v845_v44  ;;  %v906_v34 = vmul.f32 %v5155_v18, %v5870_v55  ;;  %v6090_v50 = vadd.f32 %v6059_v48, %v926_v30 }
 0x16b   : > { %7753 = vst [vmem:[#allocation12_spill] sm:$0xff] %v6080_v0  ;;  %v866_v32 = vmul.f32 0.03125, %v848_v27  ;;  %5166 = vrsqrt.f32 %v880_v28  ;;  %v1215_v35 = vpack.c.bf16 %v6080_v0, %v6077_v60  ;;  %v927_v10 = vmul.f32 %v6052_v19, %v905_v15 }
 0x16c   : > { %v5157_v38 = vpop.eup %5156  ;;  %v881_v42 = vadd.f32 1e-05, %v865_v2  ;;  %7754 = vst [vmem:[#allocation13_spill] sm:$0xff] %v6090_v50  ;;  %v928_v26 = vmul.f32 %v6052_v19, %v906_v34 }
 0x16d   : > { %v882_v20 = vadd.f32 1e-05, %v866_v32  ;;  %v5159_v46 = vpop.eup %5158  ;;  %v851_v36 = vpop.xlane.xlu1 %850  ;;  %4732 = vmatmul.mubr.msk.bf16.vlgmr.msra.gmra.mrb[0].mxu0 %vm706_vm0, %v1215_v35  ;;  %v6093_v51 = vadd.f32 %v6059_v48, %v927_v10  ;;  %v907_v55 = vmul.f32 %v5157_v38, %v5873_v9 }
 0x16e   : > { %v1060_v5 = vpop.xlane.xlu0 %1059  ;;  %5168 = vrsqrt.f32 %v881_v42  ;;  %v867_v54 = vmul.f32 0.03125, %v851_v36  ;;  %4748 = vmatpush3.bf16.msra.mxu0 %v6036_v61  ;;  %v908_v40 = vmul.f32 %v5159_v46, %v5882_v7  ;;  %v6105_v61 = vadd.f32 %v6059_v48, %v928_v26 }
 0x16f   : > { %7755 = vst [vmem:[#allocation14_spill] sm:$0xff] %v6093_v51  ;;  %v1106_v24 = vmul.f32 0.03125, %v1060_v5  ;;  %5170 = vrsqrt.f32 %v882_v20  ;;  %v1216_v62 = vpack.c.bf16 %v6093_v51, %v6090_v50  ;;  %v929_v11 = vmul.f32 %v6052_v19, %v907_v55  ;;  %4749 = vmatprep.subr.bf16.mxu0 %v6044_v45 }
 0x170   : > { %v5161_v41 = vpop.eup %5160  ;;  %v883_v4 = vadd.f32 1e-05, %v867_v54  ;;  %7756 = vst [vmem:[#allocation15_spill] sm:$0xff] %v6105_v61  ;;  %v930_v7 = vmul.f32 %v6052_v19, %v908_v40 }
 0x171   : > { %v1122_v9 = vadd.f32 1e-05, %v1106_v24  ;;  %v5163_v6 = vpop.eup %5162  ;;  %v1063_v56 = vpop.xlane.xlu1 %1062  ;;  %4735 = vmatprep.mubr.msk.bf16.mxu0 %vm706_vm0, %v1216_v62  ;;  %v6108_v28 = vadd.f32 %v6059_v48, %v929_v11  ;;  %v909_v18 = vmul.f32 %v5161_v41, %v5885_v13 }
 0x172   : > { %v1066_v14 = vpop.xlane.xlu0 %1065  ;;  %5172 = vrsqrt.f32 %v883_v4  ;;  %v1107_v44 = vmul.f32 0.03125, %v1063_v56  ;;  %v910_v15 = vmul.f32 %v5163_v6, %v5894_v1  ;;  %4750 = vmatpush3.bf16.msra.mxu0 %v6044_v45  ;;  %v6119_v42 = vadd.f32 %v6059_v48, %v930_v7 }
 0x173   : > { %7757 = vst [vmem:[#allocation16_spill] sm:$0xff] %v6108_v28  ;;  %v1108_v27 = vmul.f32 0.03125, %v1066_v14  ;;  %5174 = vrsqrt.f32 %v1122_v9  ;;  %v1217_v30 = vpack.c.bf16 %v6108_v28, %v6105_v61  ;;  %v931_v2 = vmul.f32 %v6052_v19, %v909_v18 }
 0x174   : > { %v5165_v32 = vpop.eup %5164  ;;  %v1123_v34 = vadd.f32 1e-05, %v1107_v44  ;;  %7758 = vst [vmem:[#allocation17_spill] sm:$0xff] %v6119_v42  ;;  %v932_v20 = vmul.f32 %v6052_v19, %v910_v15 }
 0x175   : > { %v1124_v35 = vadd.f32 1e-05, %v1108_v27  ;;  %v5167_v10 = vpop.eup %5166  ;;  %v1069_v13 = vpop.xlane.xlu1 %1068  ;;  %4736 = vmatmul.mubr.msk.bf16.gmra.mrb[4].mxu0 %vm706_vm0, %v1217_v30  ;;  %v6122_v1 = vadd.f32 %v6059_v48, %v931_v2  ;;  %v911_v45 = vmul.f32 %v5165_v32, %v5897_v17 }
 0x176   : > { %v1084_v38 = vpop.xlane.xlu0 %1083  ;;  %5176 = vrsqrt.f32 %v1123_v34  ;;  %v1109_v46 = vmul.f32 0.03125, %v1069_v13  ;;  %v912_v26 = vmul.f32 %v5167_v10, %v5906_v43  ;;  %v6132_v41 = vadd.f32 %v6059_v48, %v932_v20  ;;  %v6155_v10 = vld [vmem:[%s7764_s5] ss:$0 sm:$0xff] }
 0x177   : > { %7759 = vst [vmem:[#allocation18_spill] sm:$0xff] %v6122_v1  ;;  %v1114_v36 = vmul.f32 0.03125, %v1084_v38  ;;  %5178 = vrsqrt.f32 %v1124_v35  ;;  %v1218_v5 = vpack.c.bf16 %v6122_v1, %v6119_v42  ;;  %v933_v55 = vmul.f32 %v6052_v19, %v911_v45 }
 0x178   : > { %v5169_v54 = vpop.eup %5168  ;;  %v1125_v24 = vadd.f32 1e-05, %v1109_v46  ;;  %7760 = vst [vmem:[#allocation19_spill] sm:$0xff] %v6132_v41  ;;  %v934_v6 = vmul.f32 %v6052_v19, %v912_v26 }
 0x179   : > { %v1130_v62 = vadd.f32 1e-05, %v1114_v36  ;;  %v5171_v11 = vpop.eup %5170  ;;  %v1087_v40 = vpop.xlane.xlu1 %1086  ;;  %4739 = vmatprep.mubr.msk.bf16.mxu0 %vm706_vm0, %v1218_v5  ;;  %v6135_v4 = vadd.f32 %v6059_v48, %v933_v55  ;;  %v913_v9 = vmul.f32 %v5169_v54, %v5909_v21 }
 0x17a   : > { %v1090_v17 = vpop.xlane.xlu0 %1089  ;;  %5180 = vrsqrt.f32 %v1125_v24  ;;  %v1115_v43 = vmul.f32 0.03125, %v1087_v40  ;;  %v914_v14 = vmul.f32 %v5171_v11, %v5918_v59  ;;  %v6145_v32 = vadd.f32 %v6059_v48, %v934_v6 }
 0x17b   : > { %7761 = vst [vmem:[#allocation20_spill] sm:$0xff] %v6135_v4  ;;  %v1116_v56 = vmul.f32 0.03125, %v1090_v17  ;;  %5182 = vrsqrt.f32 %v1130_v62  ;;  %v1219_v18 = vpack.c.bf16 %v6135_v4, %v6132_v41  ;;  %v935_v7 = vmul.f32 %v6052_v19, %v913_v9 }
 0x17c   : > { %v5173_v44 = vpop.eup %5172  ;;  %v1131_v27 = vadd.f32 1e-05, %v1115_v43  ;;  %7762 = vst [vmem:[#allocation21_spill] sm:$0xff] %v6145_v32  ;;  %v936_v35 = vmul.f32 %v6052_v19, %v914_v14 }
 0x17d   : > { %v1132_v15 = vadd.f32 1e-05, %v1116_v56  ;;  %v5175_v30 = vpop.eup %5174  ;;  %v1093_v2 = vpop.xlane.xlu1 %1092  ;;  %4740 = vmatmul.mubr.msk.bf16.gmra.mrb[8].mxu0 %vm706_vm0, %v1219_v18  ;;  %v6148_v34 = vadd.f32 %v6059_v48, %v935_v7  ;;  %v915_v59 = vmul.f32 %v5173_v44, %v5921_v25 }
 0x17e   : > { %v1072_v21 = vpop.xlane.xlu0 %1071  ;;  %5184 = vrsqrt.f32 %v1131_v27  ;;  %v1117_v13 = vmul.f32 0.03125, %v1093_v2  ;;  %v1154_v46 = vmul.f32 %v5175_v30, %v5930_v16  ;;  %v6163_v24 = vadd.f32 %v6059_v48, %v936_v35  ;;  %v6173_v16 = vld [vmem:[%s7767_s6] ss:$0 sm:$0xff] }
 0x17f   : > { %7763 = vst [vmem:[#allocation22_spill] sm:$0xff] %v6148_v34  ;;  %v1110_v38 = vmul.f32 0.03125, %v1072_v21  ;;  %5186 = vrsqrt.f32 %v1132_v15  ;;  %v1220_v45 = vpack.c.bf16 %v6148_v34, %v6145_v32  ;;  %v937_v20 = vmul.f32 %v6052_v19, %v915_v59 }
 0x180   : > { %v5177_v36 = vpop.eup %5176  ;;  %v1133_v25 = vadd.f32 1e-05, %v1117_v13  ;;  %7765 = vst [vmem:[#allocation23_spill] sm:$0xff] %v6163_v24  ;;  %v1176_v19 = vmul.f32 %v6155_v10, %v1154_v46 }
 0x181   : > { %v1126_v5 = vadd.f32 1e-05, %v1110_v38  ;;  %v5179_v55 = vpop.eup %5178  ;;  %v1075_v26 = vpop.xlane.xlu1 %1074  ;;  %4743 = vmatprep.mubr.msk.bf16.mxu0 %vm706_vm0, %v1220_v45  ;;  %v6166_v62 = vadd.f32 %v6059_v48, %v937_v20  ;;  %v1155_v11 = vmul.f32 %v5177_v36, %v5933_v29 }
 0x182   : > { %v1078_v54 = vpop.xlane.xlu0 %1077  ;;  %v1156_v40 = vmul.f32 %v5179_v55, %v5942_v31  ;;  %5188 = vrsqrt.f32 %v1133_v25  ;;  %v1111_v17 = vmul.f32 0.03125, %v1075_v26  ;;  %v6183_v27 = vadd.f32 %v6173_v16, %v1176_v19 }
 0x183   : > { %7766 = vst [vmem:[#allocation24_spill] sm:$0xff] %v6166_v62  ;;  %v1112_v9 = vmul.f32 0.03125, %v1078_v54  ;;  %5190 = vrsqrt.f32 %v1126_v5  ;;  %v1221_v6 = vpack.c.bf16 %v6166_v62, %v6163_v24  ;;  %v1177_v48 = vmul.f32 %v6155_v10, %v1155_v11 }
 0x184   : > { %v5181_v43 = vpop.eup %5180  ;;  %v1127_v29 = vadd.f32 1e-05, %v1111_v17  ;;  %v1178_v18 = vmul.f32 %v6155_v10, %v1156_v40  ;;  %7768 = vst [vmem:[#allocation25_spill] sm:$0xff] %v6183_v27 }
 0x185   : > { %v1128_v56 = vadd.f32 1e-05, %v1112_v9  ;;  %v5183_v14 = vpop.eup %5182  ;;  %v1157_v7 = vmul.f32 %v5181_v43, %v5945_v33  ;;  %v1081_v44 = vpop.xlane.xlu1 %1080  ;;  %4744 = vmatmul.mubr.msk.bf16.gmra.mrb[12].mxu0 %vm706_vm0, %v1221_v6  ;;  %v6186_v15 = vadd.f32 %v6173_v16, %v1177_v48 }
 0x186   : > { %v1096_v31 = vpop.xlane.xlu0 %1095  ;;  %5192 = vrsqrt.f32 %v1127_v29  ;;  %v1113_v30 = vmul.f32 0.03125, %v1081_v44  ;;  %v1162_v33 = vmul.f32 %v5183_v14, %v5954_v47  ;;  %v6193_v20 = vadd.f32 %v6173_v16, %v1178_v18 }
 0x187   : > { %7769 = vst [vmem:[#allocation26_spill] sm:$0xff] %v6186_v15  ;;  %v1118_v2 = vmul.f32 0.03125, %v1096_v31  ;;  %v1179_v21 = vmul.f32 %v6155_v10, %v1157_v7  ;;  %5194 = vrsqrt.f32 %v1128_v56  ;;  %v1366_v59 = vpack.c.bf16 %v6186_v15, %v6183_v27 }
 0x188   : > { %v5185_v35 = vpop.eup %5184  ;;  %v1129_v13 = vadd.f32 1e-05, %v1113_v30  ;;  %7770 = vst [vmem:[#allocation27_spill] sm:$0xff] %v6193_v20  ;;  %v1184_v55 = vmul.f32 %v6155_v10, %v1162_v33 }
 0x189   : > { %v1134_v38 = vadd.f32 1e-05, %v1118_v2  ;;  %v5187_v45 = vpop.eup %5186  ;;  %v6196_v46 = vadd.f32 %v6173_v16, %v1179_v21  ;;  %v1099_v36 = vpop.xlane.xlu1 %1098  ;;  %4751 = vmatprep.mubr.msk.bf16.mxu0 %vm706_vm0, %v1366_v59  ;;  %v1163_v5 = vmul.f32 %v5185_v35, %v5957_v37 }
 0x18a   : > { %v1102_v25 = vpop.xlane.xlu0 %1101  ;;  %5196 = vrsqrt.f32 %v1129_v13  ;;  %v1119_v47 = vmul.f32 0.03125, %v1099_v36  ;;  %v1164_v54 = vmul.f32 %v5187_v45, %v5969_v63  ;;  %v6207_v37 = vadd.f32 %v6173_v16, %v1184_v55 }
 0x18b   : > { %7771 = vst [vmem:[#allocation28_spill] sm:$0xff] %v6196_v46  ;;  %v1120_v26 = vmul.f32 0.03125, %v1102_v25  ;;  %5198 = vrsqrt.f32 %v1134_v38  ;;  %v1367_v11 = vpack.c.bf16 %v6196_v46, %v6193_v20  ;;  %v1185_v19 = vmul.f32 %v6155_v10, %v1163_v5 }
 0x18c   : > { %v5189_v40 = vpop.eup %5188  ;;  %v1135_v17 = vadd.f32 1e-05, %v1119_v47  ;;  %7772 = vst [vmem:[#allocation29_spill] sm:$0xff] %v6207_v37  ;;  %v1186_v29 = vmul.f32 %v6155_v10, %v1164_v54 }
 0x18d   : > { %v1136_v9 = vadd.f32 1e-05, %v1120_v26  ;;  %v5191_v6 = vpop.eup %5190  ;;  %v1105_v48 = vpop.xlane.xlu1 %1104  ;;  %4752 = vmatmul.mubr.msk.bf16.vlgmr.msra.gmra.mrb[16].mxu0 %vm706_vm0, %v1367_v11  ;;  %v6210_v43 = vadd.f32 %v6173_v16, %v1185_v19  ;;  %v1165_v63 = vmul.f32 %v5189_v40, %v5972_v3 }
 0x18e   : > { %5200 = vrsqrt.f32 %v1135_v17  ;;  %v1121_v56 = vmul.f32 0.03125, %v1105_v48  ;;  %v1158_v14 = vmul.f32 %v5191_v6, %v5984_v22  ;;  %v6220_v2 = vadd.f32 %v6173_v16, %v1186_v29 }
 0x18f   : > { %7773 = vst [vmem:[#allocation30_spill] sm:$0xff] %v6210_v43  ;;  %5202 = vrsqrt.f32 %v1136_v9  ;;  %v1370_v18 = vpack.c.bf16 %v6210_v43, %v6207_v37  ;;  %v1187_v7 = vmul.f32 %v6155_v10, %v1165_v63 }
 0x190   : > { %v5193_v44 = vpop.eup %5192  ;;  %v1137_v31 = vadd.f32 1e-05, %v1121_v56  ;;  %7774 = vst [vmem:[#allocation31_spill] sm:$0xff] %v6220_v2  ;;  %v1180_v22 = vmul.f32 %v6155_v10, %v1158_v14 }
 0x191   : > { %v5195_v30 = vpop.eup %5194  ;;  %4759 = vmatprep.mubr.msk.bf16.mxu1 %vm706_vm0, %v1370_v18  ;;  %v6223_v3 = vadd.f32 %v6173_v16, %v1187_v7  ;;  %v1159_v21 = vmul.f32 %v5193_v44, %v5987_v23 }
 0x192   : > { %5204 = vrsqrt.f32 %v1137_v31  ;;  %v1160_v59 = vmul.f32 %v5195_v30, %v5996_v49  ;;  %v6233_v45 = vadd.f32 %v6173_v16, %v1180_v22 }
 0x193   : > { %7775 = vst [vmem:[#allocation32_spill] sm:$0xff] %v6223_v3  ;;  %v1371_v33 = vpack.c.bf16 %v6223_v3, %v6220_v2  ;;  %v1181_v35 = vmul.f32 %v6155_v10, %v1159_v21 }
 0x194   : > { %v5197_v13 = vpop.eup %5196  ;;  %7776 = vst [vmem:[#allocation33_spill] sm:$0xff] %v6233_v45  ;;  %v1182_v25 = vmul.f32 %v6155_v10, %v1160_v59 }
 0x195   : > { %v5199_v38 = vpop.eup %5198  ;;  %4760 = vmatmul.mubr.msk.bf16.vlgmr.msra.gmra.mrb[0].mxu1 %vm706_vm0, %v1371_v33  ;;  %v6236_v36 = vadd.f32 %v6173_v16, %v1181_v35  ;;  %v1161_v23 = vmul.f32 %v5197_v13, %v5999_v39 }
 0x196   : > { %v1166_v49 = vmul.f32 %v5199_v38, %v6008_v8  ;;  %v6246_v54 = vadd.f32 %v6173_v16, %v1182_v25 }
 0x197   : > { %7777 = vst [vmem:[#allocation34_spill] sm:$0xff] %v6236_v36  ;;  %v1368_v5 = vpack.c.bf16 %v6236_v36, %v6233_v45  ;;  %v1183_v55 = vmul.f32 %v6155_v10, %v1161_v23 }
 0x198   : > { %v5201_v47 = vpop.eup %5200  ;;  %7778 = vst [vmem:[#allocation35_spill] sm:$0xff] %v6246_v54  ;;  %v1188_v19 = vmul.f32 %v6155_v10, %v1166_v49 }
 0x199   : > { %v5203_v26 = vpop.eup %5202  ;;  %4755 = vmatprep.mubr.msk.bf16.mxu0 %vm706_vm0, %v1368_v5  ;;  %v6249_v11 = vadd.f32 %v6173_v16, %v1183_v55  ;;  %v1167_v39 = vmul.f32 %v5201_v47, %v6011_v53 }
 0x19a   : > { %v1168_v8 = vmul.f32 %v5203_v26, %v6020_v12  ;;  %v6259_v6 = vadd.f32 %v6173_v16, %v1188_v19  ;;  %v6296_v26 = vld [vmem:[%s7784_s8] ss:$0 sm:$0xff] }
 0x19b   : > { %7779 = vst [vmem:[#allocation36_spill] sm:$0xff] %v6249_v11  ;;  %v1369_v40 = vpack.c.bf16 %v6249_v11, %v6246_v54  ;;  %v1189_v17 = vmul.f32 %v6155_v10, %v1167_v39  ;;  %v6301_v39 = vld [vmem:[%s7682_s10] ss:$0 sm:$0xff] }
 0x19c   : > { %v5205_v9 = vpop.eup %5204  ;;  %7780 = vst [vmem:[#allocation37_spill] sm:$0xff] %v6259_v6  ;;  %v1190_v63 = vmul.f32 %v6155_v10, %v1168_v8 }
 0x19d   : > { %4756 = vmatmul.mubr.msk.bf16.gmra.mrb[20].mxu0 %vm706_vm0, %v1369_v40  ;;  %v6262_v48 = vadd.f32 %v6173_v16, %v1189_v17  ;;  %v1169_v53 = vmul.f32 %v5205_v9, %v6023_v57 }
 0x19e   : > { %v6271_v56 = vadd.f32 %v6173_v16, %v1190_v63 }
 0x19f   : > { %7781 = vst [vmem:[#allocation38_spill] sm:$0xff] %v6262_v48  ;;  %v1372_v12 = vpack.c.bf16 %v6262_v48, %v6259_v6  ;;  %v1191_v29 = vmul.f32 %v6155_v10, %v1169_v53 }
 0x1a0   : > { %7782 = vst [vmem:[#allocation39_spill] sm:$0xff] %v6271_v56 }
 0x1a1   : > { %4763 = vmatprep.mubr.msk.bf16.mxu1 %vm706_vm0, %v1372_v12  ;;  %v6274_v14 = vadd.f32 %v6173_v16, %v1191_v29 }
 0x1a3   : > { %7783 = vst [vmem:[#allocation40_spill] sm:$0xff] %v6274_v14  ;;  %v1373_v18 = vpack.c.bf16 %v6274_v14, %v6271_v56 }
 0x1a5   : > { %4764 = vmatmul.mubr.msk.bf16.gmra.mrb[4].mxu1 %vm706_vm0, %v1373_v18 }
 0x240   : > { %v4733_v57 = vpop.f32.mrb[0].mxu0 }
 0x241   : > { %v1303_v7 = vpop.f32.mrb[1].mxu0 }
 0x242   : > { %v4734_v44 = vpop.f32.mrb[2].mxu0  ;;  %v6369_v2 = vadd.f32 %v6296_v26, %v1303_v7 }
 0x243   : > { %v1306_v31 = vpop.f32.mrb[3].mxu0  ;;  %v6357_v6 = vadd.f32 %v4734_v44, %v6296_v26 }
 0x244   : > { %v6381_v43 = vadd.f32 %v6296_v26, %v1306_v31 }
 0x248   : > { %v6279_v30 = vpop.f32.mrb[4].mxu0 }
 0x249   : > { %v6281_v10 = vpop.f32.mrb[5].mxu0 }
 0x24a   : > { %v6283_v21 = vpop.f32.mrb[6].mxu0  ;;  %v6408_v15 = vadd.f32 %v6296_v26, %v6281_v10 }
 0x24b   : > { %v6285_v22 = vpop.f32.mrb[7].mxu0  ;;  %v6458_v34 = vadd.f32 %v6283_v21, %v6296_v26 }
 0x24c   : > { %v6428_v10 = vadd.f32 %v6296_v26, %v6285_v22 }
 0x250   : > { %v4741_v59 = vpop.f32.mrb[8].mxu0 }
 0x251   : > { %v1335_v16 = vpop.f32.mrb[9].mxu0  ;;  %v6304_v8 = vadd.f32 %v4741_v59, %v6296_v26 }
 0x252   : > { %v4742_v33 = vpop.f32.mrb[10].mxu0  ;;  %v6313_v63 = vadd.f32 %v6296_v26, %v1335_v16 }
 0x253   : > { %v1338_v35 = vpop.f32.mrb[11].mxu0  ;;  %v6316_v12 = vadd.f32 %v4742_v33, %v6296_v26 }
 0x258   : > { %v6287_v13 = vpop.f32.mrb[12].mxu0 }
 0x259   : > { %v1351_v38 = vpop.f32.mrb[13].mxu0  ;;  %v6471_v32 = vadd.f32 %v6287_v13, %v6296_v26 }
 0x25a   : > { %v6289_v23 = vpop.f32.mrb[14].mxu0  ;;  %v6398_v45 = vadd.f32 %v6296_v26, %v1351_v38 }
 0x25b   : > { %v6291_v25 = vpop.f32.mrb[15].mxu0  ;;  %v6484_v4 = vadd.f32 %v6289_v23, %v6296_v26 }
 0x25c   : > { %v6414_v38 = vadd.f32 %v6296_v26, %v6291_v25 }
 0x260   : > { %v4753_v49 = vpop.f32.mrb[16].mxu0 }
 0x261   : > { %v1455_v5 = vpop.f32.mrb[17].mxu0  ;;  %v6332_v16 = vadd.f32 %v4753_v49, %v6301_v39 }
 0x262   : > { %v4754_v55 = vpop.f32.mrb[18].mxu0 }
 0x263   : > { %v1458_v47 = vpop.f32.mrb[19].mxu0 }
 0x268   : > { %v4761_v19 = vpop.f32.mrb[0].mxu1 }
 0x269   : > { %v6307_v40 = vadd.f32 %v4761_v19, %v6301_v39  ;;  %v1487_v17 = vpop.f32.mrb[1].mxu1  ;;  %v6326_v19 = vadd.f32 %v6296_v26, %v1338_v35  ;;  %v6345_v35 = vadd.f32 %v4733_v57, %v6296_v26 }
 0x26a   : > { %v6310_v9 = vadd.f32 %v6301_v39, %v1487_v17  ;;  %v4762_v53 = vpop.f32.mrb[2].mxu1 }
 0x26b   : > { %v6319_v29 = vadd.f32 %v4762_v53, %v6301_v39  ;;  %v1490_v18 = vpop.f32.mrb[3].mxu1  ;;  %v6323_v59 = vadd.f32 %v6307_v40, %v6304_v8  ;;  %v6366_v3 = vadd.f32 %v6332_v16, %v6345_v35 }
 0x26c   : > { %v6329_v17 = vadd.f32 %v6301_v39, %v1490_v18  ;;  %v6342_v14 = vadd.f32 %v6310_v9, %v6313_v63  ;;  %v6348_v18 = vadd.f32 %v4754_v55, %v6301_v39 }
 0x26d   : > { %v1565_v33 = vsel %vm1534_vm1, %v6323_v59, -inf  ;;  %v6338_v53 = vadd.f32 %v6319_v29, %v6316_v12 }
 0x26e   : > { %1566 = vmax.xlane.f32.xlu0 %v1565_v33  ;;  %v6354_v56 = vadd.f32 %v6329_v17, %v6326_v19  ;;  %v6360_v33 = vadd.f32 %v6301_v39, %v1455_v5  ;;  %v1559_v55 = vsel %vm1534_vm1, %v6342_v14, -inf  ;;  %v6378_v54 = vadd.f32 %v6348_v18, %v6357_v6 }
 0x26f   : > { %v1568_v49 = vsel %vm1534_vm1, %v6338_v53, -inf }
 0x270   : > { %1569 = vmax.xlane.f32.xlu1 %v1568_v49  ;;  %v4757_v48 = vpop.f32.mrb[20].mxu0  ;;  %v6372_v49 = vadd.f32 %v6301_v39, %v1458_v47  ;;  %v1562_v5 = vsel %vm1534_vm1, %v6354_v56, -inf  ;;  %v6387_v7 = vadd.f32 %v6360_v33, %v6369_v2  ;;  %v1544_v47 = vsel %vm1534_vm1, %v6378_v54, -inf }
 0x271   : > { %v1471_v57 = vpop.f32.mrb[21].mxu0  ;;  %v6431_v62 = vadd.f32 %v4757_v48, %v6301_v39 }
 0x272   : > { %1560 = vmax.xlane.f32.xlu0 %v1559_v55  ;;  %v4758_v11 = vpop.f32.mrb[22].mxu0  ;;  %v1541_v55 = vsel %vm1534_vm1, %v6366_v3, -inf  ;;  %v6393_v36 = vadd.f32 %v6372_v49, %v6381_v43  ;;  %v1535_v31 = vsel %vm1534_vm1, %v6387_v7, -inf  ;;  %v6401_v46 = vadd.f32 %v6301_v39, %v1471_v57 }
 0x273   : > { %v1474_v44 = vpop.f32.mrb[23].mxu0  ;;  %v6448_v22 = vadd.f32 %v4758_v11, %v6301_v39 }
 0x274   : > { %1563 = vmax.xlane.f32.xlu1 %v1562_v5  ;;  %v1538_v27 = vsel %vm1534_vm1, %v6393_v36, -inf  ;;  %v6417_v57 = vadd.f32 %v6301_v39, %v1474_v44 }
 0x276   : > { %1542 = vmax.xlane.f32.xlu0 %v1541_v55  ;;  %v6454_v24 = vadd.f32 %v6417_v57, %v6428_v10 }
 0x278   : > { %1545 = vmax.xlane.f32.xlu1 %v1544_v47  ;;  %v4765_v5 = vpop.f32.mrb[4].mxu1  ;;  %v1550_v21 = vsel %vm1534_vm1, %v6454_v24, -inf }
 0x279   : > { %v1503_v37 = vpop.f32.mrb[5].mxu1 }
 0x27a   : > { %v6404_v55 = vadd.f32 %v6301_v39, %v1503_v37  ;;  %1536 = vmax.xlane.f32.xlu0 %v1535_v31  ;;  %v4766_v20 = vpop.f32.mrb[6].mxu1 }
 0x27b   : > { %v1506_v47 = vpop.f32.mrb[7].mxu1 }
 0x27c   : > { %v6420_v37 = vadd.f32 %v6301_v39, %v1506_v47  ;;  %1539 = vmax.xlane.f32.xlu1 %v1538_v27  ;;  %v6424_v31 = vadd.f32 %v6404_v55, %v6398_v45  ;;  %v6441_v27 = vadd.f32 %v6401_v46, %v6408_v15  ;;  %v6445_v47 = vadd.f32 %v6279_v30, %v6296_v26 }
 0x27e   : > { %v1571_v25 = vsel %vm1534_vm1, %v6424_v31, -inf  ;;  %v6437_v44 = vadd.f32 %v6420_v37, %v6414_v38  ;;  %v1547_v30 = vsel %vm1534_vm1, %v6441_v27, -inf  ;;  %v6467_v11 = vadd.f32 %v6431_v62, %v6445_v47 }
 0x27f   : > { %1572 = vmax.xlane.f32.xlu0 %v1571_v25  ;;  %v6461_v25 = vadd.f32 %v4765_v5, %v6301_v39  ;;  %v6480_v5 = vadd.f32 %v6448_v22, %v6458_v34 }
 0x280   : > { %v1574_v48 = vsel %vm1534_vm1, %v6437_v44, -inf }
 0x281   : > { %1575 = vmax.xlane.f32.xlu1 %v1574_v48  ;;  %v6474_v48 = vadd.f32 %v4766_v20, %v6301_v39  ;;  %v6490_v13 = vadd.f32 %v6461_v25, %v6471_v32  ;;  %v1556_v20 = vsel %vm1534_vm1, %v6480_v5, -inf }
 0x283   : > { %1548 = vmax.xlane.f32.xlu0 %v1547_v30  ;;  %v1553_v30 = vsel %vm1534_vm1, %v6467_v11, -inf  ;;  %v6496_v39 = vadd.f32 %v6474_v48, %v6484_v4  ;;  %v1577_v23 = vsel %vm1534_vm1, %v6490_v13, -inf }
 0x285   : > { %1551 = vmax.xlane.f32.xlu1 %v1550_v21  ;;  %v1580_v26 = vsel %vm1534_vm1, %v6496_v39, -inf }
 0x287   : > { %1554 = vmax.xlane.f32.xlu0 %v1553_v30 }
 0x289   : > { %1557 = vmax.xlane.f32.xlu1 %v1556_v20 }
 0x28b   : > { %1578 = vmax.xlane.f32.xlu0 %v1577_v23 }
 0x28d   : > { %1581 = vmax.xlane.f32.xlu1 %v1580_v26 }
 0x2fb   : > { %v1567_v21 = vpop.xlane.xlu0 %1566 }
 0x2fc   : > { %v1593_v41 = vsub.f32 %v6323_v59, %v1567_v21 }
 0x2fd   : > { %v1570_v30 = vpop.xlane.xlu1 %1569 }
 0x2fe   : > { %v1619_v1 = vmul.f32 1.442695, %v1593_v41  ;;  %v1594_v42 = vsub.f32 %v6338_v53, %v1570_v30 }
 0x2ff   : > { %v1561_v28 = vpop.xlane.xlu0 %1560 }
 0x300   : > { %5206 = vpow2.f32 %v1619_v1  ;;  %v1591_v61 = vsub.f32 %v6342_v14, %v1561_v28  ;;  %v1621_v50 = vmul.f32 1.442695, %v1594_v42 }
 0x301   : > { %v1564_v20 = vpop.xlane.xlu1 %1563 }
 0x302   : > { %v1615_v51 = vmul.f32 1.442695, %v1591_v61  ;;  %v1592_v23 = vsub.f32 %v6354_v56, %v1564_v20 }
 0x303   : > { %v1543_v0 = vpop.xlane.xlu0 %1542 }
 0x304   : > { %5208 = vpow2.f32 %v1615_v51  ;;  %v1585_v26 = vsub.f32 %v6366_v3, %v1543_v0  ;;  %v1617_v59 = vmul.f32 1.442695, %v1592_v23 }
 0x305   : > { %v1546_v60 = vpop.xlane.xlu1 %1545  ;;  %5210 = vpow2.f32 %v1621_v50 }
 0x306   : > { %v1603_v58 = vmul.f32 1.442695, %v1585_v26  ;;  %v1586_v53 = vsub.f32 %v6378_v54, %v1546_v60 }
 0x307   : > { %v1537_v41 = vpop.xlane.xlu0 %1536 }
 0x308   : > { %5212 = vpow2.f32 %v1603_v58  ;;  %v1583_v1 = vsub.f32 %v6387_v7, %v1537_v41  ;;  %v1605_v0 = vmul.f32 1.442695, %v1586_v53 }
 0x309   : > { %v1540_v28 = vpop.xlane.xlu1 %1539  ;;  %5214 = vpow2.f32 %v1617_v59 }
 0x30a   : > { %v6509_v14 = vpop.eup %5206  ;;  %v1599_v61 = vmul.f32 1.442695, %v1583_v1  ;;  %v1584_v50 = vsub.f32 %v6393_v36, %v1540_v28 }
 0x30b   : > { %1667 = vrot.lane.b32.xlu0 %v6509_v14, %s5494_s30 }
 0x30c   : > { %5216 = vpow2.f32 %v1599_v61  ;;  %v1573_v51 = vpop.xlane.xlu0 %1572  ;;  %v1601_v54 = vmul.f32 1.442695, %v1584_v50 }
 0x30d   : > { %v1595_v58 = vsub.f32 %v6424_v31, %v1573_v51  ;;  %5218 = vpow2.f32 %v1605_v0 }
 0x30e   : > { %v6515_v42 = vpop.eup %5208  ;;  %v1576_v60 = vpop.xlane.xlu1 %1575 }
 0x30f   : > { %v1623_v3 = vmul.f32 1.442695, %v1595_v58  ;;  %1663 = vrot.lane.b32.xlu1 %v6515_v42, %s5494_s30  ;;  %v1596_v56 = vsub.f32 %v6437_v44, %v1576_v60  ;;  %v6520_v21 = vpop.eup %5210 }
 0x310   : > { %v1549_v7 = vpop.xlane.xlu0 %1548 }
 0x311   : > { %5220 = vpow2.f32 %v1623_v3  ;;  %v1587_v36 = vsub.f32 %v6441_v27, %v1549_v7  ;;  %v1625_v23 = vmul.f32 1.442695, %v1596_v56 }
 0x312   : > { %v6523_v30 = vpop.eup %5212  ;;  %v1552_v31 = vpop.xlane.xlu1 %1551  ;;  %5222 = vpow2.f32 %v1601_v54 }
 0x313   : > { %v1607_v20 = vmul.f32 1.442695, %v1587_v36  ;;  %1669 = vrot.lane.b32.xlu1 %v6520_v21, %s5494_s30  ;;  %1651 = vrot.lane.b32.xlu0 %v6523_v30, %s5494_s30  ;;  %v1588_v44 = vsub.f32 %v6454_v24, %v1552_v31  ;;  %v6530_v59 = vpop.eup %5214 }
 0x314   : > { %v1555_v26 = vpop.xlane.xlu0 %1554 }
 0x315   : > { %5224 = vpow2.f32 %v1607_v20  ;;  %v1589_v27 = vsub.f32 %v6467_v11, %v1555_v26  ;;  %v1609_v28 = vmul.f32 1.442695, %v1588_v44 }
 0x316   : > { %v6533_v41 = vpop.eup %5216  ;;  %v1558_v53 = vpop.xlane.xlu1 %1557  ;;  %5226 = vpow2.f32 %v1625_v23 }
 0x317   : > { %v1611_v1 = vmul.f32 1.442695, %v1589_v27  ;;  %1665 = vrot.lane.b32.xlu1 %v6530_v59, %s5494_s30  ;;  %1647 = vrot.lane.b32.xlu0 %v6533_v41, %s5494_s30  ;;  %v1590_v24 = vsub.f32 %v6480_v5, %v1558_v53  ;;  %v6541_v50 = vpop.eup %5218 }
 0x318   : > { %v1579_v61 = vpop.xlane.xlu0 %1578 }
 0x319   : > { %5228 = vpow2.f32 %v1611_v1  ;;  %v1597_v0 = vsub.f32 %v6490_v13, %v1579_v61  ;;  %v1613_v60 = vmul.f32 1.442695, %v1590_v24 }
 0x31a   : > { %v1582_v11 = vpop.xlane.xlu1 %1581  ;;  %5230 = vpow2.f32 %v1609_v28 }
 0x31b   : > { %v6543_v51 = vpop.eup %5220  ;;  %v1627_v58 = vmul.f32 1.442695, %v1597_v0  ;;  %1653 = vrot.lane.b32.xlu1 %v6541_v50, %s5494_s30  ;;  %v1598_v3 = vsub.f32 %v6496_v39, %v1582_v11 }
 0x31c   : > { %1671 = vrot.lane.b32.xlu0 %v6543_v51, %s5494_s30  ;;  %v6550_v5 = vpop.eup %5222 }
 0x31d   : > { %5232 = vpow2.f32 %v1627_v58  ;;  %v1629_v54 = vmul.f32 1.442695, %v1598_v3 }
 0x31e   : > { %5234 = vpow2.f32 %v1613_v60 }
 0x31f   : > { %v6552_v13 = vpop.eup %5224  ;;  %1649 = vrot.lane.b32.xlu1 %v6550_v5, %s5494_s30  ;;  %5236 = vpow2.f32 %v1629_v54 }
 0x320   : > { %1655 = vrot.lane.b32.xlu0 %v6552_v13, %s5494_s30  ;;  %v6558_v56 = vpop.eup %5226 }
 0x323   : > { %v6560_v7 = vpop.eup %5228  ;;  %1673 = vrot.lane.b32.xlu1 %v6558_v56, %s5494_s30 }
 0x324   : > { %1659 = vrot.lane.b32.xlu0 %v6560_v7, %s5494_s30  ;;  %v6566_v39 = vpop.eup %5230 }
 0x327   : > { %v6568_v36 = vpop.eup %5232  ;;  %1657 = vrot.lane.b32.xlu1 %v6566_v39, %s5494_s30 }
 0x328   : > { %1675 = vrot.lane.b32.xlu0 %v6568_v36, %s5494_s30  ;;  %v6574_v31 = vpop.eup %5234 }
 0x329   : > { %v6578_v20 = vpop.eup %5236 }
 0x32b   : > { %1661 = vrot.lane.b32.xlu1 %v6574_v31, %s5494_s30 }
 0x32f   : > { %1677 = vrot.lane.b32.xlu1 %v6578_v20, %s5494_s30  ;;  %s7731_s30 = sshll.u32 %s5630_s2, 10 }
 0x37d   : > { %v1668_v23 = vpop.permute.xlu0 %1667 }
 0x37e   : > { %v1726_v44 = vsel %vm1695_vm2, %v1668_v23, 0.0 }
 0x37f   : > { %1727 = vadd.xlane.f32.xlu0 %v1726_v44 }
 0x381   : > { %v1664_v26 = vpop.permute.xlu1 %1663 }
 0x382   : > { %v1720_v27 = vsel %vm1695_vm2, %v1664_v26, 0.0 }
 0x383   : > { %1721 = vadd.xlane.f32.xlu0 %v1720_v27 }
 0x385   : > { %v1670_v53 = vpop.permute.xlu1 %1669  ;;  %v1652_v1 = vpop.permute.xlu0 %1651 }
 0x386   : > { %v1729_v28 = vsel %vm1695_vm2, %v1670_v53, 0.0  ;;  %v1702_v3 = vsel %vm1695_vm2, %v1652_v1, 0.0 }
 0x387   : > { %1730 = vadd.xlane.f32.xlu1 %v1729_v28 }
 0x389   : > { %v1666_v24 = vpop.permute.xlu1 %1665  ;;  %v1648_v61 = vpop.permute.xlu0 %1647 }
 0x38a   : > { %v1723_v0 = vsel %vm1695_vm2, %v1666_v24, 0.0  ;;  %v1696_v44 = vsel %vm1695_vm2, %v1648_v61, 0.0 }
 0x38b   : > { %1724 = vadd.xlane.f32.xlu0 %v1723_v0 }
 0x38d   : > { %v1654_v11 = vpop.permute.xlu1 %1653 }
 0x38e   : > { %v1672_v58 = vpop.permute.xlu0 %1671  ;;  %v1705_v60 = vsel %vm1695_vm2, %v1654_v11, 0.0 }
 0x38f   : > { %1706 = vadd.xlane.f32.xlu1 %v1705_v60  ;;  %1703 = vadd.xlane.f32.xlu0 %v1702_v3  ;;  %v1732_v28 = vsel %vm1695_vm2, %v1672_v58, 0.0  ;;  %v5495_v60 = vmov 33  }
 0x390   : > { %5075 = vset.pattern.permute.xlu1 %v5495_v60  ;;  %5076 = vset.pattern.permute.xlu0 %v5495_v60 }
 0x391   : > { %v1650_v54 = vpop.permute.xlu1 %1649 }
 0x392   : > { %v1699_v23 = vsel %vm1695_vm2, %v1650_v54, 0.0  ;;  %v1656_v26 = vpop.permute.xlu0 %1655 }
 0x393   : > { %1700 = vadd.xlane.f32.xlu1 %v1699_v23  ;;  %1697 = vadd.xlane.f32.xlu0 %v1696_v44  ;;  %v1708_v11 = vsel %vm1695_vm2, %v1656_v26, 0.0 }
 0x395   : > { %v1674_v27 = vpop.permute.xlu1 %1673 }
 0x396   : > { %v1735_v53 = vsel %vm1695_vm2, %v1674_v27, 0.0  ;;  %v1660_v24 = vpop.permute.xlu0 %1659 }
 0x397   : > { %1736 = vadd.xlane.f32.xlu1 %v1735_v53  ;;  %1733 = vadd.xlane.f32.xlu0 %v1732_v28  ;;  %v1714_v54 = vsel %vm1695_vm2, %v1660_v24, 0.0 }
 0x399   : > { %v1658_v0 = vpop.permute.xlu1 %1657 }
 0x39a   : > { %v1711_v1 = vsel %vm1695_vm2, %v1658_v0, 0.0  ;;  %v1676_v23 = vpop.permute.xlu0 %1675 }
 0x39b   : > { %1712 = vadd.xlane.f32.xlu1 %v1711_v1  ;;  %1709 = vadd.xlane.f32.xlu0 %v1708_v11  ;;  %v1738_v27 = vsel %vm1695_vm2, %v1676_v23, 0.0 }
 0x39d   : > { %v1662_v61 = vpop.permute.xlu1 %1661 }
 0x39e   : > { %v1717_v3 = vsel %vm1695_vm2, %v1662_v61, 0.0 }
 0x39f   : > { %1718 = vadd.xlane.f32.xlu1 %v1717_v3  ;;  %1715 = vadd.xlane.f32.xlu0 %v1714_v54 }
 0x3a1   : > { %v1678_v58 = vpop.permute.xlu1 %1677 }
 0x3a2   : > { %v1741_v44 = vsel %vm1695_vm2, %v1678_v58, 0.0 }
 0x3a3   : > { %1742 = vadd.xlane.f32.xlu1 %v1741_v44  ;;  %1739 = vadd.xlane.f32.xlu0 %v1738_v27 }
 0x40c   : > { %v1728_v26 = vpop.xlane.xlu0 %1727 }
 0x40d   : > { %5238 = vrcp.f32 %v1728_v26 }
 0x410   : > { %v1722_v53 = vpop.xlane.xlu0 %1721 }
 0x411   : > { %5240 = vrcp.f32 %v1722_v53 }
 0x414   : > { %v1731_v28 = vpop.xlane.xlu1 %1730 }
 0x415   : > { %5242 = vrcp.f32 %v1731_v28 }
 0x417   : > { %v5239_v0 = vpop.eup %5238 }
 0x418   : > { %v1725_v1 = vpop.xlane.xlu0 %1724  ;;  %v1770_v24 = vmul.f32 %v5239_v0, %v6509_v14 }
 0x419   : > { %5244 = vrcp.f32 %v1725_v1 }
 0x41a   : > { %1846 = vperm.xlu1 %5075, %v1770_v24  }
 0x41b   : > { %v5241_v11 = vpop.eup %5240 }
 0x41c   : > { %v1707_v60 = vpop.xlane.xlu1 %1706  ;;  %v1704_v61 = vpop.xlane.xlu0 %1703  ;;  %v1768_v3 = vmul.f32 %v5241_v11, %v6515_v42 }
 0x41d   : > { %5246 = vrcp.f32 %v1704_v61 }
 0x41e   : > { %1836 = vperm.xlu1 %5075, %v1768_v3   ;;  %5248 = vrcp.f32 %v1707_v60 }
 0x41f   : > { %v5243_v54 = vpop.eup %5242 }
 0x420   : > { %v1701_v23 = vpop.xlane.xlu1 %1700  ;;  %v1698_v58 = vpop.xlane.xlu0 %1697  ;;  %v1771_v44 = vmul.f32 %v5243_v54, %v6520_v21 }
 0x421   : > { %5250 = vrcp.f32 %v1698_v58 }
 0x422   : > { %1851 = vperm.xlu1 %5075, %v1771_v44   ;;  %5252 = vrcp.f32 %v1701_v23 }
 0x423   : > { %v5245_v27 = vpop.eup %5244 }
 0x424   : > { %v1737_v14 = vpop.xlane.xlu1 %1736  ;;  %v1734_v26 = vpop.xlane.xlu0 %1733  ;;  %v1769_v53 = vmul.f32 %v5245_v27, %v6530_v59 }
 0x425   : > { %5254 = vrcp.f32 %v1737_v14 }
 0x426   : > { %1841 = vperm.xlu1 %5075, %v1769_v53   ;;  %5256 = vrcp.f32 %v1734_v26 }
 0x427   : > { %v5247_v28 = vpop.eup %5246 }
 0x428   : > { %v1713_v42 = vpop.xlane.xlu1 %1712  ;;  %v1710_v0 = vpop.xlane.xlu0 %1709  ;;  %v1762_v1 = vmul.f32 %v5247_v28, %v6523_v30 }
 0x429   : > { %5258 = vrcp.f32 %v1713_v42  ;;  %v5249_v24 = vpop.eup %5248 }
 0x42a   : > { %1806 = vperm.xlu1 %5075, %v1762_v1   ;;  %5260 = vrcp.f32 %v1710_v0  ;;  %v1763_v61 = vmul.f32 %v5249_v24, %v6541_v50 }
 0x42b   : > { %v5251_v21 = vpop.eup %5250 }
 0x42c   : > { %v1719_v11 = vpop.xlane.xlu1 %1718  ;;  %v1716_v60 = vpop.xlane.xlu0 %1715  ;;  %v1760_v59 = vmul.f32 %v5251_v21, %v6533_v41 }
 0x42d   : > { %5262 = vrcp.f32 %v1719_v11  ;;  %v5253_v3 = vpop.eup %5252 }
 0x42e   : > { %1811 = vperm.xlu1 %5075, %v1763_v61   ;;  %1796 = vperm.xlu0 %5076, %v1760_v59   ;;  %5264 = vrcp.f32 %v1716_v60  ;;  %v1761_v44 = vmul.f32 %v5253_v3, %v6550_v5 }
 0x42f   : > { %v5255_v54 = vpop.eup %5254 }
 0x430   : > { %v1743_v23 = vpop.xlane.xlu1 %1742  ;;  %v1773_v58 = vmul.f32 %v5255_v54, %v6558_v56  ;;  %v1740_v30 = vpop.xlane.xlu0 %1739 }
 0x431   : > { %5266 = vrcp.f32 %v1743_v23  ;;  %v5257_v27 = vpop.eup %5256 }
 0x432   : > { %1801 = vperm.xlu1 %5075, %v1761_v44   ;;  %1861 = vperm.xlu0 %5076, %v1773_v58   ;;  %5268 = vrcp.f32 %v1740_v30  ;;  %v1772_v41 = vmul.f32 %v5257_v27, %v6543_v51 }
 0x433   : > { %v5259_v14 = vpop.eup %5258 }
 0x434   : > { %v1765_v50 = vmul.f32 %v5259_v14, %v6566_v39  ;;  %v5261_v26 = vpop.eup %5260  ;;  %v7724_v39 = vmov 0.0  }
 0x435   : > { %v1764_v56 = vmul.f32 %v5261_v26, %v6552_v13  ;;  %4779 = vmatprep.subr.bf16.mxu1 %v7724_v39  ;;  %4767 = vmatprep.subr.bf16.mxu0 %v7724_v39 }
 0x436   : > { %1821 = vperm.xlu0 %5076, %v1765_v50   ;;  %1856 = vperm.xlu1 %5075, %v1772_v41  }
 0x437   : > { %v5263_v53 = vpop.eup %5262  ;;  %4775 = vmatprep.mubr.msk.bf16.mxu0 %vm5498_vm3, %v7724_v39  ;;  %4787 = vmatprep.mubr.msk.bf16.mxu1 %vm5498_vm3, %v7724_v39 }
 0x438   : > { %v1767_v28 = vmul.f32 %v5263_v53, %v6574_v31  ;;  %v5265_v42 = vpop.eup %5264 }
 0x439   : > { %v1766_v1 = vmul.f32 %v5265_v42, %v6560_v7 }
 0x43a   : > { %1831 = vperm.xlu0 %5076, %v1767_v28   ;;  %1816 = vperm.xlu1 %5075, %v1764_v56  }
 0x43b   : > { %v5267_v0 = vpop.eup %5266 }
 0x43c   : > { %v1775_v5 = vmul.f32 %v5267_v0, %v6578_v20  ;;  %v5269_v24 = vpop.eup %5268 }
 0x43d   : > { %v1774_v51 = vmul.f32 %v5269_v24, %v6568_v36 }
 0x43e   : > { %1871 = vperm.xlu0 %5076, %v1775_v5   ;;  %1826 = vperm.xlu1 %5075, %v1766_v1  }
 0x442   : > { %1866 = vperm.xlu1 %5075, %v1774_v51  }
 0x499   : > { %v6616_v13 = vpop.permute.xlu1 %1846 }
 0x49a   : > { %v1884_v61 = vmul.f32 %v6616_v13, %v6304_v8 }
 0x49d   : > { %v6618_v31 = vpop.permute.xlu1 %1836 }
 0x49e   : > { %v1882_v7 = vmul.f32 %v6618_v31, %v6313_v63 }
 0x4a1   : > { %v6620_v21 = vpop.permute.xlu1 %1851 }
 0x4a2   : > { %v1885_v11 = vmul.f32 %v6620_v21, %v6316_v12 }
 0x4a4   : > { %v1895_v3 = vpack.c.bf16 %v1885_v11, %v1884_v61 }
 0x4a5   : > { %v6622_v20 = vpop.permute.xlu1 %1841 }
 0x4a6   : > { %v1883_v36 = vmul.f32 %v6622_v20, %v6326_v19 }
 0x4a8   : > { %v1894_v60 = vpack.c.bf16 %v1883_v36, %v1882_v7 }
 0x4a9   : > { %v6632_v59 = vpop.permute.xlu1 %1806 }
 0x4aa   : > { %1968 = vrot.lane.b32.xlu0 %v1894_v60, %s5497_s0  ;;  %v1876_v53 = vmul.f32 %v6632_v59, %v6345_v35 }
 0x4ad   : > { %v6635_v54 = vpop.permute.xlu1 %1811  ;;  %v6637_v23 = vpop.permute.xlu0 %1796 }
 0x4ae   : > { %1970 = vrot.lane.b32.xlu0 %v1895_v3, %s5497_s0  ;;  %v1874_v44 = vmul.f32 %v6637_v23, %v6369_v2  ;;  %v1877_v14 = vmul.f32 %v6635_v54, %v6357_v6 }
 0x4b0   : > { %v1891_v42 = vpack.c.bf16 %v1877_v14, %v1876_v53 }
 0x4b1   : > { %v6640_v58 = vpop.permute.xlu1 %1801  ;;  %v6642_v30 = vpop.permute.xlu0 %1861 }
 0x4b2   : > { %v1875_v27 = vmul.f32 %v6640_v58, %v6381_v43  ;;  %v1887_v28 = vmul.f32 %v6642_v30, %v6414_v38 }
 0x4b4   : > { %v1890_v50 = vpack.c.bf16 %v1875_v27, %v1874_v44 }
 0x4b5   : > { %v6650_v41 = vpop.permute.xlu1 %1856  ;;  %v6652_v26 = vpop.permute.xlu0 %1821 }
 0x4b6   : > { %v1886_v56 = vmul.f32 %v6650_v41, %v6398_v45  ;;  %1907 = vrot.lane.b32.xlu1 %v1890_v50, %s5497_s0  ;;  %v1879_v24 = vmul.f32 %v6652_v26, %v6428_v10  ;;  %v6693_v50 = vpack.c.bf16 %v6381_v43, %v6369_v2  ;;  %v6712_v43 = vpack.c.bf16 %v6428_v10, %v6408_v15 }
 0x4b7   : > { %v6716_v2 = vpack.c.bf16 %v6316_v12, %v6304_v8 }
 0x4b8   : > { %v1896_v0 = vpack.c.bf16 %v1887_v28, %v1886_v56  ;;  %v6700_v28 = vpack.c.bf16 %v6357_v6, %v6345_v35  ;;  %v6704_v56 = vpack.c.bf16 %v6326_v19, %v6313_v63  ;;  %v6724_v6 = vpack.c.bf16 %v6458_v34, %v6445_v47  ;;  %v6749_v35 = vld [vmem:[%s7785_s25] sm:$0xff]   ;;  %s7532_s25 = sand.u32 1, %s5484_s22  }
 0x4b9   : > { %v6665_v5 = vpop.permute.xlu1 %1816  ;;  %v6667_v1 = vpop.permute.xlu0 %1831  ;;  %v6728_v63 = vpack.c.bf16 %v6414_v38, %v6398_v45  ;;  %7786 = vst [vmem:[#allocation41_spill] sm:$0xff] %v6749_v35  ;;  %s7730_s26 = sshll.u32 %s7532_s25, 6 }
 0x4ba   : > { %v1878_v51 = vmul.f32 %v6665_v5, %v6408_v15  ;;  %1909 = vrot.lane.b32.xlu1 %v1891_v42, %s5497_s0  ;;  %1972 = vrot.lane.b32.xlu0 %v1896_v0, %s5497_s0  ;;  %v1881_v11 = vmul.f32 %v6667_v1, %v6458_v34  ;;  %v6736_v15 = vpack.c.bf16 %v6484_v4, %v6471_v32  ;;  %s7537_s28 = scalar_lea.vmem [#allocation2], %s7730_s26  ;;  %s7575_s26 = scalar_lea.hbm %s7691_s19, %s7731_s30 }
 0x4bb   : > { %s4347_s27 = sshll.u32 %s7537_s28, 4  ;;  %s7577_s27 = int_to_ptr.vmem [resolvable:$true] %s4347_s27 }
 0x4bc   : > { %v1892_v7 = vpack.c.bf16 %v1879_v24, %v1878_v51  ;;  %s5398_s6 = scalar_lea.vmem %s7577_s27, 1024 }
 0x4bd   : > { %v6675_v36 = vpop.permute.xlu1 %1826  ;;  %v6682_v61 = vpop.permute.xlu0 %1871  ;;  %p5399_p11 = scmp.ne.s32.totalorder %s7577_s27, %s5398_s6 }
 0x4be   : > { %v1880_v60 = vmul.f32 %v6675_v36, %v6445_v47  ;;  %1911 = vrot.lane.b32.xlu1 %v1892_v7, %s5497_s0  ;;  %v1889_v27 = vmul.f32 %v6682_v61, %v6484_v4 }
 0x4bf   : > { %p5400_p12 = pnand %p5399_p11, %p5647_p5 }
 0x4c0   : > { %v1893_v3 = vpack.c.bf16 %v1881_v11, %v1880_v60 }
 0x4c1   : > { %v6684_v44 = vpop.permute.xlu1 %1866  ;;  %p5401_p13 = pneg %p5400_p12 }
 0x4c2   : > { %v1888_v14 = vmul.f32 %v6684_v44, %v6471_v32  ;;  %1913 = vrot.lane.b32.xlu1 %v1893_v3, %s5497_s0 }
 0x4c4   : > { %v1897_v53 = vpack.c.bf16 %v1889_v27, %v1888_v14 }
 0x4c6   : > { %2027 = vrot.lane.b32.xlu1 %v6693_v50, %s5497_s0  ;;  %1974 = vrot.lane.b32.xlu0 %v1897_v53, %s5497_s0 }
 0x4ca   : > { %2119 = vrot.lane.b32.xlu1 %v6704_v56, %s5497_s0  ;;  %2029 = vrot.lane.b32.xlu0 %v6700_v28, %s5497_s0 }
 0x4ce   : > { %2031 = vrot.lane.b32.xlu1 %v6712_v43, %s5497_s0  ;;  %2121 = vrot.lane.b32.xlu0 %v6716_v2, %s5497_s0 }
 0x4d2   : > { %2123 = vrot.lane.b32.xlu1 %v6728_v63, %s5497_s0  ;;  %2033 = vrot.lane.b32.xlu0 %v6724_v6, %s5497_s0 }
 0x4d6   : > { %2125 = vrot.lane.b32.xlu0 %v6736_v15, %s5497_s0 }
 0x51c   : > { %v1969_v8 = vpop.permute.xlu0 %1968 }
 0x51d   : > { %4780 = vmatpush3.bf16.msra.mxu1 %v1969_v8 }
 0x51e   : > { %4781 = vmatprep.subr.bf16.mxu1 %v7724_v39 }
 0x520   : > { %v1971_v34 = vpop.permute.xlu0 %1970 }
 0x521   : > { %4782 = vmatpush3.bf16.msra.mxu1 %v1971_v34 }
 0x522   : > { %4783 = vmatprep.subr.bf16.mxu1 %v7724_v39 }
 0x528   : > { %v1908_v45 = vpop.permute.xlu1 %1907 }
 0x529   : > { %4768 = vmatpush3.bf16.msra.mxu0 %v1908_v45 }
 0x52a   : > { %4769 = vmatprep.subr.bf16.mxu0 %v7724_v39 }
 0x52c   : > { %v1910_v12 = vpop.permute.xlu1 %1909  ;;  %v1973_v19 = vpop.permute.xlu0 %1972 }
 0x52d   : > { %4770 = vmatpush3.bf16.msra.mxu0 %v1910_v12  ;;  %4784 = vmatpush3.bf16.msra.mxu1 %v1973_v19 }
 0x52e   : > { %4771 = vmatprep.subr.bf16.mxu0 %v7724_v39  ;;  %4785 = vmatprep.subr.bf16.mxu1 %v7724_v39 }
 0x530   : > { %v1912_v4 = vpop.permute.xlu1 %1911 }
 0x531   : > { %4772 = vmatpush3.bf16.msra.mxu0 %v1912_v4 }
 0x532   : > { %4773 = vmatprep.subr.bf16.mxu0 %v7724_v39 }
 0x534   : > { %v1914_v32 = vpop.permute.xlu1 %1913 }
 0x535   : > { %4774 = vmatpush3.bf16.msra.mxu0 %v1914_v32 }
 0x538   : > { %4776 = vmatmul.mubr.msk.bf16.vlgmr.msra.gmra.mrb[24].mxu0 %vm1919_vm4, %v6749_v35  ;;  %v2028_v38 = vpop.permute.xlu1 %2027  ;;  %v1975_v10 = vpop.permute.xlu0 %1974 }
 0x539   : > { %4786 = vmatpush3.bf16.msra.mxu1 %v1975_v10  ;;  %4793 = vmatprep.mubr.msk.bf16.mxu0 %vm1695_vm2, %v2028_v38 }
 0x53c   : > { %v2120_v47 = vpop.permute.xlu1 %2119  ;;  %4788 = vmatmul.mubr.msk.bf16.vlgmr.msra.gmra.mrb[8].mxu1 %vm1919_vm4, %v6749_v35  ;;  %v2030_v27 = vpop.permute.xlu0 %2029 }
 0x53d   : > { %4803 = vmatprep.mubr.msk.bf16.mxu1 %vm1695_vm2, %v2120_v47 }
 0x540   : > { %v2032_v45 = vpop.permute.xlu1 %2031  ;;  %v2122_v12 = vpop.permute.xlu0 %2121 }
 0x544   : > { %v2124_v19 = vpop.permute.xlu1 %2123  ;;  %v2034_v4 = vpop.permute.xlu0 %2033 }
 0x60b   : > { %v1957_v42 = vpop.f32.mrb[24].mxu0 }
 0x60c   : > { %v4777_v0 = vpop.f32.mrb[25].mxu0 }
 0x60d   : > { %v1960_v24 = vpop.f32.mrb[26].mxu0 }
 0x60e   : > { %v2021_v51 = vpack.c.bf16 %v1960_v24, %v1957_v42  ;;  %v4778_v7 = vpop.f32.mrb[27].mxu0 }
 0x60f   : > { %v2014_v11 = vpop.f32.mrb[8].mxu1 }
 0x610   : > { %v2048_v60 = vsel %vm1695_vm2, %v2021_v51, 0  ;;  %v4789_v3 = vpop.f32.mrb[9].mxu1  ;;  %5019 = vmatprep.subr.msk.bf16.mxu0 %vm1695_vm2, %v2021_v51 }
 0x611   : > { %v2017_v14 = vpop.f32.mrb[10].mxu1  ;;  %4792 = vmatpush3.bf16.xpose.msra.mxu0 %v2048_v60 }
 0x612   : > { %v2022_v53 = vpack.c.bf16 %v2017_v14, %v2014_v11  ;;  %v4790_v8 = vpop.f32.mrb[11].mxu1  ;;  %4811 = vmatprep.subr.bf16.mxu0 %v7724_v39 }
 0x614   : > { %v2140_v34 = vsel %vm1695_vm2, %v2022_v53, 0  ;;  %5020 = vmatprep.subr.msk.bf16.mxu1 %vm1695_vm2, %v2022_v53 }
 0x615   : > { %4802 = vmatpush3.bf16.xpose.msra.mxu1 %v2140_v34 }
 0x616   : > { %4823 = vmatprep.subr.bf16.mxu1 %v7724_v39 }
 0x618   : > { %4794 = vmatmul.mubr.msk.bf16.vlgmr.msra.gmra.mrb[28].mxu0 %vm1695_vm2, %v2030_v27 }
 0x619   : > { %4797 = vmatprep.mubr.msk.bf16.mxu0 %vm1695_vm2, %v2032_v45  ;;  %4812 = vmatpush3.bf16.msra.mxu0 %v6693_v50  ;;  %v2126_v50 = vpop.permute.xlu0 %2125 }
 0x61a   : > { %4813 = vmatprep.subr.bf16.mxu0 %v7724_v39 }
 0x61c   : > { %4804 = vmatmul.mubr.msk.bf16.vlgmr.msra.gmra.mrb[12].mxu1 %vm1695_vm2, %v2122_v12 }
 0x61d   : > { %4807 = vmatprep.mubr.msk.bf16.mxu1 %vm1695_vm2, %v2124_v19  ;;  %4814 = vmatpush3.bf16.msra.mxu0 %v6700_v28 }
 0x61e   : > { %4824 = vmatpush3.bf16.msra.mxu1 %v6704_v56  ;;  %4815 = vmatprep.subr.bf16.mxu0 %v7724_v39 }
 0x61f   : > { %4825 = vmatprep.subr.bf16.mxu1 %v7724_v39 }
 0x620   : > { %4798 = vmatmul.mubr.msk.bf16.gmra.mrb[32].mxu0 %vm1695_vm2, %v2034_v4 }
 0x621   : > { %4816 = vmatpush3.bf16.msra.mxu0 %v6712_v43  ;;  %4819 = vmatprep.mubr.msk.bf16.mxu0 %vm5498_vm3, %v7724_v39 }
 0x622   : > { %4826 = vmatpush3.bf16.msra.mxu1 %v6716_v2  ;;  %4817 = vmatprep.subr.bf16.mxu0 %v7724_v39 }
 0x623   : > { %4827 = vmatprep.subr.bf16.mxu1 %v7724_v39 }
 0x624   : > { %4808 = vmatmul.mubr.msk.bf16.gmra.mrb[16].mxu1 %vm1695_vm2, %v2126_v50 }
 0x625   : > { %4818 = vmatpush3.bf16.msra.mxu0 %v6724_v6  ;;  %4831 = vmatprep.mubr.msk.bf16.mxu1 %vm5498_vm3, %v7724_v39 }
 0x626   : > { %4828 = vmatpush3.bf16.msra.mxu1 %v6728_v63  ;;  %4835 = vmatprep.subr.bf16.mxu0 %v7724_v39 }
 0x627   : > { %4829 = vmatprep.subr.bf16.mxu1 %v7724_v39 }
 0x62a   : > { %4830 = vmatpush3.bf16.msra.mxu1 %v6736_v15 }
 0x62b   : > { %4841 = vmatprep.subr.bf16.mxu1 %v7724_v39 }
 0x6eb   : > { %v6789_v28 = vpop.f32.mrb[28].mxu0 }
 0x6ec   : > { %v6791_v56 = vpop.f32.mrb[29].mxu0  ;;  %v2213_v51 = vsel %vm1695_vm2, %v6789_v28, -inf }
 0x6ed   : > { %v6793_v43 = vpop.f32.mrb[30].mxu0  ;;  %v2207_v8 = vsel %vm1695_vm2, %v6791_v56, -inf }
 0x6ee   : > { %v6795_v2 = vpop.f32.mrb[31].mxu0  ;;  %v2216_v14 = vsel %vm1695_vm2, %v6793_v43, -inf }
 0x6ef   : > { %v4805_v6 = vpop.f32.mrb[12].mxu1  ;;  %v2210_v34 = vsel %vm1695_vm2, %v6795_v2, -inf }
 0x6f0   : > { %v2176_v32 = vpop.f32.mrb[13].mxu1  ;;  %v2237_v63 = vsel %vm1695_vm2, %v4805_v6, -inf }
 0x6f1   : > { %2238 = vmax.xlane.f32.xlu1 %v2237_v63  ;;  %v4806_v38 = vpop.f32.mrb[14].mxu1  ;;  %v2231_v10 = vsel %vm1695_vm2, %v2176_v32, -inf }
 0x6f2   : > { %2232 = vmax.xlane.f32.xlu0 %v2231_v10  ;;  %v2179_v15 = vpop.f32.mrb[15].mxu1  ;;  %v2240_v0 = vsel %vm1695_vm2, %v4806_v38, -inf }
 0x6f3   : > { %v6799_v47 = vpop.f32.mrb[32].mxu0  ;;  %v2234_v3 = vsel %vm1695_vm2, %v2179_v15, -inf }
 0x6f4   : > { %v6801_v42 = vpop.f32.mrb[33].mxu0  ;;  %v2225_v12 = vsel %vm1695_vm2, %v6799_v47, -inf }
 0x6f5   : > { %2241 = vmax.xlane.f32.xlu1 %v2240_v0  ;;  %v6804_v24 = vpop.f32.mrb[34].mxu0  ;;  %v2219_v4 = vsel %vm1695_vm2, %v6801_v42, -inf }
 0x6f6   : > { %2214 = vmax.xlane.f32.xlu0 %v2213_v51  ;;  %v6808_v7 = vpop.f32.mrb[35].mxu0  ;;  %v2228_v0 = vsel %vm1695_vm2, %v6804_v24, -inf  ;;  %v7729_v51 = vmov 0  }
 0x6f7   : > { %v6810_v11 = vpop.f32.mrb[16].mxu1  ;;  %v2222_v63 = vsel %vm1695_vm2, %v6808_v7, -inf  ;;  %5103 = vset.pattern.permute.xlu1 %v7729_v51 }
 0x6f8   : > { %v6812_v60 = vpop.f32.mrb[17].mxu1  ;;  %v2249_v50 = vsel %vm1695_vm2, %v6810_v11, -inf }
 0x6f9   : > { %2235 = vmax.xlane.f32.xlu1 %v2234_v3  ;;  %v6815_v27 = vpop.f32.mrb[18].mxu1  ;;  %v2243_v45 = vsel %vm1695_vm2, %v6812_v60, -inf }
 0x6fa   : > { %2217 = vmax.xlane.f32.xlu0 %v2216_v14  ;;  %v6819_v53 = vpop.f32.mrb[19].mxu1  ;;  %v2252_v10 = vsel %vm1695_vm2, %v6815_v27, -inf }
 0x6fb   : > { %v2246_v19 = vsel %vm1695_vm2, %v6819_v53, -inf }
 0x6fd   : > { %2208 = vmax.xlane.f32.xlu1 %v2207_v8 }
 0x6fe   : > { %2211 = vmax.xlane.f32.xlu0 %v2210_v34 }
 0x701   : > { %2244 = vmax.xlane.f32.xlu1 %v2243_v45 }
 0x702   : > { %2226 = vmax.xlane.f32.xlu0 %v2225_v12 }
 0x705   : > { %2247 = vmax.xlane.f32.xlu1 %v2246_v19 }
 0x706   : > { %2220 = vmax.xlane.f32.xlu0 %v2219_v4 }
 0x709   : > { %2250 = vmax.xlane.f32.xlu1 %v2249_v50 }
 0x70a   : > { %2223 = vmax.xlane.f32.xlu0 %v2222_v63 }
 0x70d   : > { %2253 = vmax.xlane.f32.xlu1 %v2252_v10 }
 0x70e   : > { %2229 = vmax.xlane.f32.xlu0 %v2228_v0 }
 0x77e   : > { %v2239_v3 = vpop.xlane.xlu1 %2238 }
 0x77f   : > { %v2265_v14 = vsub.f32 %v4805_v6, %v2239_v3  ;;  %v2233_v8 = vpop.xlane.xlu0 %2232 }
 0x780   : > { %v2263_v34 = vsub.f32 %v2176_v32, %v2233_v8 }
 0x781   : > { %v2291_v45 = vmul.f32 1.442695, %v2265_v14 }
 0x782   : > { %v2287_v12 = vmul.f32 1.442695, %v2263_v34  ;;  %v2242_v19 = vpop.xlane.xlu1 %2241 }
 0x783   : > { %5270 = vpow2.f32 %v2291_v45  ;;  %v2266_v4 = vsub.f32 %v4806_v38, %v2242_v19  ;;  %v2215_v50 = vpop.xlane.xlu0 %2214 }
 0x784   : > { %v2257_v63 = vsub.f32 %v6789_v28, %v2215_v50  ;;  %5272 = vpow2.f32 %v2287_v12 }
 0x785   : > { %v2293_v10 = vmul.f32 1.442695, %v2266_v4 }
 0x786   : > { %v2275_v39 = vmul.f32 1.442695, %v2257_v63  ;;  %v2236_v52 = vpop.xlane.xlu1 %2235 }
 0x787   : > { %v2264_v0 = vsub.f32 %v2179_v15, %v2236_v52  ;;  %v2218_v35 = vpop.xlane.xlu0 %2217 }
 0x788   : > { %5274 = vpow2.f32 %v2275_v39  ;;  %v2258_v6 = vsub.f32 %v6793_v43, %v2218_v35 }
 0x789   : > { %5276 = vpow2.f32 %v2293_v10  ;;  %v2289_v51 = vmul.f32 1.442695, %v2264_v0 }
 0x78a   : > { %v2209_v32 = vpop.xlane.xlu1 %2208  ;;  %v2277_v38 = vmul.f32 1.442695, %v2258_v6 }
 0x78b   : > { %v2255_v3 = vsub.f32 %v6791_v56, %v2209_v32  ;;  %v2212_v14 = vpop.xlane.xlu0 %2211  ;;  %5278 = vpow2.f32 %v2289_v51 }
 0x78c   : > { %v2256_v34 = vsub.f32 %v6795_v2, %v2212_v14 }
 0x78d   : > { %v6845_v8 = vpop.eup %5270  ;;  %v2271_v28 = vmul.f32 1.442695, %v2255_v3 }
 0x78e   : > { %v2245_v45 = vpop.xlane.xlu1 %2244  ;;  %v2333_v52 = vsel %vm1695_vm2, %v6845_v8, 0.0  ;;  %v6850_v39 = vpop.eup %5272  ;;  %v2273_v43 = vmul.f32 1.442695, %v2256_v34 }
 0x78f   : > { %5280 = vpow2.f32 %v2271_v28  ;;  %2334 = vadd.xlane.f32.xlu1 %v2333_v52  ;;  %v2227_v35 = vpop.xlane.xlu0 %2226  ;;  %v2327_v12 = vsel %vm1695_vm2, %v6850_v39, 0.0  ;;  %v2267_v50 = vsub.f32 %v6812_v60, %v2245_v45 }
 0x790   : > { %5282 = vpow2.f32 %v2277_v38  ;;  %v2261_v56 = vsub.f32 %v6799_v47, %v2227_v35 }
 0x791   : > { %5284 = vpow2.f32 %v2273_v43  ;;  %v2295_v14 = vmul.f32 1.442695, %v2267_v50 }
 0x792   : > { %v6853_v15 = vpop.eup %5274  ;;  %v2248_v51 = vpop.xlane.xlu1 %2247  ;;  %v2283_v63 = vmul.f32 1.442695, %v2261_v56 }
 0x793   : > { %v6857_v2 = vpop.eup %5276  ;;  %2328 = vadd.xlane.f32.xlu1 %v2327_v12  ;;  %v2221_v19 = vpop.xlane.xlu0 %2220  ;;  %v2309_v4 = vsel %vm1695_vm2, %v6853_v15, 0.0  ;;  %v2268_v38 = vsub.f32 %v6819_v53, %v2248_v51 }
 0x794   : > { %2310 = vadd.xlane.f32.xlu0 %v2309_v4  ;;  %v2259_v47 = vsub.f32 %v6801_v42, %v2221_v19  ;;  %v2336_v0 = vsel %vm1695_vm2, %v6857_v2, 0.0  ;;  %5286 = vpow2.f32 %v2283_v63 }
 0x795   : > { %v6865_v6 = vpop.eup %5278  ;;  %v2297_v43 = vmul.f32 1.442695, %v2268_v38 }
 0x796   : > { %v2251_v10 = vpop.xlane.xlu1 %2250  ;;  %v2279_v60 = vmul.f32 1.442695, %v2259_v47  ;;  %v2330_v52 = vsel %vm1695_vm2, %v6865_v6, 0.0 }
 0x797   : > { %v2269_v32 = vsub.f32 %v6810_v11, %v2251_v10  ;;  %2337 = vadd.xlane.f32.xlu1 %v2336_v0  ;;  %v2224_v3 = vpop.xlane.xlu0 %2223 }
 0x798   : > { %v2260_v42 = vsub.f32 %v6808_v7, %v2224_v3 }
 0x799   : > { %v6869_v28 = vpop.eup %5280  ;;  %v2299_v34 = vmul.f32 1.442695, %v2269_v32 }
 0x79a   : > { %v2254_v45 = vpop.xlane.xlu1 %2253  ;;  %v2303_v35 = vsel %vm1695_vm2, %v6869_v28, 0.0  ;;  %v6876_v11 = vpop.eup %5282  ;;  %v2281_v51 = vmul.f32 1.442695, %v2260_v42 }
 0x79b   : > { %5288 = vpow2.f32 %v2299_v34  ;;  %2331 = vadd.xlane.f32.xlu1 %v2330_v52  ;;  %2304 = vadd.xlane.f32.xlu0 %v2303_v35  ;;  %v2230_v53 = vpop.xlane.xlu0 %2229  ;;  %v2270_v56 = vsub.f32 %v6815_v27, %v2254_v45  ;;  %v2312_v12 = vsel %vm1695_vm2, %v6876_v11, 0.0  ;;  %v6882_v19 = vpop.eup %5284 }
 0x79c   : > { %5290 = vpow2.f32 %v2295_v14  ;;  %v2262_v7 = vsub.f32 %v6804_v24, %v2230_v53  ;;  %v2306_v63 = vsel %vm1695_vm2, %v6882_v19, 0.0 }
 0x79d   : > { %5292 = vpow2.f32 %v2279_v60  ;;  %v2301_v4 = vmul.f32 1.442695, %v2270_v56  ;;  %v1781_v56 = vld [vmem:[%s7684_s12 + $0x8] sm:$0xff] }
 0x79e   : > { %5294 = vpow2.f32 %v2297_v43  ;;  %v2285_v50 = vmul.f32 1.442695, %v2262_v7  ;;  %v6886_v47 = vpop.eup %5286  ;;  %v1780_v43 = vld [vmem:[%s7684_s12] sm:$0xff]  ;;  %v3113_v7 = vmul.f32 %v6637_v23, %v6360_v33 }
 0x79f   : > { %2313 = vadd.xlane.f32.xlu0 %v2312_v12  ;;  %5296 = vpow2.f32 %v2281_v51  ;;  %v2321_v0 = vsel %vm1695_vm2, %v6886_v47, 0.0  ;;  %v3114_v51 = vmul.f32 %v6640_v58, %v6372_v49  ;;  %v3116_v12 = vmul.f32 %v6635_v54, %v6348_v18 }
 0x7a0   : > { %5298 = vpow2.f32 %v2301_v4  ;;  %v3118_v58 = vmul.f32 %v6652_v26, %v6417_v57  ;;  %v3120_v54 = vmul.f32 %v6667_v1, %v6448_v22  ;;  %v3124_v26 = vmul.f32 %v6620_v21, %v6319_v29 }
 0x7a1   : > { %5300 = vpow2.f32 %v2285_v50  ;;  %v3129_v4 = vpack.c.bf16 %v3114_v51, %v3113_v7  ;;  %v3115_v50 = vmul.f32 %v6632_v59, %v6332_v16  ;;  %v3122_v59 = vmul.f32 %v6622_v20, %v6329_v17 }
 0x7a2   : > { %v3126_v20 = vmul.f32 %v6642_v30, %v6420_v37  ;;  %v3128_v21 = vmul.f32 %v6682_v61, %v6474_v48  ;;  %v6972_v30 = vpack.c.bf16 %v6348_v18, %v6332_v16  ;;  %v6978_v61 = vpack.c.bf16 %v6329_v17, %v6310_v9 }
 0x7a3   : > { %2307 = vadd.xlane.f32.xlu0 %v2306_v63  ;;  %v3130_v63 = vpack.c.bf16 %v3116_v12, %v3115_v50  ;;  %v6990_v16 = vpack.c.bf16 %v6417_v57, %v6401_v46 }
 0x7a5   : > { %v6888_v27 = vpop.eup %5288 }
 0x7a6   : > { %v6890_v24 = vpop.eup %5290  ;;  %v2345_v10 = vsel %vm1695_vm2, %v6888_v27, 0.0 }
 0x7a7   : > { %v6896_v32 = vpop.eup %5292  ;;  %2346 = vadd.xlane.f32.xlu1 %v2345_v10  ;;  %2322 = vadd.xlane.f32.xlu0 %v2321_v0  ;;  %v2339_v14 = vsel %vm1695_vm2, %v6890_v24, 0.0  ;;  %v3117_v10 = vmul.f32 %v6665_v5, %v6401_v46  ;;  %v3119_v0 = vmul.f32 %v6675_v36, %v6431_v62  ;;  %v3121_v5 = vmul.f32 %v6618_v31, %v6310_v9 }
 0x7a8   : > { %v6898_v3 = vpop.eup %5294  ;;  %v2315_v38 = vsel %vm1695_vm2, %v6896_v32, 0.0  ;;  %v3123_v36 = vmul.f32 %v6616_v13, %v6307_v40  ;;  %v6996_v9 = vpack.c.bf16 %v6420_v37, %v6404_v55 }
 0x7a9   : > { %v6904_v60 = vpop.eup %5296  ;;  %v2342_v42 = vsel %vm1695_vm2, %v6898_v3, 0.0  ;;  %v3131_v23 = vpack.c.bf16 %v3118_v58, %v3117_v10 }
 0x7aa   : > { %v6906_v34 = vpop.eup %5298  ;;  %v2318_v45 = vsel %vm1695_vm2, %v6904_v60, 0.0  ;;  %v3134_v1 = vpack.c.bf16 %v3124_v26, %v3123_v36 }
 0x7ab   : > { %2340 = vadd.xlane.f32.xlu1 %v2339_v14  ;;  %2316 = vadd.xlane.f32.xlu0 %v2315_v38  ;;  %v6912_v52 = vpop.eup %5300  ;;  %v2348_v35 = vsel %vm1695_vm2, %v6906_v34, 0.0  ;;  %v3132_v14 = vpack.c.bf16 %v3120_v54, %v3119_v0  ;;  %v3133_v38 = vpack.c.bf16 %v3122_v59, %v3121_v5 }
 0x7ac   : > { %v2324_v53 = vsel %vm1695_vm2, %v6912_v52, 0.0 }
 0x7af   : > { %2343 = vadd.xlane.f32.xlu1 %v2342_v42  ;;  %2319 = vadd.xlane.f32.xlu0 %v2318_v45  ;;  %v3125_v42 = vmul.f32 %v6650_v41, %v6404_v55  ;;  %v3127_v45 = vmul.f32 %v6684_v44, %v6461_v25  ;;  %v6966_v41 = vpack.c.bf16 %v6372_v49, %v6360_v33 }
 0x7b0   : > { %v6984_v33 = vpack.c.bf16 %v6319_v29, %v6307_v40  ;;  %v7002_v40 = vpack.c.bf16 %v6474_v48, %v6461_v25 }
 0x7b1   : > { %v3135_v31 = vpack.c.bf16 %v3126_v20, %v3125_v42  ;;  %v3136_v13 = vpack.c.bf16 %v3128_v21, %v3127_v45 }
 0x7b3   : > { %2349 = vadd.xlane.f32.xlu1 %v2348_v35  ;;  %2325 = vadd.xlane.f32.xlu0 %v2324_v53 }
 0x7c4   : > { %2549 = vperm.xlu1 %5103, %v1780_v43  }
 0x7c8   : > { %2554 = vperm.xlu1 %5103, %v1781_v56  }
 0x7cc   : > { %3141 = vrot.lane.b32.xlu1 %v3129_v4, %s5497_s0 }
 0x7d0   : > { %3143 = vrot.lane.b32.xlu1 %v3130_v63, %s5497_s0 }
 0x7d4   : > { %3145 = vrot.lane.b32.xlu1 %v3131_v23, %s5497_s0 }
 0x7d8   : > { %3147 = vrot.lane.b32.xlu1 %v3132_v14, %s5497_s0 }
 0x7dc   : > { %3198 = vrot.lane.b32.xlu1 %v3133_v38, %s5497_s0 }
 0x7e0   : > { %3200 = vrot.lane.b32.xlu1 %v3134_v1, %s5497_s0 }
 0x7e4   : > { %3202 = vrot.lane.b32.xlu1 %v3135_v31, %s5497_s0 }
 0x7e8   : > { %3204 = vrot.lane.b32.xlu1 %v3136_v13, %s5497_s0 }
 0x7ec   : > { %3257 = vrot.lane.b32.xlu1 %v6966_v41, %s5497_s0 }
 0x7f0   : > { %3259 = vrot.lane.b32.xlu1 %v6972_v30, %s5497_s0 }
 0x7f4   : > { %3349 = vrot.lane.b32.xlu1 %v6978_v61, %s5497_s0 }
 0x7f8   : > { %3351 = vrot.lane.b32.xlu1 %v6984_v33, %s5497_s0 }
 0x7fc   : > { %3261 = vrot.lane.b32.xlu1 %v6990_v16, %s5497_s0 }
 0x800   : > { %3353 = vrot.lane.b32.xlu1 %v6996_v9, %s5497_s0 }
 0x804   : > { %3355 = vrot.lane.b32.xlu1 %v7002_v40, %s5497_s0 }
 0x81c   : > { %v2335_v29 = vpop.xlane.xlu1 %2334 }
 0x81d   : > { %5302 = vrcp.f32 %v2335_v29 }
 0x820   : > { %v2329_v46 = vpop.xlane.xlu1 %2328 }
 0x821   : > { %v2311_v17 = vpop.xlane.xlu0 %2310 }
 0x824   : > { %v2338_v18 = vpop.xlane.xlu1 %2337 }
 0x825   : > { %5304 = vrcp.f32 %v2338_v18 }
 0x826   : > { %5306 = vrcp.f32 %v2329_v46 }
 0x827   : > { %v5303_v37 = vpop.eup %5302 }
 0x828   : > { %v2332_v49 = vpop.xlane.xlu1 %2331  ;;  %v2305_v55 = vpop.xlane.xlu0 %2304  ;;  %v7007_v44 = vmul.f32 %v5303_v37, %v6845_v8 }
 0x829   : > { %5308 = vrcp.f32 %v2332_v49 }
 0x82a   : > { %5310 = vrcp.f32 %v2305_v55 }
 0x82b   : > { %5312 = vrcp.f32 %v2311_v17 }
 0x82c   : > { %v2314_v57 = vpop.xlane.xlu0 %2313 }
 0x82d   : > { %5314 = vrcp.f32 %v2314_v57 }
 0x82f   : > { %v5305_v25 = vpop.eup %5304 }
 0x830   : > { %v2308_v48 = vpop.xlane.xlu0 %2307  ;;  %v7010_v35 = vmul.f32 %v5305_v25, %v6857_v2  ;;  %v5307_v53 = vpop.eup %5306 }
 0x831   : > { %5316 = vrcp.f32 %v2308_v48  ;;  %v7015_v4 = vmul.f32 %v5307_v53, %v6850_v39 }
 0x832   : > { %v2388_v43 = vpack.c.bf16 %v7010_v35, %v7007_v44 }
 0x833   : > { %v5309_v56 = vpop.eup %5308 }
 0x834   : > { %v5311_v51 = vpop.eup %5310  ;;  %v2347_v7 = vpop.xlane.xlu1 %2346  ;;  %v7018_v50 = vmul.f32 %v5309_v56, %v6865_v6 }
 0x835   : > { %v2323_v12 = vpop.xlane.xlu0 %2322  ;;  %v5313_v8 = vpop.eup %5312  ;;  %v7021_v63 = vmul.f32 %v5311_v51, %v6869_v28 }
 0x836   : > { %v2387_v2 = vpack.c.bf16 %v7018_v50, %v7015_v4  ;;  %v7028_v54 = vmul.f32 %v5313_v8, %v6853_v15 }
 0x837   : > { %v5315_v10 = vpop.eup %5314  ;;  %v5077_v58 = vpack.i.bf16 %v7015_v4, %v7021_v63 }
 0x838   : > { %v2341_v23 = vpop.xlane.xlu1 %2340  ;;  %v7031_v39 = vmul.f32 %v5315_v10, %v6876_v11  ;;  %v5081_v36 = vpack.i.bf16 %v7007_v44, %v7028_v54 }
 0x839   : > { %v2317_v0 = vpop.xlane.xlu0 %2316  ;;  %5318 = vrcp.f32 %v2341_v23  ;;  %5078 = vxpose.xlu0.b32.start [1/8] (short) (narrow) %v5077_v58, 16 }
 0x83a   : > { %5320 = vrcp.f32 %v2317_v0  ;;  %v2384_v6 = vpack.c.bf16 %v7031_v39, %v7028_v54  ;;  %v5083_v42 = vpack.i.bf16 %v7010_v35, %v7031_v39  ;;  %v7788_v0 = vmov 0.0   ;;  %v5138_v39 = vld [vmem:[%s7686_s14] sm:$0xff]  }
 0x83b   : > { %v5317_v28 = vpop.eup %5316 }
 0x83c   : > { %v2344_v59 = vpop.xlane.xlu1 %2343  ;;  %v7036_v5 = vmul.f32 %v5317_v28, %v6882_v19 }
 0x83d   : > { %v2320_v14 = vpop.xlane.xlu0 %2319  ;;  %5322 = vrcp.f32 %v2344_v59 }
 0x83e   : > { %5324 = vrcp.f32 %v2320_v14  ;;  %v5079_v15 = vpack.i.bf16 %v7018_v50, %v7036_v5  ;;  %v2383_v11 = vpack.c.bf16 %v7036_v5, %v7021_v63 }
 0x83f   : > { %5326 = vrcp.f32 %v2347_v7 }
 0x840   : > { %5328 = vrcp.f32 %v2323_v12  ;;  %v2350_v26 = vpop.xlane.xlu1 %2349  ;;  %5080 = vxpose.xlu0.b32.cont [2/8] (short) (narrow) %v5079_v15, 16 }
 0x841   : > { %v2326_v38 = vpop.xlane.xlu0 %2325  ;;  %5330 = vrcp.f32 %v2350_v26 }
 0x842   : > { %5332 = vrcp.f32 %v2326_v38 }
 0x843   : > { %v5319_v19 = vpop.eup %5318 }
 0x844   : > { %v5321_v1 = vpop.eup %5320  ;;  %5082 = vxpose.xlu0.b32.cont [3/8] (short) (narrow) %v5081_v36, 16  ;;  %v7050_v31 = vmul.f32 %v5319_v19, %v6890_v24 }
 0x845   : > { %v7047_v20 = vmul.f32 %v5321_v1, %v6896_v32  ;;  %v5136_v1 = vld [vmem:[%s7683_s11] sm:$0xff]  }
 0x847   : > { %v5323_v45 = vpop.eup %5322  ;;  %v5085_v18 = vpack.i.bf16 %v7050_v31, %v7047_v20 }
 0x848   : > { %v5325_v21 = vpop.eup %5324  ;;  %5084 = vxpose.xlu0.b32.cont [4/8] (short) (narrow) %v5083_v42, 16  ;;  %v7053_v13 = vmul.f32 %v5323_v45, %v6898_v3  ;;  %v5137_v42 = vld [vmem:[%s7685_s13] sm:$0xff]   ;;  %v2550_v45 = vpop.permute.xlu1 %2549 }
 0x849   : > { %v5327_v29 = vpop.eup %5326  ;;  %v7056_v46 = vmul.f32 %v5325_v21, %v6904_v60 }
 0x84a   : > { %v5329_v17 = vpop.eup %5328  ;;  %v2389_v32 = vpack.c.bf16 %v7053_v13, %v7050_v31  ;;  %v7065_v3 = vmul.f32 %v5327_v29, %v6888_v27 }
 0x84b   : > { %v5331_v49 = vpop.eup %5330  ;;  %v2385_v24 = vpack.c.bf16 %v7056_v46, %v7047_v20  ;;  %v7071_v60 = vmul.f32 %v5329_v17, %v6886_v47  ;;  %v5087_v25 = vpack.i.bf16 %v7053_v13, %v7056_v46 }
 0x84c   : > { %v5333_v55 = vpop.eup %5332  ;;  %5086 = vxpose.xlu0.b32.cont [5/8] (short) (narrow) %v5085_v18, 16  ;;  %v7068_v57 = vmul.f32 %v5331_v49, %v6906_v34  ;;  %v7088_v34 = vpack.c.bf16 %v6448_v22, %v6431_v62  ;;  %v2555_v21 = vpop.permute.xlu1 %2554 }
 0x84d   : > { %v7074_v37 = vmul.f32 %v5333_v55, %v6912_v52  ;;  %v5089_v27 = vpack.i.bf16 %v7065_v3, %v7071_v60  ;;  %v7787_v52 = vmov 0  }
 0x84e   : > { %v2390_v48 = vpack.c.bf16 %v7068_v57, %v7065_v3 }
 0x84f   : > { %v2386_v53 = vpack.c.bf16 %v7074_v37, %v7071_v60  ;;  %v5091_v47 = vpack.i.bf16 %v7068_v57, %v7074_v37 }
 0x850   : > { %5088 = vxpose.xlu0.b32.cont [6/8] (short) (narrow) %v5087_v25, 16 }
 0x854   : > { %5090 = vxpose.xlu0.b32.cont [7/8] (short) (narrow) %v5089_v27, 16 }
 0x858   : > { %5092 = vxpose.xlu0.b32.end [8/8] (short) (narrow) %v5091_v47, 16 }
 0x881   : > { %3263 = vrot.lane.b32.xlu0 %v7088_v34, %s5497_s0 }
 0x882   : > { %5130 = vset.pattern.permute.xlu0 %v7787_v52 }
 0x8bc   : > { %v5093_v56 = vpop.trf.xlu0 }
 0x8bd   : > { %v5097_v51 = vunpack.i.h.bf16 %v5093_v56  ;;  %v5094_v7 = vunpack.i.l.bf16 %v5093_v56 }
 0x8c0   : > { %v5098_v12 = vpop.trf.xlu0 }
 0x8c1   : > { %v5102_v8 = vunpack.i.h.bf16 %v5098_v12  ;;  %v5099_v10 = vunpack.i.l.bf16 %v5098_v12 }
 0x8c3   : > { %v2455_v58 = vpack.c.bf16 %v5099_v10, %v5094_v7  ;;  %v2456_v23 = vpack.c.bf16 %v5102_v8, %v5097_v51 }
 0x8c5   : > { %4820 = vmatmul.mubr.msk.bf16.vlgmr.msra.gmra.mrb[36].mxu0 %vm1919_vm4, %v2455_v58  ;;  %4832 = vmatmul.mubr.msk.bf16.vlgmr.msra.gmra.mrb[20].mxu1 %vm1919_vm4, %v2456_v23  ;;  %v3142_v58 = vpop.permute.xlu1 %3141 }
 0x8c6   : > { %4837 = vmatprep.mubr.msk.bf16.mxu0 %vm5498_vm3, %v7788_v0  ;;  %4843 = vmatprep.mubr.msk.bf16.mxu1 %vm5498_vm3, %v7788_v0 }
 0x998   : > { %v2494_v62 = vpop.f32.mrb[36].mxu0  ;;  %v2538_v22 = vpop.f32.mrb[20].mxu1 }
 0x999   : > { %v4821_v28 = vpop.f32.mrb[37].mxu0  ;;  %v4833_v59 = vpop.f32.mrb[21].mxu1 }
 0x99a   : > { %v2497_v14 = vpop.f32.mrb[38].mxu0  ;;  %v2541_v15 = vpop.f32.mrb[22].mxu1 }
 0x99b   : > { %v2545_v26 = vpack.c.bf16 %v2497_v14, %v2494_v62  ;;  %v2546_v38 = vpack.c.bf16 %v2541_v15, %v2538_v22  ;;  %v4822_v36 = vpop.f32.mrb[39].mxu0  ;;  %v4834_v19 = vpop.f32.mrb[23].mxu1 }
 0x99d   : > { %4836 = vmatpush3.bf16.msra.mxu0 %v2545_v26  ;;  %4842 = vmatpush3.bf16.msra.mxu1 %v2546_v38 }
 0x99e   : > { %4847 = vmatprep.subr.bf16.mxu0 %v5137_v42 }
 0x9a0   : > { %4838 = vmatmul.mubr.msk.bf16.vlgmr.msra.gmra.mrb[40].mxu0 %vm1695_vm2, %v5136_v1  ;;  %4844 = vmatmul.mubr.msk.bf16.vlgmr.msra.gmra.mrb[24].mxu1 %vm1695_vm2, %v5136_v1 }
 0x9a1   : > { %4855 = vmatprep.mubr.msk.bf16.mxu1 %vm1695_vm2, %v2383_v11  ;;  %4848 = vmatpush3.bf16.msra.mxu0 %v5137_v42 }
 0xa73   : > { %v2599_v29 = vpop.f32.mrb[40].mxu0  ;;  %v2640_v17 = vpop.f32.mrb[24].mxu1 }
 0xa74   : > { %v2600_v18 = vadd.f32 %v2599_v29, %v2550_v45  ;;  %v2641_v49 = vadd.f32 %v2640_v17, %v2550_v45  ;;  %v4839_v55 = vpop.f32.mrb[41].mxu0  ;;  %v4845_v25 = vpop.f32.mrb[25].mxu1 }
 0xa75   : > { %v2602_v27 = vpop.f32.mrb[42].mxu0  ;;  %v2643_v47 = vpop.f32.mrb[26].mxu1 }
 0xa76   : > { %v2647_v52 = vsub.f32 %v2600_v18, %v2494_v62  ;;  %v2649_v63 = vsub.f32 %v2641_v49, %v2538_v22  ;;  %v2603_v5 = vadd.f32 %v2602_v27, %v2555_v21  ;;  %v2644_v11 = vadd.f32 %v2643_v47, %v2555_v21  ;;  %v4840_v56 = vpop.f32.mrb[43].mxu0  ;;  %v4846_v51 = vpop.f32.mrb[27].mxu1 }
 0xa77   : > { %v3144_v22 = vpop.permute.xlu1 %3143 }
 0xa78   : > { %v2648_v7 = vsub.f32 %v2603_v5, %v2497_v14  ;;  %v2650_v12 = vsub.f32 %v2644_v11, %v2541_v15 }
 0xa7a   : > { %v2651_v8 = vpack.c.bf16 %v2648_v7, %v2647_v52  ;;  %v2652_v10 = vpack.c.bf16 %v2650_v12, %v2649_v63 }
 0xa7b   : > { %v3146_v1 = vpop.permute.xlu1 %3145 }
 0xa7c   : > { %4849 = vmatprep.mubr.msk.bf16.mxu0 %vm1695_vm2, %v2651_v8 }
 0xa7d   : > { %4850 = vmatmul.mubr.msk.bf16.vlgmr.msra.gmra.mrb[44].mxu0 %vm1695_vm2, %v2652_v10 }
 0xa7e   : > { %4865 = vmatprep.mubr.msk.bf16.mxu0 %vm1695_vm2, %v2387_v2 }
 0xa7f   : > { %v3148_v4 = vpop.permute.xlu1 %3147 }
 0xa83   : > { %v3199_v44 = vpop.permute.xlu1 %3198 }
 0xa87   : > { %v3201_v35 = vpop.permute.xlu1 %3200 }
 0xa8b   : > { %v3203_v50 = vpop.permute.xlu1 %3202 }
 0xa8f   : > { %v3205_v2 = vpop.permute.xlu1 %3204 }
 0xa93   : > { %v3258_v54 = vpop.permute.xlu1 %3257 }
 0xa97   : > { %v3260_v55 = vpop.permute.xlu1 %3259 }
 0xa9b   : > { %v3350_v5 = vpop.permute.xlu1 %3349 }
 0xa9f   : > { %v3352_v8 = vpop.permute.xlu1 %3351 }
 0xaa3   : > { %v3262_v10 = vpop.permute.xlu1 %3261 }
 0xb50   : > { %v4851_v23 = vpop.f32.mrb[44].mxu0 }
 0xb51   : > { %v2699_v62 = vpop.f32.mrb[45].mxu0  ;;  %v2716_v59 = vmax.f32 %v4851_v23, 0.0 }
 0xb52   : > { %v4852_v28 = vpop.f32.mrb[46].mxu0  ;;  %v2714_v15 = vmax.f32 %v2699_v62, 0.0 }
 0xb53   : > { %v2717_v26 = vmax.f32 %v4852_v28, 0.0  ;;  %v2702_v14 = vpop.f32.mrb[47].mxu0 }
 0xb54   : > { %v2715_v38 = vmax.f32 %v2702_v14, 0.0 }
 0xb55   : > { %v2719_v36 = vpack.c.bf16 %v2717_v26, %v2716_v59  ;;  %v3264_v59 = vpop.permute.xlu0 %3263 }
 0xb56   : > { %v2718_v19 = vpack.c.bf16 %v2715_v38, %v2714_v15 }
 0xb57   : > { %4863 = vmatprep.subr.bf16.mxu0 %v2719_v36 }
 0xb58   : > { %4853 = vmatprep.subr.bf16.mxu1 %v2718_v19  ;;  %4864 = vmatpush3.bf16.msra.mxu0 %v2719_v36 }
 0xb59   : > { %4854 = vmatpush3.bf16.msra.mxu1 %v2718_v19  ;;  %4891 = vmatprep.subr.bf16.mxu0 %v7788_v0 }
 0xb5a   : > { %4873 = vmatprep.subr.bf16.mxu1 %v5138_v39 }
 0xb5b   : > { %4866 = vmatmul.mubr.msk.bf16.vlgmr.msra.gmra.mrb[48].mxu0 %vm1695_vm2, %v2388_v43  ;;  %v7789_v43 = vld [vmem:[#allocation41_spill] sm:$0xff] }
 0xb5c   : > { %4856 = vmatmul.mubr.msk.bf16.vlgmr.msra.gmra.mrb[28].mxu1 %vm1695_vm2, %v2384_v6  ;;  %4869 = vmatprep.mubr.msk.bf16.mxu0 %vm1695_vm2, %v2389_v32 }
 0xb5d   : > { %4892 = vmatpush3.bf16.msra.mxu0 %v3142_v58  ;;  %4859 = vmatprep.mubr.msk.bf16.mxu1 %vm1695_vm2, %v2385_v24 }
 0xb5e   : > { %4893 = vmatprep.subr.bf16.mxu0 %v7788_v0  ;;  %4874 = vmatpush3.bf16.msra.mxu1 %v5138_v39 }
 0xb61   : > { %4894 = vmatpush3.bf16.msra.mxu0 %v3144_v22 }
 0xb62   : > { %4895 = vmatprep.subr.bf16.mxu0 %v7788_v0 }
 0xb63   : > { %4870 = vmatmul.mubr.msk.bf16.gmra.mrb[52].mxu0 %vm1695_vm2, %v2390_v48 }
 0xb64   : > { %4860 = vmatmul.mubr.msk.bf16.gmra.mrb[32].mxu1 %vm1695_vm2, %v2386_v53  ;;  %4899 = vmatprep.mubr.msk.bf16.mxu0 %vm5498_vm3, %v7788_v0 }
 0xb65   : > { %4896 = vmatpush3.bf16.msra.mxu0 %v3146_v1 }
 0xb66   : > { %4897 = vmatprep.subr.bf16.mxu0 %v7788_v0 }
 0xb69   : > { %4898 = vmatpush3.bf16.msra.mxu0 %v3148_v4 }
 0xb6a   : > { %4903 = vmatprep.subr.bf16.mxu0 %v7788_v0 }
 0xb6c   : > { %4900 = vmatmul.mubr.msk.bf16.vlgmr.msra.gmra.mrb[56].mxu0 %vm1919_vm4, %v7789_v43 }
 0xb6d   : > { %4904 = vmatpush3.bf16.msra.mxu0 %v3199_v44  ;;  %4911 = vmatprep.mubr.msk.bf16.mxu0 %vm5498_vm3, %v7788_v0 }
 0xb6e   : > { %4905 = vmatprep.subr.bf16.mxu0 %v7788_v0 }
 0xb71   : > { %4906 = vmatpush3.bf16.msra.mxu0 %v3201_v35 }
 0xb72   : > { %4907 = vmatprep.subr.bf16.mxu0 %v7788_v0 }
 0xb75   : > { %4908 = vmatpush3.bf16.msra.mxu0 %v3203_v50 }
 0xb76   : > { %4909 = vmatprep.subr.bf16.mxu0 %v7788_v0 }
 0xb79   : > { %4910 = vmatpush3.bf16.msra.mxu0 %v3205_v2 }
 0xb7c   : > { %4912 = vmatmul.mubr.msk.bf16.vlgmr.msra.gmra.mrb[60].mxu0 %vm1919_vm4, %v7789_v43 }
 0xb7d   : > { %4917 = vmatprep.mubr.msk.bf16.mxu0 %vm1695_vm2, %v3258_v54 }
 0xc2e   : > { %v4867_v6 = vpop.f32.mrb[48].mxu0 }
 0xc2f   : > { %v4857_v20 = vpop.f32.mrb[28].mxu1  ;;  %v2843_v31 = vpop.f32.mrb[49].mxu0 }
 0xc30   : > { %v2766_v13 = vpop.f32.mrb[29].mxu1  ;;  %v4868_v46 = vpop.f32.mrb[50].mxu0 }
 0xc31   : > { %v2879_v32 = vpack.c.bf16 %v4868_v46, %v4867_v6  ;;  %v4858_v24 = vpop.f32.mrb[30].mxu1  ;;  %v2846_v3 = vpop.f32.mrb[51].mxu0 }
 0xc32   : > { %v2875_v57 = vpack.c.bf16 %v4858_v24, %v4857_v20  ;;  %v2878_v60 = vpack.c.bf16 %v2846_v3, %v2843_v31  ;;  %v2769_v37 = vpop.f32.mrb[31].mxu1 }
 0xc33   : > { %v2874_v48 = vpack.c.bf16 %v2769_v37, %v2766_v13 }
 0xc35   : > { %4875 = vmatprep.mubr.msk.bf16.mxu1 %vm1695_vm2, %v2874_v48 }
 0xc36   : > { %v4871_v53 = vpop.f32.mrb[52].mxu0  ;;  %4876 = vmatmul.mubr.msk.bf16.vlgmr.msra.gmra.mrb[36].mxu1 %vm1695_vm2, %v2875_v57 }
 0xc37   : > { %v4861_v42 = vpop.f32.mrb[32].mxu1  ;;  %v2859_v45 = vpop.f32.mrb[53].mxu0 }
 0xc38   : > { %v2782_v21 = vpop.f32.mrb[33].mxu1  ;;  %v4872_v29 = vpop.f32.mrb[54].mxu0 }
 0xc39   : > { %v2881_v17 = vpack.c.bf16 %v4872_v29, %v4871_v53  ;;  %v4862_v18 = vpop.f32.mrb[34].mxu1  ;;  %v2862_v49 = vpop.f32.mrb[55].mxu0 }
 0xc3a   : > { %v2877_v25 = vpack.c.bf16 %v4862_v18, %v4861_v42  ;;  %v2880_v27 = vpack.c.bf16 %v2862_v49, %v2859_v45  ;;  %v2785_v47 = vpop.f32.mrb[35].mxu1 }
 0xc3b   : > { %v2876_v52 = vpack.c.bf16 %v2785_v47, %v2782_v21 }
 0xc3d   : > { %4879 = vmatprep.mubr.msk.bf16.mxu1 %vm1695_vm2, %v2876_v52 }
 0xc3e   : > { %4880 = vmatmul.mubr.msk.bf16.gmra.mrb[40].mxu1 %vm1695_vm2, %v2877_v25 }
 0xc3f   : > { %v3187_v63 = vpop.f32.mrb[56].mxu0  ;;  %4883 = vmatprep.mubr.msk.bf16.mxu1 %vm1695_vm2, %v2878_v60 }
 0xc40   : > { %v4901_v11 = vpop.f32.mrb[57].mxu0 }
 0xc41   : > { %v3190_v56 = vpop.f32.mrb[58].mxu0 }
 0xc42   : > { %v3251_v51 = vpack.c.bf16 %v3190_v56, %v3187_v63  ;;  %v4902_v7 = vpop.f32.mrb[59].mxu0 }
 0xc44   : > { %v3278_v12 = vsel %vm1695_vm2, %v3251_v51, 0  ;;  %5021 = vmatprep.subr.msk.bf16.mxu0 %vm1695_vm2, %v3251_v51 }
 0xc45   : > { %4916 = vmatpush3.bf16.xpose.msra.mxu0 %v3278_v12 }
 0xc46   : > { %4884 = vmatmul.mubr.msk.bf16.gmra.mrb[44].mxu1 %vm1695_vm2, %v2879_v32  ;;  %4935 = vmatprep.subr.bf16.mxu0 %v7788_v0 }
 0xc47   : > { %4887 = vmatprep.mubr.msk.bf16.mxu1 %vm1695_vm2, %v2880_v27 }
 0xc4c   : > { %4918 = vmatmul.mubr.msk.bf16.vlgmr.msra.gmra.mrb[64].mxu0 %vm1695_vm2, %v3260_v55 }
 0xc4d   : > { %4921 = vmatprep.mubr.msk.bf16.mxu0 %vm1695_vm2, %v3262_v10  ;;  %4936 = vmatpush3.bf16.msra.mxu0 %v6966_v41  ;;  %v3354_v41 = vpop.permute.xlu1 %3353 }
 0xc4e   : > { %4888 = vmatmul.mubr.msk.bf16.gmra.mrb[48].mxu1 %vm1695_vm2, %v2881_v17  ;;  %4937 = vmatprep.subr.bf16.mxu0 %v7788_v0 }
 0xc4f   : > { %v3244_v58 = vpop.f32.mrb[60].mxu0  ;;  %4927 = vmatprep.mubr.msk.bf16.mxu1 %vm1695_vm2, %v3350_v5 }
 0xc50   : > { %v4913_v23 = vpop.f32.mrb[61].mxu0 }
 0xc51   : > { %v3247_v62 = vpop.f32.mrb[62].mxu0  ;;  %4938 = vmatpush3.bf16.msra.mxu0 %v6972_v30  ;;  %v3356_v30 = vpop.permute.xlu1 %3355 }
 0xc52   : > { %v3252_v22 = vpack.c.bf16 %v3247_v62, %v3244_v58  ;;  %v4914_v28 = vpop.f32.mrb[63].mxu0  ;;  %4939 = vmatprep.subr.bf16.mxu0 %v7788_v0 }
 0xc54   : > { %v3370_v26 = vsel %vm1695_vm2, %v3252_v22, 0  ;;  %4922 = vmatmul.mubr.msk.bf16.gmra.mrb[68].mxu0 %vm1695_vm2, %v3264_v59  ;;  %5022 = vmatprep.subr.msk.bf16.mxu1 %vm1695_vm2, %v3252_v22 }
 0xc55   : > { %4926 = vmatpush3.bf16.xpose.msra.mxu1 %v3370_v26  ;;  %4940 = vmatpush3.bf16.msra.mxu0 %v6990_v16 }
 0xc56   : > { %4941 = vmatprep.subr.bf16.mxu0 %v7788_v0  ;;  %4947 = vmatprep.subr.bf16.mxu1 %v7788_v0 }
 0xc57   : > { %4943 = vmatprep.mubr.msk.bf16.mxu0 %vm5498_vm3, %v7788_v0 }
 0xc59   : > { %4942 = vmatpush3.bf16.msra.mxu0 %v7088_v34 }
 0xc5a   : > { %4959 = vmatprep.subr.bf16.mxu0 %v7788_v0 }
 0xc5c   : > { %4928 = vmatmul.mubr.msk.bf16.vlgmr.msra.gmra.mrb[52].mxu1 %vm1695_vm2, %v3352_v8 }
 0xc5d   : > { %4931 = vmatprep.mubr.msk.bf16.mxu1 %vm1695_vm2, %v3354_v41  ;;  %4948 = vmatpush3.bf16.msra.mxu1 %v6978_v61 }
 0xc5e   : > { %4949 = vmatprep.subr.bf16.mxu1 %v7788_v0 }
 0xc61   : > { %4950 = vmatpush3.bf16.msra.mxu1 %v6984_v33 }
 0xc62   : > { %4951 = vmatprep.subr.bf16.mxu1 %v7788_v0 }
 0xc64   : > { %4932 = vmatmul.mubr.msk.bf16.gmra.mrb[56].mxu1 %vm1695_vm2, %v3356_v30 }
 0xc65   : > { %4952 = vmatpush3.bf16.msra.mxu1 %v6996_v9  ;;  %4955 = vmatprep.mubr.msk.bf16.mxu1 %vm5498_vm3, %v7788_v0 }
 0xc66   : > { %4953 = vmatprep.subr.bf16.mxu1 %v7788_v0 }
 0xc69   : > { %4954 = vmatpush3.bf16.msra.mxu1 %v7002_v40 }
 0xc6a   : > { %4965 = vmatprep.subr.bf16.mxu1 %v7788_v0 }
 0xd09   : > { %v7202_v61 = vpop.f32.mrb[36].mxu1 }
 0xd0a   : > { %v7204_v16 = vpop.f32.mrb[37].mxu1 }
 0xd0b   : > { %v7206_v33 = vpop.f32.mrb[38].mxu1 }
 0xd0c   : > { %v7208_v34 = vpop.f32.mrb[39].mxu1 }
 0xd11   : > { %v7210_v14 = vpop.f32.mrb[40].mxu1 }
 0xd12   : > { %v7212_v9 = vpop.f32.mrb[41].mxu1 }
 0xd13   : > { %v7214_v15 = vpop.f32.mrb[42].mxu1 }
 0xd14   : > { %v7216_v38 = vpop.f32.mrb[43].mxu1 }
 0xd19   : > { %v7218_v36 = vpop.f32.mrb[44].mxu1 }
 0xd1a   : > { %v7220_v40 = vpop.f32.mrb[45].mxu1 }
 0xd1b   : > { %v7222_v19 = vpop.f32.mrb[46].mxu1 }
 0xd1c   : > { %v7224_v1 = vpop.f32.mrb[47].mxu1 }
 0xd1f   : > { %v4919_v4 = vpop.f32.mrb[64].mxu0 }
 0xd20   : > { %v3314_v44 = vpop.f32.mrb[65].mxu0  ;;  %v3443_v35 = vsel %vm1695_vm2, %v4919_v4, -inf }
 0xd21   : > { %3444 = vmax.xlane.f32.xlu1 %v3443_v35  ;;  %v4920_v43 = vpop.f32.mrb[66].mxu0  ;;  %v7227_v50 = vpop.f32.mrb[48].mxu1  ;;  %v3437_v6 = vsel %vm1695_vm2, %v3314_v44, -inf }
 0xd22   : > { %v3317_v2 = vpop.f32.mrb[67].mxu0  ;;  %v7229_v54 = vpop.f32.mrb[49].mxu1  ;;  %v3446_v46 = vsel %vm1695_vm2, %v4920_v43, -inf }
 0xd23   : > { %v7231_v39 = vpop.f32.mrb[50].mxu1  ;;  %v3440_v3 = vsel %vm1695_vm2, %v3317_v2, -inf }
 0xd24   : > { %v7234_v20 = vpop.f32.mrb[51].mxu1 }
 0xd25   : > { %3438 = vmax.xlane.f32.xlu1 %v3437_v6 }
 0xd27   : > { %v7236_v31 = vpop.f32.mrb[68].mxu0 }
 0xd28   : > { %v7238_v13 = vpop.f32.mrb[69].mxu0  ;;  %v3455_v63 = vsel %vm1695_vm2, %v7236_v31, -inf }
 0xd29   : > { %3447 = vmax.xlane.f32.xlu1 %v3446_v46  ;;  %v7241_v32 = vpop.f32.mrb[70].mxu0  ;;  %v3449_v37 = vsel %vm1695_vm2, %v7238_v13, -inf }
 0xd2a   : > { %v7243_v24 = vpop.f32.mrb[71].mxu0  ;;  %v3458_v11 = vsel %vm1695_vm2, %v7241_v32, -inf }
 0xd2b   : > { %v3452_v47 = vsel %vm1695_vm2, %v7243_v24, -inf }
 0xd2d   : > { %3441 = vmax.xlane.f32.xlu1 %v3440_v3 }
 0xd2f   : > { %v4929_v57 = vpop.f32.mrb[52].mxu1 }
 0xd30   : > { %v3406_v60 = vpop.f32.mrb[53].mxu1  ;;  %v3467_v45 = vsel %vm1695_vm2, %v4929_v57, -inf }
 0xd31   : > { %3450 = vmax.xlane.f32.xlu1 %v3449_v37  ;;  %v7248_v48 = vpop.f32.mrb[54].mxu1  ;;  %v3461_v53 = vsel %vm1695_vm2, %v3406_v60, -inf }
 0xd32   : > { %3462 = vmax.xlane.f32.xlu0 %v3461_v53  ;;  %v7251_v42 = vpop.f32.mrb[55].mxu1  ;;  %v3470_v17 = vsel %vm1695_vm2, %v7248_v48, -inf }
 0xd33   : > { %v3464_v25 = vsel %vm1695_vm2, %v7251_v42, -inf }
 0xd35   : > { %3468 = vmax.xlane.f32.xlu1 %v3467_v45 }
 0xd37   : > { %v7254_v21 = vpop.f32.mrb[56].mxu1 }
 0xd38   : > { %v7256_v29 = vpop.f32.mrb[57].mxu1  ;;  %v3479_v18 = vsel %vm1695_vm2, %v7254_v21, -inf }
 0xd39   : > { %3471 = vmax.xlane.f32.xlu1 %v3470_v17  ;;  %3480 = vmax.xlane.f32.xlu0 %v3479_v18  ;;  %v7262_v49 = vpop.f32.mrb[58].mxu1  ;;  %v3473_v27 = vsel %vm1695_vm2, %v7256_v29, -inf }
 0xd3a   : > { %v7264_v55 = vpop.f32.mrb[59].mxu1  ;;  %v3482_v5 = vsel %vm1695_vm2, %v7262_v49, -inf }
 0xd3b   : > { %v3476_v52 = vsel %vm1695_vm2, %v7264_v55, -inf }
 0xd3d   : > { %3465 = vmax.xlane.f32.xlu1 %v3464_v25  ;;  %3474 = vmax.xlane.f32.xlu0 %v3473_v27 }
 0xd41   : > { %3453 = vmax.xlane.f32.xlu1 %v3452_v47  ;;  %3477 = vmax.xlane.f32.xlu0 %v3476_v52 }
 0xd45   : > { %3456 = vmax.xlane.f32.xlu1 %v3455_v63  ;;  %3483 = vmax.xlane.f32.xlu0 %v3482_v5 }
 0xd49   : > { %3459 = vmax.xlane.f32.xlu1 %v3458_v11 }
 0xdae   : > { %v3445_v56 = vpop.xlane.xlu1 %3444 }
 0xdaf   : > { %v3487_v51 = vsub.f32 %v4919_v4, %v3445_v56 }
 0xdb1   : > { %v3505_v7 = vmul.f32 1.442695, %v3487_v51 }
 0xdb2   : > { %v3439_v12 = vpop.xlane.xlu1 %3438 }
 0xdb3   : > { %5334 = vpow2.f32 %v3505_v7  ;;  %v3485_v8 = vsub.f32 %v3314_v44, %v3439_v12 }
 0xdb5   : > { %v3501_v10 = vmul.f32 1.442695, %v3485_v8 }
 0xdb6   : > { %v3448_v58 = vpop.xlane.xlu1 %3447 }
 0xdb7   : > { %5336 = vpow2.f32 %v3501_v10  ;;  %v3488_v23 = vsub.f32 %v4920_v43, %v3448_v58 }
 0xdb9   : > { %v3507_v62 = vmul.f32 1.442695, %v3488_v23 }
 0xdba   : > { %v3442_v22 = vpop.xlane.xlu1 %3441 }
 0xdbb   : > { %5338 = vpow2.f32 %v3507_v62  ;;  %v3486_v28 = vsub.f32 %v3317_v2, %v3442_v22 }
 0xdbd   : > { %v7280_v59 = vpop.eup %5334  ;;  %v3503_v26 = vmul.f32 1.442695, %v3486_v28 }
 0xdbe   : > { %v3451_v41 = vpop.xlane.xlu1 %3450  ;;  %v3539_v30 = vsel %vm1695_vm2, %v7280_v59, 0.0 }
 0xdbf   : > { %5340 = vpow2.f32 %v3503_v26  ;;  %v3463_v4 = vpop.xlane.xlu0 %3462  ;;  %3540 = vadd.xlane.f32.xlu1 %v3539_v30 }
 0xdc0   : > { %v3493_v44 = vsub.f32 %v3406_v60, %v3463_v4 }
 0xdc1   : > { %v7284_v35 = vpop.eup %5336 }
 0xdc2   : > { %v3469_v6 = vpop.xlane.xlu1 %3468  ;;  %v3533_v43 = vsel %vm1695_vm2, %v7284_v35, 0.0  ;;  %v3517_v3 = vmul.f32 1.442695, %v3493_v44 }
 0xdc3   : > { %v3495_v46 = vsub.f32 %v4929_v57, %v3469_v6  ;;  %3534 = vadd.xlane.f32.xlu1 %v3533_v43 }
 0xdc5   : > { %v7288_v2 = vpop.eup %5338  ;;  %v3521_v37 = vmul.f32 1.442695, %v3495_v46 }
 0xdc6   : > { %v3472_v53 = vpop.xlane.xlu1 %3471  ;;  %v3481_v45 = vpop.xlane.xlu0 %3480  ;;  %v3542_v17 = vsel %vm1695_vm2, %v7288_v2, 0.0 }
 0xdc7   : > { %5342 = vpow2.f32 %v3521_v37  ;;  %v3496_v18 = vsub.f32 %v7248_v48, %v3472_v53  ;;  %3543 = vadd.xlane.f32.xlu1 %v3542_v17  ;;  %v3499_v63 = vsub.f32 %v7254_v21, %v3481_v45  ;;  %v3489_v48 = vsub.f32 %v7238_v13, %v3451_v41 }
 0xdc8   : > { %5344 = vpow2.f32 %v3517_v3 }
 0xdc9   : > { %v7293_v60 = vpop.eup %5340  ;;  %v3523_v25 = vmul.f32 1.442695, %v3496_v18  ;;  %v3529_v7 = vmul.f32 1.442695, %v3499_v63  ;;  %v3509_v21 = vmul.f32 1.442695, %v3489_v48 }
 0xdca   : > { %v3466_v27 = vpop.xlane.xlu1 %3465  ;;  %v3475_v57 = vpop.xlane.xlu0 %3474  ;;  %v3536_v47 = vsel %vm1695_vm2, %v7293_v60, 0.0  ;;  %v3100_v48 = vld [vmem:[%s7688_s16 + $0x8] sm:$0xff] }
 0xdcb   : > { %v3494_v52 = vsub.f32 %v7251_v42, %v3466_v27  ;;  %3537 = vadd.xlane.f32.xlu1 %v3536_v47  ;;  %5346 = vpow2.f32 %v3523_v25  ;;  %v3497_v12 = vsub.f32 %v7256_v29, %v3475_v57 }
 0xdcd   : > { %v3519_v5 = vmul.f32 1.442695, %v3494_v52  ;;  %v3525_v13 = vmul.f32 1.442695, %v3497_v12 }
 0xdce   : > { %v3454_v11 = vpop.xlane.xlu1 %3453  ;;  %v3478_v56 = vpop.xlane.xlu0 %3477 }
 0xdcf   : > { %5348 = vpow2.f32 %v3519_v5  ;;  %v3490_v23 = vsub.f32 %v7243_v24, %v3454_v11  ;;  %v3498_v62 = vsub.f32 %v7264_v55, %v3478_v56  ;;  %v3099_v56 = vld [vmem:[%s7688_s16] sm:$0xff] }
 0xdd0   : > { %5350 = vpow2.f32 %v3529_v7  ;;  %v7790_v7 = vld [vmem:[#allocation9_spill] sm:$0xff] }
 0xdd1   : > { %v7300_v51 = vpop.eup %5342  ;;  %v3527_v24 = vmul.f32 1.442695, %v3498_v62  ;;  %v3009_v12 = vadd.f32 %v7204_v16, %v7790_v7  ;;  %v7794_v62 = vld [vmem:[#allocation13_spill] sm:$0xff] }
 0xdd2   : > { %v3457_v8 = vpop.xlane.xlu1 %3456  ;;  %v3563_v10 = vsel %vm1695_vm2, %v7300_v51, 0.0  ;;  %v7305_v42 = vpop.eup %5344 }
 0xdd3   : > { %v3491_v58 = vsub.f32 %v7236_v31, %v3457_v8  ;;  %3564 = vadd.xlane.f32.xlu0 %v3563_v10  ;;  %v3484_v28 = vpop.xlane.xlu0 %3483  ;;  %v3557_v29 = vsel %vm1695_vm2, %v7305_v42, 0.0  ;;  %v3511_v31 = vmul.f32 1.442695, %v3490_v23  ;;  %v7791_v8 = vld [vmem:[#allocation10_spill] sm:$0xff]  ;;  %v7793_v23 = vld [vmem:[#allocation12_spill] sm:$0xff] }
 0xdd4   : > { %v3500_v30 = vsub.f32 %v7262_v49, %v3484_v28  ;;  %v3010_v10 = vadd.f32 %v7208_v34, %v7791_v8  ;;  %v7795_v28 = vld [vmem:[#allocation14_spill] sm:$0xff] }
 0xdd5   : > { %v3513_v22 = vmul.f32 1.442695, %v3491_v58  ;;  %v7312_v41 = vpop.eup %5346  ;;  %v7792_v58 = vld [vmem:[#allocation11_spill] sm:$0xff]  ;;  %v3014_v16 = vadd.f32 %v7216_v38, %v7795_v28 }
 0xdd6   : > { %v3460_v26 = vpop.xlane.xlu1 %3459  ;;  %v3566_v55 = vsel %vm1695_vm2, %v7312_v41, 0.0  ;;  %v3531_v6 = vmul.f32 1.442695, %v3500_v30 }
 0xdd7   : > { %5352 = vpow2.f32 %v3513_v22  ;;  %3558 = vadd.xlane.f32.xlu0 %v3557_v29  ;;  %v3492_v4 = vsub.f32 %v7241_v32, %v3460_v26  ;;  %v3013_v22 = vadd.f32 %v7212_v9, %v7794_v62  ;;  %v7796_v26 = vld [vmem:[#allocation15_spill] sm:$0xff]  ;;  %v7797_v29 = vld [vmem:[#allocation16_spill] sm:$0xff] }
 0xdd8   : > { %5354 = vpow2.f32 %v3509_v21  ;;  %v3011_v21 = vadd.f32 %v7202_v61, %v7792_v58  ;;  %v3015_v34 = vadd.f32 %v7210_v14, %v7796_v26  ;;  %v3016_v61 = vadd.f32 %v7214_v15, %v7797_v29 }
 0xdd9   : > { %5356 = vpow2.f32 %v3525_v13  ;;  %v7318_v44 = vpop.eup %5348  ;;  %v3515_v43 = vmul.f32 1.442695, %v3492_v4  ;;  %v3012_v13 = vadd.f32 %v7206_v33, %v7793_v23 }
 0xdda   : > { %5358 = vpow2.f32 %v3511_v31  ;;  %v3560_v46 = vsel %vm1695_vm2, %v7318_v44, 0.0  ;;  %v7322_v3 = vpop.eup %5350 }
 0xddb   : > { %3567 = vadd.xlane.f32.xlu0 %v3566_v55  ;;  %5360 = vpow2.f32 %v3527_v24  ;;  %v3575_v53 = vsel %vm1695_vm2, %v7322_v3, 0.0 }
 0xddc   : > { %5362 = vpow2.f32 %v3531_v6 }
 0xddd   : > { %5364 = vpow2.f32 %v3515_v43 }
 0xddf   : > { %3561 = vadd.xlane.f32.xlu0 %v3560_v46 }
 0xde1   : > { %v7324_v49 = vpop.eup %5352 }
 0xde2   : > { %v7326_v32 = vpop.eup %5354  ;;  %v3551_v37 = vsel %vm1695_vm2, %v7324_v49, 0.0 }
 0xde3   : > { %v7332_v45 = vpop.eup %5356  ;;  %3552 = vadd.xlane.f32.xlu1 %v3551_v37  ;;  %3576 = vadd.xlane.f32.xlu0 %v3575_v53  ;;  %v3545_v18 = vsel %vm1695_vm2, %v7326_v32, 0.0 }
 0xde4   : > { %v7334_v17 = vpop.eup %5358  ;;  %v3569_v25 = vsel %vm1695_vm2, %v7332_v45, 0.0 }
 0xde5   : > { %v7340_v27 = vpop.eup %5360  ;;  %v3548_v47 = vsel %vm1695_vm2, %v7334_v17, 0.0 }
 0xde6   : > { %v7342_v57 = vpop.eup %5362  ;;  %v3572_v52 = vsel %vm1695_vm2, %v7340_v27, 0.0 }
 0xde7   : > { %3546 = vadd.xlane.f32.xlu1 %v3545_v18  ;;  %3570 = vadd.xlane.f32.xlu0 %v3569_v25  ;;  %v7348_v63 = vpop.eup %5364  ;;  %v3578_v11 = vsel %vm1695_vm2, %v7342_v57, 0.0 }
 0xde8   : > { %v3554_v5 = vsel %vm1695_vm2, %v7348_v63, 0.0 }
 0xdeb   : > { %3549 = vadd.xlane.f32.xlu1 %v3548_v47  ;;  %3573 = vadd.xlane.f32.xlu0 %v3572_v52 }
 0xdef   : > { %3555 = vadd.xlane.f32.xlu1 %v3554_v5  ;;  %3579 = vadd.xlane.f32.xlu0 %v3578_v11 }
 0xe05   : > { %3779 = vperm.xlu0 %5130, %v3099_v56  }
 0xe09   : > { %3784 = vperm.xlu0 %5130, %v3100_v48  }
 0xe27   : > { %3025 = vxpose.xlu0.b32.start [1/8] (short) (narrow) %v3009_v12, 32 }
 0xe2b   : > { %3026 = vxpose.xlu0.b32.cont [2/8] (short) (narrow) %v3010_v10, 32 }
 0xe2f   : > { %3027 = vxpose.xlu0.b32.cont [3/8] (short) (narrow) %v3011_v21, 32 }
 0xe33   : > { %3028 = vxpose.xlu0.b32.cont [4/8] (short) (narrow) %v3012_v13, 32 }
 0xe37   : > { %3029 = vxpose.xlu0.b32.cont [5/8] (short) (narrow) %v3013_v22, 32 }
 0xe3b   : > { %3030 = vxpose.xlu0.b32.cont [6/8] (short) (narrow) %v3014_v16, 32 }
 0xe3f   : > { %3031 = vxpose.xlu0.b32.cont [7/8] (short) (narrow) %v3015_v34, 32 }
 0xe43   : > { %3032 = vxpose.xlu0.b32.end [8/8] (short) (narrow) %v3016_v61, 32 }
 0xe4c   : > { %v3541_v31 = vpop.xlane.xlu1 %3540 }
 0xe4d   : > { %5366 = vrcp.f32 %v3541_v31 }
 0xe50   : > { %v3535_v30 = vpop.xlane.xlu1 %3534 }
 0xe54   : > { %v3544_v33 = vpop.xlane.xlu1 %3543 }
 0xe55   : > { %5368 = vrcp.f32 %v3544_v33 }
 0xe56   : > { %5370 = vrcp.f32 %v3535_v30 }
 0xe57   : > { %v5367_v24 = vpop.eup %5366 }
 0xe58   : > { %v3538_v9 = vpop.xlane.xlu1 %3537  ;;  %v7377_v55 = vmul.f32 %v5367_v24, %v7280_v59 }
 0xe59   : > { %5372 = vrcp.f32 %v3538_v9 }
 0xe5f   : > { %v5369_v4 = vpop.eup %5368 }
 0xe60   : > { %v3565_v38 = vpop.xlane.xlu0 %3564  ;;  %v7380_v14 = vmul.f32 %v5369_v4, %v7288_v2  ;;  %v5371_v6 = vpop.eup %5370 }
 0xe61   : > { %v7385_v37 = vmul.f32 %v5371_v6, %v7284_v35 }
 0xe62   : > { %v3614_v15 = vpack.c.bf16 %v7380_v14, %v7377_v55 }
 0xe63   : > { %v5373_v43 = vpop.eup %5372 }
 0xe64   : > { %v3559_v46 = vpop.xlane.xlu0 %3558  ;;  %v7388_v53 = vmul.f32 %v5373_v43, %v7293_v60 }
 0xe65   : > { %5374 = vrcp.f32 %v3559_v46 }
 0xe66   : > { %v3613_v59 = vpack.c.bf16 %v7388_v53, %v7385_v37  ;;  %5376 = vrcp.f32 %v3565_v38 }
 0xe68   : > { %v3568_v18 = vpop.xlane.xlu0 %3567 }
 0xe69   : > { %5378 = vrcp.f32 %v3568_v18 }
 0xe6c   : > { %v3562_v2 = vpop.xlane.xlu0 %3561 }
 0xe6d   : > { %5380 = vrcp.f32 %v3562_v2  ;;  %v7799_v2 = vld [vmem:[#allocation18_spill] sm:$0xff] }
 0xe6f   : > { %v5375_v25 = vpop.eup %5374 }
 0xe70   : > { %v3553_v47 = vpop.xlane.xlu1 %3552  ;;  %v3577_v52 = vpop.xlane.xlu0 %3576  ;;  %v7393_v5 = vmul.f32 %v5375_v25, %v7305_v42  ;;  %v3018_v25 = vadd.f32 %v7224_v1, %v7799_v2 }
 0xe71   : > { %v5377_v35 = vpop.eup %5376 }
 0xe72   : > { %v5104_v60 = vpack.i.bf16 %v7393_v5, %v7385_v37  ;;  %v7398_v7 = vmul.f32 %v5377_v35, %v7300_v51  ;;  %v7801_v35 = vld [vmem:[#allocation20_spill] sm:$0xff] }
 0xe73   : > { %v5379_v11 = vpop.eup %5378 }
 0xe74   : > { %v3547_v56 = vpop.xlane.xlu1 %3546  ;;  %5105 = vxpose.xlu1.b32.start [1/8] (short) (narrow) %v5104_v60, 16  ;;  %v3571_v48 = vpop.xlane.xlu0 %3570  ;;  %v7401_v12 = vmul.f32 %v5379_v11, %v7312_v41  ;;  %v5108_v62 = vpack.i.bf16 %v7398_v7, %v7377_v55  ;;  %v3020_v60 = vadd.f32 %v7222_v19, %v7801_v35  ;;  %v7802_v11 = vld [vmem:[#allocation21_spill] sm:$0xff] }
 0xe75   : > { %5382 = vrcp.f32 %v3547_v56  ;;  %v3021_v56 = vadd.f32 %v7229_v54, %v7802_v11  ;;  %v5141_v55 = vld [vmem:[%s7690_s18] sm:$0xff]  }
 0xe76   : > { %5384 = vrcp.f32 %v3571_v48  ;;  %v3618_v42 = vpack.c.bf16 %v7401_v12, %v7398_v7  ;;  %v5110_v28 = vpack.i.bf16 %v7401_v12, %v7380_v14  ;;  %v7803_v48 = vld [vmem:[#allocation22_spill] sm:$0xff] }
 0xe77   : > { %v5381_v8 = vpop.eup %5380 }
 0xe78   : > { %v3550_v10 = vpop.xlane.xlu1 %3549  ;;  %v3574_v58 = vpop.xlane.xlu0 %3573  ;;  %v7406_v21 = vmul.f32 %v5381_v8, %v7318_v44  ;;  %v7804_v8 = vld [vmem:[#allocation23_spill] sm:$0xff] }
 0xe79   : > { %5386 = vrcp.f32 %v3550_v10  ;;  %v3023_v1 = vadd.f32 %v7227_v50, %v7804_v8  ;;  %v7805_v10 = vld [vmem:[#allocation24_spill] sm:$0xff] }
 0xe7a   : > { %5388 = vrcp.f32 %v3574_v58  ;;  %v5106_v51 = vpack.i.bf16 %v7406_v21, %v7388_v53  ;;  %v3617_v41 = vpack.c.bf16 %v7406_v21, %v7393_v5 }
 0xe7b   : > { %5390 = vrcp.f32 %v3553_v47  ;;  %v7800_v47 = vld [vmem:[#allocation19_spill] sm:$0xff] }
 0xe7c   : > { %5392 = vrcp.f32 %v3577_v52  ;;  %v3556_v23 = vpop.xlane.xlu1 %3555  ;;  %5107 = vxpose.xlu1.b32.cont [2/8] (short) (narrow) %v5106_v51, 16  ;;  %v3580_v13 = vpop.xlane.xlu0 %3579  ;;  %v3019_v52 = vadd.f32 %v7218_v36, %v7800_v47  ;;  %v3024_v36 = vadd.f32 %v7231_v39, %v7805_v10 }
 0xe7d   : > { %5394 = vrcp.f32 %v3556_v23 }
 0xe7e   : > { %5396 = vrcp.f32 %v3580_v13 }
 0xe7f   : > { %v5383_v44 = vpop.eup %5382 }
 0xe80   : > { %v5385_v22 = vpop.eup %5384  ;;  %5109 = vxpose.xlu1.b32.cont [3/8] (short) (narrow) %v5108_v62, 16  ;;  %v7417_v16 = vmul.f32 %v5383_v44, %v7326_v32 }
 0xe81   : > { %v7420_v26 = vmul.f32 %v5385_v22, %v7332_v45 }
 0xe83   : > { %v5387_v34 = vpop.eup %5386  ;;  %v5112_v9 = vpack.i.bf16 %v7420_v26, %v7417_v16 }
 0xe84   : > { %v5389_v29 = vpop.eup %5388  ;;  %5111 = vxpose.xlu1.b32.cont [4/8] (short) (narrow) %v5110_v28, 16  ;;  %v7423_v61 = vmul.f32 %v5387_v34, %v7334_v17 }
 0xe85   : > { %v5391_v31 = vpop.eup %5390  ;;  %v7426_v30 = vmul.f32 %v5389_v29, %v7340_v27 }
 0xe86   : > { %v5393_v33 = vpop.eup %5392  ;;  %v3615_v32 = vpack.c.bf16 %v7423_v61, %v7417_v16  ;;  %v7435_v17 = vmul.f32 %v5391_v31, %v7324_v49 }
 0xe87   : > { %v5395_v24 = vpop.eup %5394  ;;  %v3619_v45 = vpack.c.bf16 %v7426_v30, %v7420_v26  ;;  %v7441_v27 = vmul.f32 %v5393_v33, %v7322_v3  ;;  %v5114_v43 = vpack.i.bf16 %v7426_v30, %v7423_v61 }
 0xe88   : > { %v5397_v4 = vpop.eup %5396  ;;  %5113 = vxpose.xlu1.b32.cont [5/8] (short) (narrow) %v5112_v9, 16  ;;  %v7438_v38 = vmul.f32 %v5395_v24, %v7348_v63  ;;  %v5139_v24 = vld [vmem:[%s7687_s15] sm:$0xff]  }
 0xe89   : > { %v7444_v6 = vmul.f32 %v5397_v4, %v7342_v57  ;;  %v5116_v49 = vpack.i.bf16 %v7441_v27, %v7435_v17  ;;  %v7798_v57 = vld [vmem:[#allocation17_spill] sm:$0xff]  ;;  %v3780_v4 = vpop.permute.xlu0 %3779 }
 0xe8a   : > { %v3616_v46 = vpack.c.bf16 %v7438_v38, %v7435_v17  ;;  %v3017_v63 = vadd.f32 %v7220_v40, %v7798_v57  ;;  %v3022_v40 = vadd.f32 %v7234_v20, %v7803_v48 }
 0xe8b   : > { %v3620_v18 = vpack.c.bf16 %v7444_v6, %v7441_v27  ;;  %v5118_v3 = vpack.i.bf16 %v7444_v6, %v7438_v38 }
 0xe8c   : > { %5115 = vxpose.xlu1.b32.cont [6/8] (short) (narrow) %v5114_v43, 16 }
 0xe8d   : > { %v3785_v43 = vpop.permute.xlu0 %3784 }
 0xe90   : > { %5117 = vxpose.xlu1.b32.cont [7/8] (short) (narrow) %v5116_v49, 16 }
 0xe94   : > { %5119 = vxpose.xlu1.b32.end [8/8] (short) (narrow) %v5118_v3, 16 }
 0xe98   : > { %3057 = vxpose.xlu1.b32.start [1/8] (short) (narrow) %v3017_v63, 32 }
 0xe9c   : > { %3058 = vxpose.xlu1.b32.cont [2/8] (short) (narrow) %v3018_v25, 32 }
 0xea0   : > { %3059 = vxpose.xlu1.b32.cont [3/8] (short) (narrow) %v3019_v52, 32 }
 0xea4   : > { %3060 = vxpose.xlu1.b32.cont [4/8] (short) (narrow) %v3020_v60, 32 }
 0xea8   : > { %3061 = vxpose.xlu1.b32.cont [5/8] (short) (narrow) %v3021_v56, 32 }
 0xeac   : > { %3062 = vxpose.xlu1.b32.cont [6/8] (short) (narrow) %v3022_v40, 32 }
 0xeb0   : > { %3063 = vxpose.xlu1.b32.cont [7/8] (short) (narrow) %v3023_v1, 32 }
 0xeb4   : > { %3064 = vxpose.xlu1.b32.end [8/8] (short) (narrow) %v3024_v36, 32 }
 0xef8   : > { %v5120_v58 = vpop.trf.xlu1 }
 0xef9   : > { %v5124_v51 = vunpack.i.h.bf16 %v5120_v58  ;;  %v5121_v19 = vunpack.i.l.bf16 %v5120_v58 }
 0xefc   : > { %v5125_v23 = vpop.trf.xlu1 }
 0xefd   : > { %v5129_v13 = vunpack.i.h.bf16 %v5125_v23  ;;  %v5126_v62 = vunpack.i.l.bf16 %v5125_v23 }
 0xeff   : > { %v3685_v54 = vpack.c.bf16 %v5126_v62, %v5121_v19  ;;  %v3686_v44 = vpack.c.bf16 %v5129_v13, %v5124_v51 }
 0xf01   : > { %4944 = vmatmul.mubr.msk.bf16.vlgmr.msra.gmra.mrb[72].mxu0 %vm1919_vm4, %v3685_v54  ;;  %4956 = vmatmul.mubr.msk.bf16.vlgmr.msra.gmra.mrb[60].mxu1 %vm1919_vm4, %v3686_v44 }
 0xf02   : > { %4961 = vmatprep.mubr.msk.bf16.mxu0 %vm5498_vm3, %v7788_v0  ;;  %4967 = vmatprep.mubr.msk.bf16.mxu1 %vm5498_vm3, %v7788_v0  ;;  %v5140_v0 = vld [vmem:[%s7689_s17] sm:$0xff]  }
 0xfd4   : > { %v3724_v50 = vpop.f32.mrb[72].mxu0  ;;  %v3768_v39 = vpop.f32.mrb[60].mxu1 }
 0xfd5   : > { %v4945_v20 = vpop.f32.mrb[73].mxu0  ;;  %v4957_v22 = vpop.f32.mrb[61].mxu1 }
 0xfd6   : > { %v3727_v28 = vpop.f32.mrb[74].mxu0  ;;  %v3771_v34 = vpop.f32.mrb[62].mxu1 }
 0xfd7   : > { %v3775_v29 = vpack.c.bf16 %v3727_v28, %v3724_v50  ;;  %v3776_v31 = vpack.c.bf16 %v3771_v34, %v3768_v39  ;;  %v4946_v33 = vpop.f32.mrb[75].mxu0  ;;  %v4958_v9 = vpop.f32.mrb[63].mxu1 }
 0xfd8   : > { %v3041_v22 = vpop.trf.xlu0 }
 0xfd9   : > { %4960 = vmatpush3.bf16.msra.mxu0 %v3775_v29  ;;  %4966 = vmatpush3.bf16.msra.mxu1 %v3776_v31  ;;  %3089 = vst.msk [vmem:[%s7537_s28] sm:$0xff] %vm1919_vm4, %v3041_v22 }
 0xfda   : > { %4971 = vmatprep.subr.bf16.mxu0 %v5140_v0 }
 0xfdc   : > { %4962 = vmatmul.mubr.msk.bf16.vlgmr.msra.gmra.mrb[76].mxu0 %vm1695_vm2, %v5139_v24  ;;  %4968 = vmatmul.mubr.msk.bf16.vlgmr.msra.gmra.mrb[64].mxu1 %vm1695_vm2, %v5139_v24 }
 0xfdd   : > { %4979 = vmatprep.mubr.msk.bf16.mxu1 %vm1695_vm2, %v3613_v59  ;;  %4972 = vmatpush3.bf16.msra.mxu0 %v5140_v0 }
0x10af   : > { %v3829_v49 = vpop.f32.mrb[76].mxu0  ;;  %v3870_v3 = vpop.f32.mrb[64].mxu1 }
0x10b0   : > { %v3830_v57 = vadd.f32 %v3829_v49, %v3780_v4  ;;  %v3871_v63 = vadd.f32 %v3870_v3, %v3780_v4  ;;  %v4963_v2 = vpop.f32.mrb[77].mxu0  ;;  %v4969_v25 = vpop.f32.mrb[65].mxu1 }
0x10b1   : > { %v3832_v47 = vpop.f32.mrb[78].mxu0  ;;  %v3873_v52 = vpop.f32.mrb[66].mxu1 }
0x10b2   : > { %v3877_v35 = vsub.f32 %v3830_v57, %v3724_v50  ;;  %v3879_v37 = vsub.f32 %v3871_v63, %v3768_v39  ;;  %v3833_v53 = vadd.f32 %v3832_v47, %v3785_v43  ;;  %v3874_v59 = vadd.f32 %v3873_v52, %v3785_v43  ;;  %v4964_v60 = vpop.f32.mrb[79].mxu0  ;;  %v4970_v11 = vpop.f32.mrb[67].mxu1  ;;  %v7806_v43 = vld [vmem:[#allocation25_spill] sm:$0xff]  ;;  %v7807_v63 = vld [vmem:[#allocation26_spill] sm:$0xff]  ;;  %v7808_v52 = vld [vmem:[#allocation27_spill] sm:$0xff] }
0x10b4   : > { %v3878_v56 = vsub.f32 %v3833_v53, %v3727_v28  ;;  %v3880_v48 = vsub.f32 %v3874_v59, %v3771_v34  ;;  %v3073_v28 = vpop.trf.xlu1  ;;  %v3042_v34 = vpop.trf.xlu0  ;;  %v7809_v59 = vld [vmem:[#allocation28_spill] sm:$0xff] }
0x10b5   : > { %3093 = vst.msk [vmem:[%s7537_s28 + $0x20] sm:$0xff] %vm1919_vm4, %v3073_v28  ;;  %3090 = vst.msk [vmem:[%s7537_s28 + $0x8] sm:$0xff] %vm1919_vm4, %v3042_v34 }
0x10b6   : > { %v3881_v40 = vpack.c.bf16 %v3878_v56, %v3877_v35  ;;  %v3882_v8 = vpack.c.bf16 %v3880_v48, %v3879_v37  ;;  %v7810_v48 = vld [vmem:[#allocation33_spill] sm:$0xff] }
0x10b8   : > { %4973 = vmatprep.mubr.msk.bf16.mxu0 %vm1695_vm2, %v3881_v40  ;;  %v3074_v29 = vpop.trf.xlu1  ;;  %v3043_v31 = vpop.trf.xlu0 }
0x10b9   : > { %4974 = vmatmul.mubr.msk.bf16.vlgmr.msra.gmra.mrb[80].mxu0 %vm1695_vm2, %v3882_v8  ;;  %3094 = vst.msk [vmem:[%s7537_s28 + $0x28] sm:$0xff] %vm1919_vm4, %v3074_v29  ;;  %3091 = vst.msk [vmem:[%s7537_s28 + $0x10] sm:$0xff] %vm1919_vm4, %v3043_v31  ;;  %v7811_v8 = vld [vmem:[#allocation29_spill] sm:$0xff] }
0x10ba   : > { %4989 = vmatprep.mubr.msk.bf16.mxu0 %vm1695_vm2, %v3617_v41 }
0x10bc   : > { %v3075_v33 = vpop.trf.xlu1  ;;  %v3044_v9 = vpop.trf.xlu0 }
0x10bd   : > { %3095 = vst.msk [vmem:[%s7537_s28 + $0x30] sm:$0xff] %vm1919_vm4, %v3075_v33  ;;  %3092 = vst.msk [vmem:[%s7537_s28 + $0x18] sm:$0xff] %vm1919_vm4, %v3044_v9 }
0x10c0   : > { %v3076_v24 = vpop.trf.xlu1 }
0x10c1   : > { %3096 = vst.msk [vmem:[%s7537_s28 + $0x38] sm:$0xff] %vm1919_vm4, %v3076_v24  ;;  %s5500_s28 = smov [#allocation2]  }
0x10c2   : > { %s5402_s7 = sshll.u32 %s5500_s28, 4  ;;  %s5403_s7 = int_to_ptr.vmem [resolvable:$false] %s5402_s7 }
0x10c3   : > { %s5404_s8 = scalar_lea.vmem %s5403_s7, 2048  ;;  %p5405_p0 = scmp.lt.s32.totalorder %s7577_s27, %s5403_s7 }
0x10c4   : > { %p5406_p1 = scmp.lt.s32.totalorder %s5404_s8, %s5398_s6 }
0x10c6   : > { %p5407_p2 = por %p5406_p1, %p5405_p0 }
0x10c8   : > { %p5408_p3 = pnand %p5407_p2, %p5401_p13 }
0x118c   : > { %v4975_v1 = vpop.f32.mrb[80].mxu0 }
0x118d   : > { %v3929_v10 = vpop.f32.mrb[81].mxu0  ;;  %v3946_v58 = vmax.f32 %v4975_v1, 0.0 }
0x118e   : > { %v4976_v36 = vpop.f32.mrb[82].mxu0  ;;  %v3944_v23 = vmax.f32 %v3929_v10, 0.0 }
0x118f   : > { %v3947_v51 = vmax.f32 %v4976_v36, 0.0  ;;  %v3932_v19 = vpop.f32.mrb[83].mxu0 }
0x1190   : > { %v3945_v13 = vmax.f32 %v3932_v19, 0.0  ;;  %v7813_v19 = vld [vmem:[#allocation30_spill] sm:$0xff] }
0x1191   : > { %v3949_v62 = vpack.c.bf16 %v3947_v51, %v3946_v58  ;;  %v7812_v58 = vld [vmem:[#allocation34_spill] sm:$0xff] }
0x1192   : > { %v3948_v54 = vpack.c.bf16 %v3945_v13, %v3944_v23 }
0x1193   : > { %4987 = vmatprep.subr.bf16.mxu0 %v3949_v62 }
0x1194   : > { %4977 = vmatprep.subr.bf16.mxu1 %v3948_v54  ;;  %4988 = vmatpush3.bf16.msra.mxu0 %v3949_v62 }
0x1195   : > { %4978 = vmatpush3.bf16.msra.mxu1 %v3948_v54  ;;  %v7814_v54 = vld [vmem:[#allocation35_spill] sm:$0xff] }
0x1196   : > { %4997 = vmatprep.subr.bf16.mxu1 %v5141_v55 }
0x1197   : > { %4990 = vmatmul.mubr.msk.bf16.vlgmr.msra.gmra.mrb[84].mxu0 %vm1695_vm2, %v3618_v42 }
0x1198   : > { %4980 = vmatmul.mubr.msk.bf16.vlgmr.msra.gmra.mrb[68].mxu1 %vm1695_vm2, %v3614_v15  ;;  %4993 = vmatprep.mubr.msk.bf16.mxu0 %vm1695_vm2, %v3619_v45 }
0x1199   : > { %4983 = vmatprep.mubr.msk.bf16.mxu1 %vm1695_vm2, %v3615_v32  ;;  %4998 = vmatpush3.bf16.msra.mxu1 %v5141_v55 }
0x119f   : > { %4994 = vmatmul.mubr.msk.bf16.gmra.mrb[88].mxu0 %vm1695_vm2, %v3620_v18 }
0x11a0   : > { %4984 = vmatmul.mubr.msk.bf16.gmra.mrb[72].mxu1 %vm1695_vm2, %v3616_v46 }
0x126a   : > { %v4991_v14 = vpop.f32.mrb[84].mxu0 }
0x126b   : > { %v4981_v15 = vpop.f32.mrb[68].mxu1  ;;  %v4073_v5 = vpop.f32.mrb[85].mxu0 }
0x126c   : > { %v3996_v7 = vpop.f32.mrb[69].mxu1  ;;  %v4992_v12 = vpop.f32.mrb[86].mxu0 }
0x126d   : > { %v4109_v42 = vpack.c.bf16 %v4992_v12, %v4991_v14  ;;  %v4982_v21 = vpop.f32.mrb[70].mxu1  ;;  %v4076_v41 = vpop.f32.mrb[87].mxu0  ;;  %v7815_v14 = vld [vmem:[#allocation31_spill] sm:$0xff]  ;;  %v7816_v12 = vld [vmem:[#allocation36_spill] sm:$0xff] }
0x126e   : > { %v4105_v16 = vpack.c.bf16 %v4982_v21, %v4981_v15  ;;  %v4108_v26 = vpack.c.bf16 %v4076_v41, %v4073_v5  ;;  %v3999_v61 = vpop.f32.mrb[71].mxu1  ;;  %v7817_v21 = vld [vmem:[#allocation32_spill] sm:$0xff] }
0x126f   : > { %v4104_v30 = vpack.c.bf16 %v3999_v61, %v3996_v7 }
0x1271   : > { %4999 = vmatprep.mubr.msk.bf16.mxu1 %vm1695_vm2, %v4104_v30 }
0x1272   : > { %v4995_v32 = vpop.f32.mrb[88].mxu0  ;;  %5000 = vmatmul.mubr.msk.bf16.vlgmr.msra.gmra.mrb[76].mxu1 %vm1695_vm2, %v4105_v16  ;;  %v7818_v16 = vld [vmem:[#allocation37_spill] sm:$0xff] }
0x1273   : > { %v4985_v45 = vpop.f32.mrb[72].mxu1  ;;  %v4089_v17 = vpop.f32.mrb[89].mxu0 }
0x1274   : > { %v4012_v38 = vpop.f32.mrb[73].mxu1  ;;  %v4996_v27 = vpop.f32.mrb[90].mxu0 }
0x1275   : > { %v4111_v6 = vpack.c.bf16 %v4996_v27, %v4995_v32  ;;  %v4986_v46 = vpop.f32.mrb[74].mxu1  ;;  %v4092_v18 = vpop.f32.mrb[91].mxu0 }
0x1276   : > { %v4107_v44 = vpack.c.bf16 %v4986_v46, %v4985_v45  ;;  %v4110_v50 = vpack.c.bf16 %v4092_v18, %v4089_v17  ;;  %v4015_v39 = vpop.f32.mrb[75].mxu1 }
0x1277   : > { %v4106_v20 = vpack.c.bf16 %v4015_v39, %v4012_v38 }
0x1279   : > { %5003 = vmatprep.mubr.msk.bf16.mxu1 %vm1695_vm2, %v4106_v20 }
0x127a   : > { %5004 = vmatmul.mubr.msk.bf16.gmra.mrb[80].mxu1 %vm1695_vm2, %v4107_v44 }
0x127b   : > { %5007 = vmatprep.mubr.msk.bf16.mxu1 %vm1695_vm2, %v4108_v26 }
0x1282   : > { %5008 = vmatmul.mubr.msk.bf16.gmra.mrb[84].mxu1 %vm1695_vm2, %v4109_v42 }
0x1283   : > { %5011 = vmatprep.mubr.msk.bf16.mxu1 %vm1695_vm2, %v4110_v50 }
0x128a   : > { %5012 = vmatmul.mubr.msk.bf16.gmra.mrb[88].mxu1 %vm1695_vm2, %v4111_v6 }
0x1345   : > { %v5001_v0 = vpop.f32.mrb[76].mxu1 }
0x1346   : > { %v4176_v4 = vpop.f32.mrb[77].mxu1  ;;  %v4241_v35 = vadd.f32 %v5001_v0, %v7808_v52 }
0x1347   : > { %v4239_v49 = vadd.f32 %v4176_v4, %v7806_v43  ;;  %v5002_v3 = vpop.f32.mrb[78].mxu1 }
0x1348   : > { %v4179_v57 = vpop.f32.mrb[79].mxu1  ;;  %v4242_v60 = vadd.f32 %v5002_v3, %v7809_v59 }
0x1349   : > { %4255 = vxpose.xlu0.b32.start [1/8] (short) (narrow) %v4239_v49, 32  ;;  %v4240_v2 = vadd.f32 %v4179_v57, %v7807_v63 }
0x134d   : > { %4256 = vxpose.xlu0.b32.cont [2/8] (short) (narrow) %v4240_v2, 32  ;;  %v5005_v25 = vpop.f32.mrb[80].mxu1 }
0x134e   : > { %v4192_v47 = vpop.f32.mrb[81].mxu1  ;;  %v4245_v55 = vadd.f32 %v5005_v25, %v7814_v54 }
0x134f   : > { %v5006_v37 = vpop.f32.mrb[82].mxu1  ;;  %v4243_v40 = vadd.f32 %v4192_v47, %v7810_v48 }
0x1350   : > { %v4195_v53 = vpop.f32.mrb[83].mxu1  ;;  %v4246_v42 = vadd.f32 %v5006_v37, %v7816_v12 }
0x1351   : > { %4257 = vxpose.xlu0.b32.cont [3/8] (short) (narrow) %v4241_v35, 32  ;;  %v4244_v51 = vadd.f32 %v4195_v53, %v7812_v58 }
0x1355   : > { %4258 = vxpose.xlu0.b32.cont [4/8] (short) (narrow) %v4242_v60, 32  ;;  %v5009_v11 = vpop.f32.mrb[84].mxu1 }
0x1356   : > { %v4208_v56 = vpop.f32.mrb[85].mxu1  ;;  %v4249_v15 = vadd.f32 %v5009_v11, %v7815_v14 }
0x1357   : > { %v4247_v1 = vadd.f32 %v4208_v56, %v7811_v8  ;;  %v5010_v10 = vpop.f32.mrb[86].mxu1 }
0x1358   : > { %v4211_v36 = vpop.f32.mrb[87].mxu1  ;;  %v4250_v41 = vadd.f32 %v5010_v10, %v7817_v21 }
0x1359   : > { %4259 = vxpose.xlu0.b32.cont [5/8] (short) (narrow) %v4243_v40, 32  ;;  %4287 = vxpose.xlu1.b32.start [1/8] (short) (narrow) %v4247_v1, 32  ;;  %v4248_v23 = vadd.f32 %v4211_v36, %v7813_v19 }
0x135d   : > { %4260 = vxpose.xlu0.b32.cont [6/8] (short) (narrow) %v4244_v51, 32  ;;  %v5013_v13 = vpop.f32.mrb[88].mxu1  ;;  %4288 = vxpose.xlu1.b32.cont [2/8] (short) (narrow) %v4248_v23, 32 }
0x135e   : > { %v4224_v62 = vpop.f32.mrb[89].mxu1 }
0x135f   : > { %v5014_v5 = vpop.f32.mrb[90].mxu1  ;;  %v4251_v26 = vadd.f32 %v4224_v62, %v7818_v16 }
0x1360   : > { %v4227_v7 = vpop.f32.mrb[91].mxu1 }
0x1361   : > { %4261 = vxpose.xlu0.b32.cont [7/8] (short) (narrow) %v4245_v55, 32  ;;  %4289 = vxpose.xlu1.b32.cont [3/8] (short) (narrow) %v4249_v15, 32 }
0x1365   : > { %4262 = vxpose.xlu0.b32.end [8/8] (short) (narrow) %v4246_v42, 32  ;;  %4290 = vxpose.xlu1.b32.cont [4/8] (short) (narrow) %v4250_v41, 32 }
0x1369   : > { %4291 = vxpose.xlu1.b32.cont [5/8] (short) (narrow) %v4251_v26, 32 }
0x136a   : > { %5411 = shalt.err (!%p5408_p3)
}
0x136b   : > { %s5412_s0 = scalar_lea.hbm %s7575_s26, 1024  ;;  %s5416_s28 = scalar_lea.hbm %s7691_s19, 2048 }
0x136c   : > { %p5413_p4 = scmp.ne.s32.totalorder %s7575_s26, %s5412_s0  ;;  %p5417_p9 = scmp.lt.u32.totalorder %s7575_s26, %s7691_s19 }
0x136d   : > { %p5418_p10 = scmp.lt.u32.totalorder %s5416_s28, %s5412_s0  ;;  %p5420_p12 = scmp.lt.u32.totalorder %s5412_s0, %s7575_s26 }
0x136e   : > { %p5414_p7 = pnand %p5413_p4, %p5647_p5 }
0x136f   : > { %p5419_p11 = por %p5418_p10, %p5417_p9 }
0x1370   : > { %p5415_p8 = pneg %p5414_p7 }
0x1371   : > { %p5421_p13 = por %p5420_p12, %p5419_p11 }
0x1373   : > { %p5422_p0 = pnand %p5421_p13, %p5415_p8 }
0x1375   : > { %5425 = shalt.err (!%p5422_p0)
}
0x1376   : > { %s7732_s6 = smov 128   ;;  %s5502_s8 = smov 8   ;;  %v7820_v61 = vld [vmem:[#allocation38_spill] sm:$0xff]  ;;  %v7821_v32 = vld [vmem:[#allocation39_spill] sm:$0xff]  ;;  %v7822_v17 = vld [vmem:[#allocation40_spill] sm:$0xff] }
0x1377   : > { %s7819_s30 = scalar_lea.sflag [#allocation3], %s7532_s25  ;;  %v4252_v30 = vadd.f32 %v4227_v7, %v7820_v61  ;;  %v4253_v45 = vadd.f32 %v5013_v13, %v7821_v32  ;;  %v4254_v38 = vadd.f32 %v5014_v5, %v7822_v17  ;;  %s7823_s5 = sshll.u32 %s7532_s25, 6 }
0x1378   : > { %5023 = dma.vmem_to_hbm [thread:$0]  (%p5647_p5), %s7577_s27, 1024, %s7575_s26, %s7819_s30, %s7732_s6, %s7732_s6, %s5502_s8  }
0x1379   : > { %4292 = vxpose.xlu1.b32.cont [6/8] (short) (narrow) %v4252_v30, 32  ;;  %s654_s0 = scalar_lea.vmem [#allocation4], %s7823_s5  ;;  %s7824_s27 = sshll.u32 %s5630_s2, 10 }
0x137a   : > { %s4364_s26 = sshll.u32 %s654_s0, 4  ;;  %s7623_s7 = scalar_lea.hbm %s7692_s20, %s7824_s27  ;;  %s7625_s26 = int_to_ptr.vmem [resolvable:$true] %s4364_s26 }
0x137b   : > { %s5426_s5 = scalar_lea.vmem %s7625_s26, 1024  ;;  %s5503_s2 = smov [#allocation4]  }
0x137c   : > { %p5427_p1 = scmp.ne.s32.totalorder %s7625_s26, %s5426_s5  ;;  %s5430_s6 = sshll.u32 %s5503_s2, 4  ;;  %s5431_s6 = int_to_ptr.vmem [resolvable:$false] %s5430_s6 }
0x137d   : > { %4293 = vxpose.xlu1.b32.cont [7/8] (short) (narrow) %v4253_v45, 32  ;;  %s5432_s21 = scalar_lea.vmem %s5431_s6, 2048  ;;  %p5433_p4 = scmp.lt.s32.totalorder %s7625_s26, %s5431_s6 }
0x137e   : > { %p5428_p2 = pnand %p5427_p1, %p5647_p5  ;;  %p5434_p7 = scmp.lt.s32.totalorder %s5432_s21, %s5426_s5 }
0x1380   : > { %p5429_p3 = pneg %p5428_p2  ;;  %p5435_p8 = por %p5434_p7, %p5433_p4 }
0x1381   : > { %4294 = vxpose.xlu1.b32.end [8/8] (short) (narrow) %v4254_v38, 32 }
0x1382   : > { %p5436_p9 = pnand %p5435_p8, %p5429_p3 }
0x13c9   : > { %v4271_v27 = vpop.trf.xlu0 }
0x13ca   : > { %4319 = vst.msk [vmem:[%s654_s0] sm:$0xff] %vm1919_vm4, %v4271_v27 }
0x13cd   : > { %v4272_v6 = vpop.trf.xlu0 }
0x13ce   : > { %4320 = vst.msk [vmem:[%s654_s0 + $0x8] sm:$0xff] %vm1919_vm4, %v4272_v6 }
0x13d1   : > { %v4273_v46 = vpop.trf.xlu0 }
0x13d2   : > { %4321 = vst.msk [vmem:[%s654_s0 + $0x10] sm:$0xff] %vm1919_vm4, %v4273_v46 }
0x13d5   : > { %v4274_v18 = vpop.trf.xlu0 }
0x13d6   : > { %4322 = vst.msk [vmem:[%s654_s0 + $0x18] sm:$0xff] %vm1919_vm4, %v4274_v18 }
0x13e5   : > { %v4303_v44 = vpop.trf.xlu1 }
0x13e6   : > { %4323 = vst.msk [vmem:[%s654_s0 + $0x20] sm:$0xff] %vm1919_vm4, %v4303_v44 }
0x13e9   : > { %v4304_v50 = vpop.trf.xlu1 }
0x13ea   : > { %4324 = vst.msk [vmem:[%s654_s0 + $0x28] sm:$0xff] %vm1919_vm4, %v4304_v50 }
0x13ed   : > { %v4305_v39 = vpop.trf.xlu1 }
0x13ee   : > { %4325 = vst.msk [vmem:[%s654_s0 + $0x30] sm:$0xff] %vm1919_vm4, %v4305_v39 }
0x13f1   : > { %v4306_v20 = vpop.trf.xlu1 }
0x13f2   : > { %4326 = vst.msk [vmem:[%s654_s0 + $0x38] sm:$0xff] %vm1919_vm4, %v4306_v20 }
0x13f3   : > { %5439 = shalt.err (!%p5436_p9)
}
0x13f4   : > { %s5440_s0 = scalar_lea.hbm %s7623_s7, 1024  ;;  %s5444_s2 = scalar_lea.hbm %s7692_s20, 2048 }
0x13f5   : > { %p5441_p10 = scmp.ne.s32.totalorder %s7623_s7, %s5440_s0  ;;  %p5445_p13 = scmp.lt.u32.totalorder %s7623_s7, %s7692_s20 }
0x13f6   : > { %p5446_p0 = scmp.lt.u32.totalorder %s5444_s2, %s5440_s0  ;;  %p5448_p2 = scmp.lt.u32.totalorder %s5440_s0, %s7623_s7 }
0x13f7   : > { %p5442_p11 = pnand %p5441_p10, %p5647_p5 }
0x13f8   : > { %p5447_p1 = por %p5446_p0, %p5445_p13 }
0x13f9   : > { %p5443_p12 = pneg %p5442_p11 }
0x13fa   : > { %p5449_p3 = por %p5448_p2, %p5447_p1 }
0x13fc   : > { %p5450_p4 = pnand %p5449_p3, %p5443_p12 }
0x13fe   : > { %5453 = shalt.err (!%p5450_p4)
}
0x13ff   : > { %s7825_s5 = smov 128   ;;  %s7826_s21 = scalar_lea.sflag [#allocation5], %s7532_s25 }
0x1400   : > { %5024 = dma.vmem_to_hbm [thread:$0]  (%p5647_p5), %s7625_s26, 1024, %s7623_s7, %s7826_s21, %s7825_s5, %s7825_s5, %s5502_s8  }
0x1401 PF: > { %p5034_p7 = scmp.ge.s32.totalorder %s5492_s24, 2  ;;  %s4379_s30 = sand.u32 1, %s5480_s1  }
0x1402   : > { %s4380_s0 = scalar_lea.sflag [#allocation3], %s4379_s30 }
0x1403   : > { %p5028_p8 = pnand %p5034_p7, %p5651_p6 }
0x1405   : > { %5471 = dma.done.wait (!%p5028_p8), %s4380_s0, 1024  }
0x1406   : > { %5473 = vsyncadd (!%p5028_p8), %s4380_s0, 4294966272  ;;  %s4389_s4 = scalar_lea.sflag [#allocation5], %s4379_s30 }
0x1407   : > { %5475 = dma.done.wait (!%p5028_p8), %s4389_s4, 1024  }
0x1408   : > { %5477 = vsyncadd (!%p5028_p8), %s4389_s4, 4294966272  ;;  %s7827_s25 = sld [smem:[#allocation8_spill]]  ;;  %p34_p5 = scmp.ge.s32.totalorder %s5634_s3, 4  }
0x1409   : > { %s7828_s1 = smov %s5484_s22  ;;  %s7829_s22 = smov %s5488_s23 }
0x140a   : > { %s7831_s24 = smov %s5634_s3  ;;  %36 = sbr.rel (!%p34_p5) target bundleno = 15 (0xf), region = 151 }
0x140e   : > { %s7830_s23 = smov %s7827_s25 }
0x1411   :  { %4394 = vsyncpa [#allocation3], 1 }
0x1412   :  { %4396 = vsyncpa [#allocation3 + $0x1], 1 }
0x1413   :  { %4397 = vsyncpa [#allocation5], 1 }
0x1414   :  { %4399 = vsyncpa [#allocation5 + $0x1], 1 }

</bundles_post_ra>
